<compile_context>
chip_gen: v5e
topology: v5e:2x2
jax: 0.10.0
libtpu: 0.0.40
codegen_flags: <defaults>
</compile_context>

<pallas_src>
import math
from types import SimpleNamespace

import jax
import jax.numpy as jnp
from jax import lax
from jax.experimental import pallas as pl
from jax.experimental.pallas import tpu as pltpu


# ----------------------------------------------------------------------------
# Model-size helper (deterministic stand-in for the project's
# get_hidden_layer_sizes: linear interpolation between input_dim and
# n_features, endpoints excluded).
# ----------------------------------------------------------------------------
def get_hidden_layer_sizes(input_dim, n_features, n_hidden):
    return [
        int(round(input_dim + (n_features - input_dim) * (i + 1) / (n_hidden + 1)))
        for i in range(n_hidden)
    ]


# ----------------------------------------------------------------------------
# Fused decoder kernel: 5 LSTM layers + Linear head, one pallas_call.
# ----------------------------------------------------------------------------
def _make_fused_decoder(T, BP, HP, FP, L):
    """Build the fused kernel callable.

    Kernel inputs (all fully VMEM-resident, no grid / no pipelining):
      x      : [T*BP, HP]   time-major flattened, zero-padded input
      h0, c0 : [BP, HP]     padded encoder state (feeds layer 0 only)
      wih    : [L, HP, 4HP] padded, transposed input weights (gate order i,f,g,o,
                            each gate placed at columns [k*HP : k*HP+H])
      whh    : [L, HP, 4HP] padded, transposed recurrent weights
      b      : [L, 1, 4HP]  padded combined bias (b_ih + b_hh)
      ow     : [HP, FP]     padded output-layer weight (transposed)
      ob     : [1, FP]      padded output-layer bias
    Output:
      out    : [T*BP, FP]   lane-dense; wrapper slices to [B, T, n_features]
    """

    def kernel(x_ref, h0_ref, c0_ref, wih_ref, whh_ref, b_ref, ow_ref, ob_ref,
               out_ref, act_ref):
        # act_ref: inter-layer activation buffer, time-major flat [T*BP, HP].
        act_ref[...] = x_ref[...]

        for l in range(L):                      # static unroll over 5 layers
            wih = wih_ref[l]                    # [HP, 4HP]
            whh = whh_ref[l]                    # [HP, 4HP]
            b = b_ref[l]                        # [1, 4HP]

            # Hoisted input projection for all T steps: one [T*BP,HP]x[HP,4HP] dot.
            gx = jnp.dot(act_ref[...], wih,
                         preferred_element_type=jnp.float32) + b   # [T*BP, 4HP]

            if l == 0:
                h = h0_ref[...]                 # encoder state feeds lstm1 only
                c = c0_ref[...]
            else:
                h = jnp.zeros((BP, HP), jnp.float32)
                c = jnp.zeros((BP, HP), jnp.float32)

            # Sequential recurrence, statically unrolled (T small & fixed).
            for t in range(T):
                gates = gx[t * BP:(t + 1) * BP, :] + jnp.dot(
                    h, whh, preferred_element_type=jnp.float32)     # [BP, 4HP]
                i_g = jax.nn.sigmoid(gates[:, 0 * HP:1 * HP])
                f_g = jax.nn.sigmoid(gates[:, 1 * HP:2 * HP])
                g_g = jnp.tanh(gates[:, 2 * HP:3 * HP])
                o_g = jax.nn.sigmoid(gates[:, 3 * HP:4 * HP])
                c = f_g * c + i_g * g_g
                h = o_g * jnp.tanh(c)
                act_ref[pl.ds(t * BP, BP), :] = h

        # Fused Linear head; output block is lane-dense (FP = 128).
        out_ref[...] = (jnp.dot(act_ref[...], ow_ref[...],
                                preferred_element_type=jnp.float32)
                        + ob_ref[...])

    vmem = pl.BlockSpec(memory_space=pltpu.MemorySpace.VMEM)
    return pl.pallas_call(
        kernel,
        out_shape=jax.ShapeDtypeStruct((T * BP, FP), jnp.float32),
        in_specs=[vmem] * 8,
        out_specs=vmem,
        scratch_shapes=[pltpu.VMEM((T * BP, HP), jnp.float32)],
    )


# ----------------------------------------------------------------------------
# Weight padding / packing (wrapper-side, one-time glue)
# ----------------------------------------------------------------------------
def _pad_lstm_layer(p, HP):
    w_ih, w_hh, b_ih, b_hh = p["w_ih"], p["w_hh"], p["b_ih"], p["b_hh"]
    H = w_hh.shape[1]
    D = w_ih.shape[1]
    wih_t = w_ih.T.astype(jnp.float32)                 # [D, 4H]
    whh_t = w_hh.T.astype(jnp.float32)                 # [H, 4H]
    bias = (b_ih + b_hh).astype(jnp.float32)           # [4H]
    wih_p = jnp.zeros((HP, 4 * HP), jnp.float32)
    whh_p = jnp.zeros((HP, 4 * HP), jnp.float32)
    b_p = jnp.zeros((1, 4 * HP), jnp.float32)
    for k in range(4):                                 # gate order i, f, g, o
        wih_p = wih_p.at[:D, k * HP:k * HP + H].set(wih_t[:, k * H:(k + 1) * H])
        whh_p = whh_p.at[:H, k * HP:k * HP + H].set(whh_t[:, k * H:(k + 1) * H])
        b_p = b_p.at[0, k * HP:k * HP + H].set(bias[k * H:(k + 1) * H])
    return wih_p, whh_p, b_p


# ----------------------------------------------------------------------------
# Parameter init (deterministic, PyTorch-style uniform(-1/sqrt(H), 1/sqrt(H)))
# ----------------------------------------------------------------------------
def init_decoder_params(key, args, input_dim=16, n_features=1):
    hidden_sizes = get_hidden_layer_sizes(input_dim, n_features, args.n_layer - 1)
    layer_sizes = [input_dim] + hidden_sizes + [n_features]
    lstm_dims = [(layer_sizes[0], layer_sizes[0]),
                 (layer_sizes[0], layer_sizes[1]),
                 (layer_sizes[1], layer_sizes[2]),
                 (layer_sizes[2], layer_sizes[3]),
                 (layer_sizes[3], layer_sizes[4])]
    params = {"lstm": [], "layer_sizes": layer_sizes}
    for (din, h) in lstm_dims:
        key, k1, k2, k3, k4 = jax.random.split(key, 5)
        s = 1.0 / math.sqrt(h)
        params["lstm"].append(dict(
            w_ih=jax.random.uniform(k1, (4 * h, din), jnp.float32, -s, s),
            w_hh=jax.random.uniform(k2, (4 * h, h), jnp.float32, -s, s),
            b_ih=jax.random.uniform(k3, (4 * h,), jnp.float32, -s, s),
            b_hh=jax.random.uniform(k4, (4 * h,), jnp.float32, -s, s)))
    hdim, fdim = layer_sizes[4], layer_sizes[5]
    key, k1, k2 = jax.random.split(key, 3)
    s = 1.0 / math.sqrt(hdim)
    params["out_w"] = jax.random.uniform(k1, (fdim, hdim), jnp.float32, -s, s)
    params["out_b"] = jax.random.uniform(k2, (fdim,), jnp.float32, -s, s)
    return params


# ----------------------------------------------------------------------------
# Decoder.forward (Pallas) and a pure-JAX reference
# ----------------------------------------------------------------------------
def decoder_forward_pallas(params, x, encoder_state, seq_len, args, input_dim=16):
    B = args.batch_size
    layer_sizes = params["layer_sizes"]
    L = len(params["lstm"])
    F = layer_sizes[5]
    H5 = layer_sizes[4]
    T = seq_len

    # Padded dims: batch -> multiple of 8 sublanes, hidden -> 32 (4H = 128 lanes).
    BP = max(8, ((B + 7) // 8) * 8)
    max_dim = max([input_dim] + layer_sizes[:5])
    HP = 32
    while HP < max_dim:
        HP *= 2
    FP = 128

    x = x.reshape(B, T, input_dim).astype(jnp.float32)
    x_tm = jnp.transpose(x, (1, 0, 2))                                 # [T, B, D0]
    x_flat = (jnp.zeros((T, BP, HP), jnp.float32)
              .at[:, :B, :input_dim].set(x_tm)).reshape(T * BP, HP)

    h0, c0 = encoder_state                     # each [1, B, input_dim] (PyTorch)
    h0p = jnp.zeros((BP, HP), jnp.float32).at[:B, :input_dim].set(
        h0[0].astype(jnp.float32))
    c0p = jnp.zeros((BP, HP), jnp.float32).at[:B, :input_dim].set(
        c0[0].astype(jnp.float32))

    wih_l, whh_l, b_l = [], [], []
    for p in params["lstm"]:
        wp, hp, bp = _pad_lstm_layer(p, HP)
        wih_l.append(wp); whh_l.append(hp); b_l.append(bp)
    wih_all = jnp.stack(wih_l)                 # [L, HP, 4HP]
    whh_all = jnp.stack(whh_l)                 # [L, HP, 4HP]
    b_all = jnp.stack(b_l)                     # [L, 1, 4HP]

    ow_p = jnp.zeros((HP, FP), jnp.float32).at[:H5, :F].set(
        params["out_w"].T.astype(jnp.float32))
    ob_p = jnp.zeros((1, FP), jnp.float32).at[0, :F].set(
        params["out_b"].astype(jnp.float32))

    fused = _make_fused_decoder(T, BP, HP, FP, L)
    out_flat = fused(x_flat, h0p, c0p, wih_all, whh_all, b_all, ow_p, ob_p)

    out = out_flat.reshape(T, BP, FP)
    out = jnp.transpose(out, (1, 0, 2))[:B, :, :F]                     # [B, T, F]
    return out


def _lstm_layer_ref(x, h0, c0, w_ih, w_hh, b_ih, b_hh):
    def step(carry, xt):
        h, c = carry
        gates = xt @ w_ih.T + h @ w_hh.T + b_ih + b_hh
        i, f, g, o = jnp.split(gates, 4, axis=-1)
        c = jax.nn.sigmoid(f) * c + jax.nn.sigmoid(i) * jnp.tanh(g)
        h = jax.nn.sigmoid(o) * jnp.tanh(c)
        return (h, c), h
    (_, _), ys = lax.scan(step, (h0, c0), jnp.transpose(x, (1, 0, 2)))
    return jnp.transpose(ys, (1, 0, 2))


def decoder_forward_ref(params, x, encoder_state, seq_len, args, input_dim=16):
    B = args.batch_size
    layer_sizes = params["layer_sizes"]
    x = x.reshape(B, seq_len, input_dim).astype(jnp.float32)
    h0, c0 = encoder_state
    y = x
    for li, p in enumerate(params["lstm"]):
        h = p["w_hh"].shape[1]
        if li == 0:
            hi, ci = h0[0].astype(jnp.float32), c0[0].astype(jnp.float32)
        else:
            hi = jnp.zeros((B, h), jnp.float32)
            ci = jnp.zeros((B, h), jnp.float32)
        y = _lstm_layer_ref(y, hi, ci, p["w_ih"], p["w_hh"], p["b_ih"], p["b_hh"])
    y = y.reshape(B, seq_len, layer_sizes[4])
    return y @ params["out_w"].T + params["out_b"]


# ----------------------------------------------------------------------------
if __name__ == "__main__":
    args = SimpleNamespace(batch_size=2, n_layer=5)
    seq_len = 8
    input_dim = 16
    n_features = 1

    key = jax.random.PRNGKey(0)
    key, kp, kx, kh, kc = jax.random.split(key, 5)

    params = init_decoder_params(kp, args, input_dim=input_dim,
                                 n_features=n_features)

    x = jax.random.normal(kx, (args.batch_size, seq_len, input_dim),
                          jnp.float32)
    encoder_state = (
        jax.random.normal(kh, (1, args.batch_size, input_dim), jnp.float32),
        jax.random.normal(kc, (1, args.batch_size, input_dim), jnp.float32),
    )

    out = decoder_forward_pallas(params, x, encoder_state, seq_len, args,
                                 input_dim=input_dim)
    out = jax.block_until_ready(out)

    ref = decoder_forward_ref(params, x, encoder_state, seq_len, args,
                              input_dim=input_dim)
    assert out.shape == (args.batch_size, seq_len, n_features), out.shape
    assert jnp.allclose(out, ref, atol=1e-4, rtol=1e-4), \
        float(jnp.max(jnp.abs(out - ref)))

    print("KERNEL_OK")
</pallas_src>

<mosaic_0001>
module attributes {stable_mosaic.version = 11 : i64} {
  func.func @kernel(%arg0: memref<64x32xf32, #tpu.memory_space<vmem>>, %arg1: memref<8x32xf32, #tpu.memory_space<vmem>>, %arg2: memref<8x32xf32, #tpu.memory_space<vmem>>, %arg3: memref<5x32x128xf32, #tpu.memory_space<vmem>>, %arg4: memref<5x32x128xf32, #tpu.memory_space<vmem>>, %arg5: memref<5x1x128xf32, #tpu.memory_space<vmem>>, %arg6: memref<32x128xf32, #tpu.memory_space<vmem>>, %arg7: memref<1x128xf32, #tpu.memory_space<vmem>>, %arg8: memref<64x128xf32, #tpu.memory_space<vmem>>, %arg9: memref<64x32xf32, #tpu.memory_space<vmem>>) attributes {dimension_semantics = [], scalar_prefetch = 0 : i64, scratch_operands = 1 : i64, tpu.core_type = #tpu.core_type<tc>} {
    %c0 = arith.constant 0 : index
    %c0_0 = arith.constant 0 : index
    %0 = vector.load %arg0[%c0, %c0_0] : memref<64x32xf32, #tpu.memory_space<vmem>>, vector<64x32xf32>
    %c0_1 = arith.constant 0 : index
    %c0_2 = arith.constant 0 : index
    %1 = vector.load %arg9[%c0_1, %c0_2] : memref<64x32xf32, #tpu.memory_space<vmem>>, vector<64x32xf32>
    tpu.vector_store %arg9[%c0_1, %c0_2], %0 {strides = array<i32>} : memref<64x32xf32, #tpu.memory_space<vmem>>, vector<64x32xf32>,
    %c0_3 = arith.constant 0 : index
    %c0_4 = arith.constant 0 : index
    %c0_5 = arith.constant 0 : index
    %2 = vector.load %arg3[%c0_3, %c0_4, %c0_5] : memref<5x32x128xf32, #tpu.memory_space<vmem>>, vector<1x32x128xf32>
    %3 = vector.shape_cast %2 : vector<1x32x128xf32> to vector<32x128xf32>
    %c0_6 = arith.constant 0 : index
    %c0_7 = arith.constant 0 : index
    %c0_8 = arith.constant 0 : index
    %4 = vector.load %arg4[%c0_6, %c0_7, %c0_8] : memref<5x32x128xf32, #tpu.memory_space<vmem>>, vector<1x32x128xf32>
    %5 = vector.shape_cast %4 : vector<1x32x128xf32> to vector<32x128xf32>
    %c0_9 = arith.constant 0 : index
    %c0_10 = arith.constant 0 : index
    %c0_11 = arith.constant 0 : index
    %6 = vector.load %arg5[%c0_9, %c0_10, %c0_11] : memref<5x1x128xf32, #tpu.memory_space<vmem>>, vector<1x1x128xf32>
    %7 = vector.shape_cast %6 : vector<1x1x128xf32> to vector<1x128xf32>
    %c0_12 = arith.constant 0 : index
    %c0_13 = arith.constant 0 : index
    %8 = vector.load %arg9[%c0_12, %c0_13] : memref<64x32xf32, #tpu.memory_space<vmem>>, vector<64x32xf32>
    %cst = arith.constant dense<0.000000e+00> : vector<64x128xf32>
    %9 = tpu.matmul %8, %3, %cst {dimension_numbers = #tpu.dot_dimension_numbers<[1], [0], [0], [1], [0, 0, 1, 1], [], []>} : vector<64x32xf32>, vector<32x128xf32>, vector<64x128xf32> -> vector<64x128xf32>
    %10 = vector.broadcast %7 : vector<1x128xf32> to vector<64x128xf32>
    %11 = arith.addf %9, %10 : vector<64x128xf32>
    %c0_14 = arith.constant 0 : index
    %c0_15 = arith.constant 0 : index
    %12 = vector.load %arg1[%c0_14, %c0_15] : memref<8x32xf32, #tpu.memory_space<vmem>>, vector<8x32xf32>
    %c0_16 = arith.constant 0 : index
    %c0_17 = arith.constant 0 : index
    %13 = vector.load %arg2[%c0_16, %c0_17] : memref<8x32xf32, #tpu.memory_space<vmem>>, vector<8x32xf32>
    %14 = vector.extract_strided_slice %11 {offsets = [0, 0], sizes = [8, 128], strides = [1, 1]} : vector<64x128xf32> to vector<8x128xf32>
    %cst_18 = arith.constant dense<0.000000e+00> : vector<8x128xf32>
    %15 = tpu.matmul %12, %5, %cst_18 {dimension_numbers = #tpu.dot_dimension_numbers<[1], [0], [0], [1], [0, 0, 1, 1], [], []>} : vector<8x32xf32>, vector<32x128xf32>, vector<8x128xf32> -> vector<8x128xf32>
    %16 = arith.addf %14, %15 : vector<8x128xf32>
    %17 = vector.extract_strided_slice %16 {offsets = [0, 0], sizes = [8, 32], strides = [1, 1]} : vector<8x128xf32> to vector<8x32xf32>
    %18 = arith.negf %17 : vector<8x32xf32>
    %19 = math.exp %18 : vector<8x32xf32>
    %cst_19 = arith.constant 1.000000e+00 : f32
    %20 = vector.broadcast %cst_19 : f32 to vector<8x32xf32>
    %21 = arith.addf %20, %19 : vector<8x32xf32>
    %22 = arith.divf %20, %21 : vector<8x32xf32>
    %23 = vector.extract_strided_slice %16 {offsets = [0, 32], sizes = [8, 32], strides = [1, 1]} : vector<8x128xf32> to vector<8x32xf32>
    %24 = arith.negf %23 : vector<8x32xf32>
    %25 = math.exp %24 : vector<8x32xf32>
    %cst_20 = arith.constant 1.000000e+00 : f32
    %26 = vector.broadcast %cst_20 : f32 to vector<8x32xf32>
    %27 = arith.addf %26, %25 : vector<8x32xf32>
    %28 = arith.divf %26, %27 : vector<8x32xf32>
    %29 = vector.extract_strided_slice %16 {offsets = [0, 64], sizes = [8, 32], strides = [1, 1]} : vector<8x128xf32> to vector<8x32xf32>
    %30 = math.tanh %29 : vector<8x32xf32>
    %31 = vector.extract_strided_slice %16 {offsets = [0, 96], sizes = [8, 32], strides = [1, 1]} : vector<8x128xf32> to vector<8x32xf32>
    %32 = arith.negf %31 : vector<8x32xf32>
    %33 = math.exp %32 : vector<8x32xf32>
    %cst_21 = arith.constant 1.000000e+00 : f32
    %34 = vector.broadcast %cst_21 : f32 to vector<8x32xf32>
    %35 = arith.addf %34, %33 : vector<8x32xf32>
    %36 = arith.divf %34, %35 : vector<8x32xf32>
    %37 = arith.mulf %28, %13 : vector<8x32xf32>
    %38 = arith.mulf %22, %30 : vector<8x32xf32>
    %39 = arith.addf %37, %38 : vector<8x32xf32>
    %40 = math.tanh %39 : vector<8x32xf32>
    %41 = arith.mulf %36, %40 : vector<8x32xf32>
    %c0_22 = arith.constant 0 : index
    %c0_23 = arith.constant 0 : index
    %42 = vector.load %arg9[%c0_22, %c0_23] : memref<64x32xf32, #tpu.memory_space<vmem>>, vector<8x32xf32>
    tpu.vector_store %arg9[%c0_22, %c0_23], %41 {strides = array<i32>} : memref<64x32xf32, #tpu.memory_space<vmem>>, vector<8x32xf32>,
    %43 = vector.extract_strided_slice %11 {offsets = [8, 0], sizes = [8, 128], strides = [1, 1]} : vector<64x128xf32> to vector<8x128xf32>
    %cst_24 = arith.constant dense<0.000000e+00> : vector<8x128xf32>
    %44 = tpu.matmul %41, %5, %cst_24 {dimension_numbers = #tpu.dot_dimension_numbers<[1], [0], [0], [1], [0, 0, 1, 1], [], []>} : vector<8x32xf32>, vector<32x128xf32>, vector<8x128xf32> -> vector<8x128xf32>
    %45 = arith.addf %43, %44 : vector<8x128xf32>
    %46 = vector.extract_strided_slice %45 {offsets = [0, 0], sizes = [8, 32], strides = [1, 1]} : vector<8x128xf32> to vector<8x32xf32>
    %47 = arith.negf %46 : vector<8x32xf32>
    %48 = math.exp %47 : vector<8x32xf32>
    %cst_25 = arith.constant 1.000000e+00 : f32
    %49 = vector.broadcast %cst_25 : f32 to vector<8x32xf32>
    %50 = arith.addf %49, %48 : vector<8x32xf32>
    %51 = arith.divf %49, %50 : vector<8x32xf32>
    %52 = vector.extract_strided_slice %45 {offsets = [0, 32], sizes = [8, 32], strides = [1, 1]} : vector<8x128xf32> to vector<8x32xf32>
    %53 = arith.negf %52 : vector<8x32xf32>
    %54 = math.exp %53 : vector<8x32xf32>
    %cst_26 = arith.constant 1.000000e+00 : f32
    %55 = vector.broadcast %cst_26 : f32 to vector<8x32xf32>
    %56 = arith.addf %55, %54 : vector<8x32xf32>
    %57 = arith.divf %55, %56 : vector<8x32xf32>
    %58 = vector.extract_strided_slice %45 {offsets = [0, 64], sizes = [8, 32], strides = [1, 1]} : vector<8x128xf32> to vector<8x32xf32>
    %59 = math.tanh %58 : vector<8x32xf32>
    %60 = vector.extract_strided_slice %45 {offsets = [0, 96], sizes = [8, 32], strides = [1, 1]} : vector<8x128xf32> to vector<8x32xf32>
    %61 = arith.negf %60 : vector<8x32xf32>
    %62 = math.exp %61 : vector<8x32xf32>
    %cst_27 = arith.constant 1.000000e+00 : f32
    %63 = vector.broadcast %cst_27 : f32 to vector<8x32xf32>
    %64 = arith.addf %63, %62 : vector<8x32xf32>
    %65 = arith.divf %63, %64 : vector<8x32xf32>
    %66 = arith.mulf %57, %39 : vector<8x32xf32>
    %67 = arith.mulf %51, %59 : vector<8x32xf32>
    %68 = arith.addf %66, %67 : vector<8x32xf32>
    %69 = math.tanh %68 : vector<8x32xf32>
    %70 = arith.mulf %65, %69 : vector<8x32xf32>
    %c8 = arith.constant 8 : index
    %c0_28 = arith.constant 0 : index
    %71 = vector.load %arg9[%c8, %c0_28] : memref<64x32xf32, #tpu.memory_space<vmem>>, vector<8x32xf32>
    tpu.vector_store %arg9[%c8, %c0_28], %70 {strides = array<i32>} : memref<64x32xf32, #tpu.memory_space<vmem>>, vector<8x32xf32>,
    %72 = vector.extract_strided_slice %11 {offsets = [16, 0], sizes = [8, 128], strides = [1, 1]} : vector<64x128xf32> to vector<8x128xf32>
    %cst_29 = arith.constant dense<0.000000e+00> : vector<8x128xf32>
    %73 = tpu.matmul %70, %5, %cst_29 {dimension_numbers = #tpu.dot_dimension_numbers<[1], [0], [0], [1], [0, 0, 1, 1], [], []>} : vector<8x32xf32>, vector<32x128xf32>, vector<8x128xf32> -> vector<8x128xf32>
    %74 = arith.addf %72, %73 : vector<8x128xf32>
    %75 = vector.extract_strided_slice %74 {offsets = [0, 0], sizes = [8, 32], strides = [1, 1]} : vector<8x128xf32> to vector<8x32xf32>
    %76 = arith.negf %75 : vector<8x32xf32>
    %77 = math.exp %76 : vector<8x32xf32>
    %cst_30 = arith.constant 1.000000e+00 : f32
    %78 = vector.broadcast %cst_30 : f32 to vector<8x32xf32>
    %79 = arith.addf %78, %77 : vector<8x32xf32>
    %80 = arith.divf %78, %79 : vector<8x32xf32>
    %81 = vector.extract_strided_slice %74 {offsets = [0, 32], sizes = [8, 32], strides = [1, 1]} : vector<8x128xf32> to vector<8x32xf32>
    %82 = arith.negf %81 : vector<8x32xf32>
    %83 = math.exp %82 : vector<8x32xf32>
    %cst_31 = arith.constant 1.000000e+00 : f32
    %84 = vector.broadcast %cst_31 : f32 to vector<8x32xf32>
    %85 = arith.addf %84, %83 : vector<8x32xf32>
    %86 = arith.divf %84, %85 : vector<8x32xf32>
    %87 = vector.extract_strided_slice %74 {offsets = [0, 64], sizes = [8, 32], strides = [1, 1]} : vector<8x128xf32> to vector<8x32xf32>
    %88 = math.tanh %87 : vector<8x32xf32>
    %89 = vector.extract_strided_slice %74 {offsets = [0, 96], sizes = [8, 32], strides = [1, 1]} : vector<8x128xf32> to vector<8x32xf32>
    %90 = arith.negf %89 : vector<8x32xf32>
    %91 = math.exp %90 : vector<8x32xf32>
    %cst_32 = arith.constant 1.000000e+00 : f32
    %92 = vector.broadcast %cst_32 : f32 to vector<8x32xf32>
    %93 = arith.addf %92, %91 : vector<8x32xf32>
    %94 = arith.divf %92, %93 : vector<8x32xf32>
    %95 = arith.mulf %86, %68 : vector<8x32xf32>
    %96 = arith.mulf %80, %88 : vector<8x32xf32>
    %97 = arith.addf %95, %96 : vector<8x32xf32>
    %98 = math.tanh %97 : vector<8x32xf32>
    %99 = arith.mulf %94, %98 : vector<8x32xf32>
    %c16 = arith.constant 16 : index
    %c0_33 = arith.constant 0 : index
    %100 = vector.load %arg9[%c16, %c0_33] : memref<64x32xf32, #tpu.memory_space<vmem>>, vector<8x32xf32>
    tpu.vector_store %arg9[%c16, %c0_33], %99 {strides = array<i32>} : memref<64x32xf32, #tpu.memory_space<vmem>>, vector<8x32xf32>,
    %101 = vector.extract_strided_slice %11 {offsets = [24, 0], sizes = [8, 128], strides = [1, 1]} : vector<64x128xf32> to vector<8x128xf32>
    %cst_34 = arith.constant dense<0.000000e+00> : vector<8x128xf32>
    %102 = tpu.matmul %99, %5, %cst_34 {dimension_numbers = #tpu.dot_dimension_numbers<[1], [0], [0], [1], [0, 0, 1, 1], [], []>} : vector<8x32xf32>, vector<32x128xf32>, vector<8x128xf32> -> vector<8x128xf32>
    %103 = arith.addf %101, %102 : vector<8x128xf32>
    %104 = vector.extract_strided_slice %103 {offsets = [0, 0], sizes = [8, 32], strides = [1, 1]} : vector<8x128xf32> to vector<8x32xf32>
    %105 = arith.negf %104 : vector<8x32xf32>
    %106 = math.exp %105 : vector<8x32xf32>
    %cst_35 = arith.constant 1.000000e+00 : f32
    %107 = vector.broadcast %cst_35 : f32 to vector<8x32xf32>
    %108 = arith.addf %107, %106 : vector<8x32xf32>
    %109 = arith.divf %107, %108 : vector<8x32xf32>
    %110 = vector.extract_strided_slice %103 {offsets = [0, 32], sizes = [8, 32], strides = [1, 1]} : vector<8x128xf32> to vector<8x32xf32>
    %111 = arith.negf %110 : vector<8x32xf32>
    %112 = math.exp %111 : vector<8x32xf32>
    %cst_36 = arith.constant 1.000000e+00 : f32
    %113 = vector.broadcast %cst_36 : f32 to vector<8x32xf32>
    %114 = arith.addf %113, %112 : vector<8x32xf32>
    %115 = arith.divf %113, %114 : vector<8x32xf32>
    %116 = vector.extract_strided_slice %103 {offsets = [0, 64], sizes = [8, 32], strides = [1, 1]} : vector<8x128xf32> to vector<8x32xf32>
    %117 = math.tanh %116 : vector<8x32xf32>
    %118 = vector.extract_strided_slice %103 {offsets = [0, 96], sizes = [8, 32], strides = [1, 1]} : vector<8x128xf32> to vector<8x32xf32>
    %119 = arith.negf %118 : vector<8x32xf32>
    %120 = math.exp %119 : vector<8x32xf32>
    %cst_37 = arith.constant 1.000000e+00 : f32
    %121 = vector.broadcast %cst_37 : f32 to vector<8x32xf32>
    %122 = arith.addf %121, %120 : vector<8x32xf32>
    %123 = arith.divf %121, %122 : vector<8x32xf32>
    %124 = arith.mulf %115, %97 : vector<8x32xf32>
    %125 = arith.mulf %109, %117 : vector<8x32xf32>
    %126 = arith.addf %124, %125 : vector<8x32xf32>
    %127 = math.tanh %126 : vector<8x32xf32>
    %128 = arith.mulf %123, %127 : vector<8x32xf32>
    %c24 = arith.constant 24 : index
    %c0_38 = arith.constant 0 : index
    %129 = vector.load %arg9[%c24, %c0_38] : memref<64x32xf32, #tpu.memory_space<vmem>>, vector<8x32xf32>
    tpu.vector_store %arg9[%c24, %c0_38], %128 {strides = array<i32>} : memref<64x32xf32, #tpu.memory_space<vmem>>, vector<8x32xf32>,
    %130 = vector.extract_strided_slice %11 {offsets = [32, 0], sizes = [8, 128], strides = [1, 1]} : vector<64x128xf32> to vector<8x128xf32>
    %cst_39 = arith.constant dense<0.000000e+00> : vector<8x128xf32>
    %131 = tpu.matmul %128, %5, %cst_39 {dimension_numbers = #tpu.dot_dimension_numbers<[1], [0], [0], [1], [0, 0, 1, 1], [], []>} : vector<8x32xf32>, vector<32x128xf32>, vector<8x128xf32> -> vector<8x128xf32>
    %132 = arith.addf %130, %131 : vector<8x128xf32>
    %133 = vector.extract_strided_slice %132 {offsets = [0, 0], sizes = [8, 32], strides = [1, 1]} : vector<8x128xf32> to vector<8x32xf32>
    %134 = arith.negf %133 : vector<8x32xf32>
    %135 = math.exp %134 : vector<8x32xf32>
    %cst_40 = arith.constant 1.000000e+00 : f32
    %136 = vector.broadcast %cst_40 : f32 to vector<8x32xf32>
    %137 = arith.addf %136, %135 : vector<8x32xf32>
    %138 = arith.divf %136, %137 : vector<8x32xf32>
    %139 = vector.extract_strided_slice %132 {offsets = [0, 32], sizes = [8, 32], strides = [1, 1]} : vector<8x128xf32> to vector<8x32xf32>
    %140 = arith.negf %139 : vector<8x32xf32>
    %141 = math.exp %140 : vector<8x32xf32>
    %cst_41 = arith.constant 1.000000e+00 : f32
    %142 = vector.broadcast %cst_41 : f32 to vector<8x32xf32>
    %143 = arith.addf %142, %141 : vector<8x32xf32>
    %144 = arith.divf %142, %143 : vector<8x32xf32>
    %145 = vector.extract_strided_slice %132 {offsets = [0, 64], sizes = [8, 32], strides = [1, 1]} : vector<8x128xf32> to vector<8x32xf32>
    %146 = math.tanh %145 : vector<8x32xf32>
    %147 = vector.extract_strided_slice %132 {offsets = [0, 96], sizes = [8, 32], strides = [1, 1]} : vector<8x128xf32> to vector<8x32xf32>
    %148 = arith.negf %147 : vector<8x32xf32>
    %149 = math.exp %148 : vector<8x32xf32>
    %cst_42 = arith.constant 1.000000e+00 : f32
    %150 = vector.broadcast %cst_42 : f32 to vector<8x32xf32>
    %151 = arith.addf %150, %149 : vector<8x32xf32>
    %152 = arith.divf %150, %151 : vector<8x32xf32>
    %153 = arith.mulf %144, %126 : vector<8x32xf32>
    %154 = arith.mulf %138, %146 : vector<8x32xf32>
    %155 = arith.addf %153, %154 : vector<8x32xf32>
    %156 = math.tanh %155 : vector<8x32xf32>
    %157 = arith.mulf %152, %156 : vector<8x32xf32>
    %c32 = arith.constant 32 : index
    %c0_43 = arith.constant 0 : index
    %158 = vector.load %arg9[%c32, %c0_43] : memref<64x32xf32, #tpu.memory_space<vmem>>, vector<8x32xf32>
    tpu.vector_store %arg9[%c32, %c0_43], %157 {strides = array<i32>} : memref<64x32xf32, #tpu.memory_space<vmem>>, vector<8x32xf32>,
    %159 = vector.extract_strided_slice %11 {offsets = [40, 0], sizes = [8, 128], strides = [1, 1]} : vector<64x128xf32> to vector<8x128xf32>
    %cst_44 = arith.constant dense<0.000000e+00> : vector<8x128xf32>
    %160 = tpu.matmul %157, %5, %cst_44 {dimension_numbers = #tpu.dot_dimension_numbers<[1], [0], [0], [1], [0, 0, 1, 1], [], []>} : vector<8x32xf32>, vector<32x128xf32>, vector<8x128xf32> -> vector<8x128xf32>
    %161 = arith.addf %159, %160 : vector<8x128xf32>
    %162 = vector.extract_strided_slice %161 {offsets = [0, 0], sizes = [8, 32], strides = [1, 1]} : vector<8x128xf32> to vector<8x32xf32>
    %163 = arith.negf %162 : vector<8x32xf32>
    %164 = math.exp %163 : vector<8x32xf32>
    %cst_45 = arith.constant 1.000000e+00 : f32
    %165 = vector.broadcast %cst_45 : f32 to vector<8x32xf32>
    %166 = arith.addf %165, %164 : vector<8x32xf32>
    %167 = arith.divf %165, %166 : vector<8x32xf32>
    %168 = vector.extract_strided_slice %161 {offsets = [0, 32], sizes = [8, 32], strides = [1, 1]} : vector<8x128xf32> to vector<8x32xf32>
    %169 = arith.negf %168 : vector<8x32xf32>
    %170 = math.exp %169 : vector<8x32xf32>
    %cst_46 = arith.constant 1.000000e+00 : f32
    %171 = vector.broadcast %cst_46 : f32 to vector<8x32xf32>
    %172 = arith.addf %171, %170 : vector<8x32xf32>
    %173 = arith.divf %171, %172 : vector<8x32xf32>
    %174 = vector.extract_strided_slice %161 {offsets = [0, 64], sizes = [8, 32], strides = [1, 1]} : vector<8x128xf32> to vector<8x32xf32>
    %175 = math.tanh %174 : vector<8x32xf32>
    %176 = vector.extract_strided_slice %161 {offsets = [0, 96], sizes = [8, 32], strides = [1, 1]} : vector<8x128xf32> to vector<8x32xf32>
    %177 = arith.negf %176 : vector<8x32xf32>
    %178 = math.exp %177 : vector<8x32xf32>
    %cst_47 = arith.constant 1.000000e+00 : f32
    %179 = vector.broadcast %cst_47 : f32 to vector<8x32xf32>
    %180 = arith.addf %179, %178 : vector<8x32xf32>
    %181 = arith.divf %179, %180 : vector<8x32xf32>
    %182 = arith.mulf %173, %155 : vector<8x32xf32>
    %183 = arith.mulf %167, %175 : vector<8x32xf32>
    %184 = arith.addf %182, %183 : vector<8x32xf32>
    %185 = math.tanh %184 : vector<8x32xf32>
    %186 = arith.mulf %181, %185 : vector<8x32xf32>
    %c40 = arith.constant 40 : index
    %c0_48 = arith.constant 0 : index
    %187 = vector.load %arg9[%c40, %c0_48] : memref<64x32xf32, #tpu.memory_space<vmem>>, vector<8x32xf32>
    tpu.vector_store %arg9[%c40, %c0_48], %186 {strides = array<i32>} : memref<64x32xf32, #tpu.memory_space<vmem>>, vector<8x32xf32>,
    %188 = vector.extract_strided_slice %11 {offsets = [48, 0], sizes = [8, 128], strides = [1, 1]} : vector<64x128xf32> to vector<8x128xf32>
    %cst_49 = arith.constant dense<0.000000e+00> : vector<8x128xf32>
    %189 = tpu.matmul %186, %5, %cst_49 {dimension_numbers = #tpu.dot_dimension_numbers<[1], [0], [0], [1], [0, 0, 1, 1], [], []>} : vector<8x32xf32>, vector<32x128xf32>, vector<8x128xf32> -> vector<8x128xf32>
    %190 = arith.addf %188, %189 : vector<8x128xf32>
    %191 = vector.extract_strided_slice %190 {offsets = [0, 0], sizes = [8, 32], strides = [1, 1]} : vector<8x128xf32> to vector<8x32xf32>
    %192 = arith.negf %191 : vector<8x32xf32>
    %193 = math.exp %192 : vector<8x32xf32>
    %cst_50 = arith.constant 1.000000e+00 : f32
    %194 = vector.broadcast %cst_50 : f32 to vector<8x32xf32>
    %195 = arith.addf %194, %193 : vector<8x32xf32>
    %196 = arith.divf %194, %195 : vector<8x32xf32>
    %197 = vector.extract_strided_slice %190 {offsets = [0, 32], sizes = [8, 32], strides = [1, 1]} : vector<8x128xf32> to vector<8x32xf32>
    %198 = arith.negf %197 : vector<8x32xf32>
    %199 = math.exp %198 : vector<8x32xf32>
    %cst_51 = arith.constant 1.000000e+00 : f32
    %200 = vector.broadcast %cst_51 : f32 to vector<8x32xf32>
    %201 = arith.addf %200, %199 : vector<8x32xf32>
    %202 = arith.divf %200, %201 : vector<8x32xf32>
    %203 = vector.extract_strided_slice %190 {offsets = [0, 64], sizes = [8, 32], strides = [1, 1]} : vector<8x128xf32> to vector<8x32xf32>
    %204 = math.tanh %203 : vector<8x32xf32>
    %205 = vector.extract_strided_slice %190 {offsets = [0, 96], sizes = [8, 32], strides = [1, 1]} : vector<8x128xf32> to vector<8x32xf32>
    %206 = arith.negf %205 : vector<8x32xf32>
    %207 = math.exp %206 : vector<8x32xf32>
    %cst_52 = arith.constant 1.000000e+00 : f32
    %208 = vector.broadcast %cst_52 : f32 to vector<8x32xf32>
    %209 = arith.addf %208, %207 : vector<8x32xf32>
    %210 = arith.divf %208, %209 : vector<8x32xf32>
    %211 = arith.mulf %202, %184 : vector<8x32xf32>
    %212 = arith.mulf %196, %204 : vector<8x32xf32>
    %213 = arith.addf %211, %212 : vector<8x32xf32>
    %214 = math.tanh %213 : vector<8x32xf32>
    %215 = arith.mulf %210, %214 : vector<8x32xf32>
    %c48 = arith.constant 48 : index
    %c0_53 = arith.constant 0 : index
    %216 = vector.load %arg9[%c48, %c0_53] : memref<64x32xf32, #tpu.memory_space<vmem>>, vector<8x32xf32>
    tpu.vector_store %arg9[%c48, %c0_53], %215 {strides = array<i32>} : memref<64x32xf32, #tpu.memory_space<vmem>>, vector<8x32xf32>,
    %217 = vector.extract_strided_slice %11 {offsets = [56, 0], sizes = [8, 128], strides = [1, 1]} : vector<64x128xf32> to vector<8x128xf32>
    %cst_54 = arith.constant dense<0.000000e+00> : vector<8x128xf32>
    %218 = tpu.matmul %215, %5, %cst_54 {dimension_numbers = #tpu.dot_dimension_numbers<[1], [0], [0], [1], [0, 0, 1, 1], [], []>} : vector<8x32xf32>, vector<32x128xf32>, vector<8x128xf32> -> vector<8x128xf32>
    %219 = arith.addf %217, %218 : vector<8x128xf32>
    %220 = vector.extract_strided_slice %219 {offsets = [0, 0], sizes = [8, 32], strides = [1, 1]} : vector<8x128xf32> to vector<8x32xf32>
    %221 = arith.negf %220 : vector<8x32xf32>
    %222 = math.exp %221 : vector<8x32xf32>
    %cst_55 = arith.constant 1.000000e+00 : f32
    %223 = vector.broadcast %cst_55 : f32 to vector<8x32xf32>
    %224 = arith.addf %223, %222 : vector<8x32xf32>
    %225 = arith.divf %223, %224 : vector<8x32xf32>
    %226 = vector.extract_strided_slice %219 {offsets = [0, 32], sizes = [8, 32], strides = [1, 1]} : vector<8x128xf32> to vector<8x32xf32>
    %227 = arith.negf %226 : vector<8x32xf32>
    %228 = math.exp %227 : vector<8x32xf32>
    %cst_56 = arith.constant 1.000000e+00 : f32
    %229 = vector.broadcast %cst_56 : f32 to vector<8x32xf32>
    %230 = arith.addf %229, %228 : vector<8x32xf32>
    %231 = arith.divf %229, %230 : vector<8x32xf32>
    %232 = vector.extract_strided_slice %219 {offsets = [0, 64], sizes = [8, 32], strides = [1, 1]} : vector<8x128xf32> to vector<8x32xf32>
    %233 = math.tanh %232 : vector<8x32xf32>
    %234 = vector.extract_strided_slice %219 {offsets = [0, 96], sizes = [8, 32], strides = [1, 1]} : vector<8x128xf32> to vector<8x32xf32>
    %235 = arith.negf %234 : vector<8x32xf32>
    %236 = math.exp %235 : vector<8x32xf32>
    %cst_57 = arith.constant 1.000000e+00 : f32
    %237 = vector.broadcast %cst_57 : f32 to vector<8x32xf32>
    %238 = arith.addf %237, %236 : vector<8x32xf32>
    %239 = arith.divf %237, %238 : vector<8x32xf32>
    %240 = arith.mulf %231, %213 : vector<8x32xf32>
    %241 = arith.mulf %225, %233 : vector<8x32xf32>
    %242 = arith.addf %240, %241 : vector<8x32xf32>
    %243 = math.tanh %242 : vector<8x32xf32>
    %244 = arith.mulf %239, %243 : vector<8x32xf32>
    %c56 = arith.constant 56 : index
    %c0_58 = arith.constant 0 : index
    %245 = vector.load %arg9[%c56, %c0_58] : memref<64x32xf32, #tpu.memory_space<vmem>>, vector<8x32xf32>
    tpu.vector_store %arg9[%c56, %c0_58], %244 {strides = array<i32>} : memref<64x32xf32, #tpu.memory_space<vmem>>, vector<8x32xf32>,
    %c1 = arith.constant 1 : index
    %c0_59 = arith.constant 0 : index
    %c0_60 = arith.constant 0 : index
    %246 = vector.load %arg3[%c1, %c0_59, %c0_60] : memref<5x32x128xf32, #tpu.memory_space<vmem>>, vector<1x32x128xf32>
    %247 = vector.shape_cast %246 : vector<1x32x128xf32> to vector<32x128xf32>
    %c1_61 = arith.constant 1 : index
    %c0_62 = arith.constant 0 : index
    %c0_63 = arith.constant 0 : index
    %248 = vector.load %arg4[%c1_61, %c0_62, %c0_63] : memref<5x32x128xf32, #tpu.memory_space<vmem>>, vector<1x32x128xf32>
    %249 = vector.shape_cast %248 : vector<1x32x128xf32> to vector<32x128xf32>
    %c1_64 = arith.constant 1 : index
    %c0_65 = arith.constant 0 : index
    %c0_66 = arith.constant 0 : index
    %250 = vector.load %arg5[%c1_64, %c0_65, %c0_66] : memref<5x1x128xf32, #tpu.memory_space<vmem>>, vector<1x1x128xf32>
    %251 = vector.shape_cast %250 : vector<1x1x128xf32> to vector<1x128xf32>
    %c0_67 = arith.constant 0 : index
    %c0_68 = arith.constant 0 : index
    %252 = vector.load %arg9[%c0_67, %c0_68] : memref<64x32xf32, #tpu.memory_space<vmem>>, vector<64x32xf32>
    %cst_69 = arith.constant dense<0.000000e+00> : vector<64x128xf32>
    %253 = tpu.matmul %252, %247, %cst_69 {dimension_numbers = #tpu.dot_dimension_numbers<[1], [0], [0], [1], [0, 0, 1, 1], [], []>} : vector<64x32xf32>, vector<32x128xf32>, vector<64x128xf32> -> vector<64x128xf32>
    %254 = vector.broadcast %251 : vector<1x128xf32> to vector<64x128xf32>
    %255 = arith.addf %253, %254 : vector<64x128xf32>
    %cst_70 = arith.constant 0.000000e+00 : f32
    %256 = vector.broadcast %cst_70 : f32 to vector<8x32xf32>
    %cst_71 = arith.constant 0.000000e+00 : f32
    %257 = vector.broadcast %cst_71 : f32 to vector<8x32xf32>
    %258 = vector.extract_strided_slice %255 {offsets = [0, 0], sizes = [8, 128], strides = [1, 1]} : vector<64x128xf32> to vector<8x128xf32>
    %cst_72 = arith.constant dense<0.000000e+00> : vector<8x128xf32>
    %259 = tpu.matmul %256, %249, %cst_72 {dimension_numbers = #tpu.dot_dimension_numbers<[1], [0], [0], [1], [0, 0, 1, 1], [], []>} : vector<8x32xf32>, vector<32x128xf32>, vector<8x128xf32> -> vector<8x128xf32>
    %260 = arith.addf %258, %259 : vector<8x128xf32>
    %261 = vector.extract_strided_slice %260 {offsets = [0, 0], sizes = [8, 32], strides = [1, 1]} : vector<8x128xf32> to vector<8x32xf32>
    %262 = arith.negf %261 : vector<8x32xf32>
    %263 = math.exp %262 : vector<8x32xf32>
    %cst_73 = arith.constant 1.000000e+00 : f32
    %264 = vector.broadcast %cst_73 : f32 to vector<8x32xf32>
    %265 = arith.addf %264, %263 : vector<8x32xf32>
    %266 = arith.divf %264, %265 : vector<8x32xf32>
    %267 = vector.extract_strided_slice %260 {offsets = [0, 32], sizes = [8, 32], strides = [1, 1]} : vector<8x128xf32> to vector<8x32xf32>
    %268 = arith.negf %267 : vector<8x32xf32>
    %269 = math.exp %268 : vector<8x32xf32>
    %cst_74 = arith.constant 1.000000e+00 : f32
    %270 = vector.broadcast %cst_74 : f32 to vector<8x32xf32>
    %271 = arith.addf %270, %269 : vector<8x32xf32>
    %272 = arith.divf %270, %271 : vector<8x32xf32>
    %273 = vector.extract_strided_slice %260 {offsets = [0, 64], sizes = [8, 32], strides = [1, 1]} : vector<8x128xf32> to vector<8x32xf32>
    %274 = math.tanh %273 : vector<8x32xf32>
    %275 = vector.extract_strided_slice %260 {offsets = [0, 96], sizes = [8, 32], strides = [1, 1]} : vector<8x128xf32> to vector<8x32xf32>
    %276 = arith.negf %275 : vector<8x32xf32>
    %277 = math.exp %276 : vector<8x32xf32>
    %cst_75 = arith.constant 1.000000e+00 : f32
    %278 = vector.broadcast %cst_75 : f32 to vector<8x32xf32>
    %279 = arith.addf %278, %277 : vector<8x32xf32>
    %280 = arith.divf %278, %279 : vector<8x32xf32>
    %281 = arith.mulf %272, %257 : vector<8x32xf32>
    %282 = arith.mulf %266, %274 : vector<8x32xf32>
    %283 = arith.addf %281, %282 : vector<8x32xf32>
    %284 = math.tanh %283 : vector<8x32xf32>
    %285 = arith.mulf %280, %284 : vector<8x32xf32>
    %c0_76 = arith.constant 0 : index
    %c0_77 = arith.constant 0 : index
    %286 = vector.load %arg9[%c0_76, %c0_77] : memref<64x32xf32, #tpu.memory_space<vmem>>, vector<8x32xf32>
    tpu.vector_store %arg9[%c0_76, %c0_77], %285 {strides = array<i32>} : memref<64x32xf32, #tpu.memory_space<vmem>>, vector<8x32xf32>,
    %287 = vector.extract_strided_slice %255 {offsets = [8, 0], sizes = [8, 128], strides = [1, 1]} : vector<64x128xf32> to vector<8x128xf32>
    %cst_78 = arith.constant dense<0.000000e+00> : vector<8x128xf32>
    %288 = tpu.matmul %285, %249, %cst_78 {dimension_numbers = #tpu.dot_dimension_numbers<[1], [0], [0], [1], [0, 0, 1, 1], [], []>} : vector<8x32xf32>, vector<32x128xf32>, vector<8x128xf32> -> vector<8x128xf32>
    %289 = arith.addf %287, %288 : vector<8x128xf32>
    %290 = vector.extract_strided_slice %289 {offsets = [0, 0], sizes = [8, 32], strides = [1, 1]} : vector<8x128xf32> to vector<8x32xf32>
    %291 = arith.negf %290 : vector<8x32xf32>
    %292 = math.exp %291 : vector<8x32xf32>
    %cst_79 = arith.constant 1.000000e+00 : f32
    %293 = vector.broadcast %cst_79 : f32 to vector<8x32xf32>
    %294 = arith.addf %293, %292 : vector<8x32xf32>
    %295 = arith.divf %293, %294 : vector<8x32xf32>
    %296 = vector.extract_strided_slice %289 {offsets = [0, 32], sizes = [8, 32], strides = [1, 1]} : vector<8x128xf32> to vector<8x32xf32>
    %297 = arith.negf %296 : vector<8x32xf32>
    %298 = math.exp %297 : vector<8x32xf32>
    %cst_80 = arith.constant 1.000000e+00 : f32
    %299 = vector.broadcast %cst_80 : f32 to vector<8x32xf32>
    %300 = arith.addf %299, %298 : vector<8x32xf32>
    %301 = arith.divf %299, %300 : vector<8x32xf32>
    %302 = vector.extract_strided_slice %289 {offsets = [0, 64], sizes = [8, 32], strides = [1, 1]} : vector<8x128xf32> to vector<8x32xf32>
    %303 = math.tanh %302 : vector<8x32xf32>
    %304 = vector.extract_strided_slice %289 {offsets = [0, 96], sizes = [8, 32], strides = [1, 1]} : vector<8x128xf32> to vector<8x32xf32>
    %305 = arith.negf %304 : vector<8x32xf32>
    %306 = math.exp %305 : vector<8x32xf32>
    %cst_81 = arith.constant 1.000000e+00 : f32
    %307 = vector.broadcast %cst_81 : f32 to vector<8x32xf32>
    %308 = arith.addf %307, %306 : vector<8x32xf32>
    %309 = arith.divf %307, %308 : vector<8x32xf32>
    %310 = arith.mulf %301, %283 : vector<8x32xf32>
    %311 = arith.mulf %295, %303 : vector<8x32xf32>
    %312 = arith.addf %310, %311 : vector<8x32xf32>
    %313 = math.tanh %312 : vector<8x32xf32>
    %314 = arith.mulf %309, %313 : vector<8x32xf32>
    %c8_82 = arith.constant 8 : index
    %c0_83 = arith.constant 0 : index
    %315 = vector.load %arg9[%c8_82, %c0_83] : memref<64x32xf32, #tpu.memory_space<vmem>>, vector<8x32xf32>
    tpu.vector_store %arg9[%c8_82, %c0_83], %314 {strides = array<i32>} : memref<64x32xf32, #tpu.memory_space<vmem>>, vector<8x32xf32>,
    %316 = vector.extract_strided_slice %255 {offsets = [16, 0], sizes = [8, 128], strides = [1, 1]} : vector<64x128xf32> to vector<8x128xf32>
    %cst_84 = arith.constant dense<0.000000e+00> : vector<8x128xf32>
    %317 = tpu.matmul %314, %249, %cst_84 {dimension_numbers = #tpu.dot_dimension_numbers<[1], [0], [0], [1], [0, 0, 1, 1], [], []>} : vector<8x32xf32>, vector<32x128xf32>, vector<8x128xf32> -> vector<8x128xf32>
    %318 = arith.addf %316, %317 : vector<8x128xf32>
    %319 = vector.extract_strided_slice %318 {offsets = [0, 0], sizes = [8, 32], strides = [1, 1]} : vector<8x128xf32> to vector<8x32xf32>
    %320 = arith.negf %319 : vector<8x32xf32>
    %321 = math.exp %320 : vector<8x32xf32>
    %cst_85 = arith.constant 1.000000e+00 : f32
    %322 = vector.broadcast %cst_85 : f32 to vector<8x32xf32>
    %323 = arith.addf %322, %321 : vector<8x32xf32>
    %324 = arith.divf %322, %323 : vector<8x32xf32>
    %325 = vector.extract_strided_slice %318 {offsets = [0, 32], sizes = [8, 32], strides = [1, 1]} : vector<8x128xf32> to vector<8x32xf32>
    %326 = arith.negf %325 : vector<8x32xf32>
    %327 = math.exp %326 : vector<8x32xf32>
    %cst_86 = arith.constant 1.000000e+00 : f32
    %328 = vector.broadcast %cst_86 : f32 to vector<8x32xf32>
    %329 = arith.addf %328, %327 : vector<8x32xf32>
    %330 = arith.divf %328, %329 : vector<8x32xf32>
    %331 = vector.extract_strided_slice %318 {offsets = [0, 64], sizes = [8, 32], strides = [1, 1]} : vector<8x128xf32> to vector<8x32xf32>
    %332 = math.tanh %331 : vector<8x32xf32>
    %333 = vector.extract_strided_slice %318 {offsets = [0, 96], sizes = [8, 32], strides = [1, 1]} : vector<8x128xf32> to vector<8x32xf32>
    %334 = arith.negf %333 : vector<8x32xf32>
    %335 = math.exp %334 : vector<8x32xf32>
    %cst_87 = arith.constant 1.000000e+00 : f32
    %336 = vector.broadcast %cst_87 : f32 to vector<8x32xf32>
    %337 = arith.addf %336, %335 : vector<8x32xf32>
    %338 = arith.divf %336, %337 : vector<8x32xf32>
    %339 = arith.mulf %330, %312 : vector<8x32xf32>
    %340 = arith.mulf %324, %332 : vector<8x32xf32>
    %341 = arith.addf %339, %340 : vector<8x32xf32>
    %342 = math.tanh %341 : vector<8x32xf32>
    %343 = arith.mulf %338, %342 : vector<8x32xf32>
    %c16_88 = arith.constant 16 : index
    %c0_89 = arith.constant 0 : index
    %344 = vector.load %arg9[%c16_88, %c0_89] : memref<64x32xf32, #tpu.memory_space<vmem>>, vector<8x32xf32>
    tpu.vector_store %arg9[%c16_88, %c0_89], %343 {strides = array<i32>} : memref<64x32xf32, #tpu.memory_space<vmem>>, vector<8x32xf32>,
    %345 = vector.extract_strided_slice %255 {offsets = [24, 0], sizes = [8, 128], strides = [1, 1]} : vector<64x128xf32> to vector<8x128xf32>
    %cst_90 = arith.constant dense<0.000000e+00> : vector<8x128xf32>
    %346 = tpu.matmul %343, %249, %cst_90 {dimension_numbers = #tpu.dot_dimension_numbers<[1], [0], [0], [1], [0, 0, 1, 1], [], []>} : vector<8x32xf32>, vector<32x128xf32>, vector<8x128xf32> -> vector<8x128xf32>
    %347 = arith.addf %345, %346 : vector<8x128xf32>
    %348 = vector.extract_strided_slice %347 {offsets = [0, 0], sizes = [8, 32], strides = [1, 1]} : vector<8x128xf32> to vector<8x32xf32>
    %349 = arith.negf %348 : vector<8x32xf32>
    %350 = math.exp %349 : vector<8x32xf32>
    %cst_91 = arith.constant 1.000000e+00 : f32
    %351 = vector.broadcast %cst_91 : f32 to vector<8x32xf32>
    %352 = arith.addf %351, %350 : vector<8x32xf32>
    %353 = arith.divf %351, %352 : vector<8x32xf32>
    %354 = vector.extract_strided_slice %347 {offsets = [0, 32], sizes = [8, 32], strides = [1, 1]} : vector<8x128xf32> to vector<8x32xf32>
    %355 = arith.negf %354 : vector<8x32xf32>
    %356 = math.exp %355 : vector<8x32xf32>
    %cst_92 = arith.constant 1.000000e+00 : f32
    %357 = vector.broadcast %cst_92 : f32 to vector<8x32xf32>
    %358 = arith.addf %357, %356 : vector<8x32xf32>
    %359 = arith.divf %357, %358 : vector<8x32xf32>
    %360 = vector.extract_strided_slice %347 {offsets = [0, 64], sizes = [8, 32], strides = [1, 1]} : vector<8x128xf32> to vector<8x32xf32>
    %361 = math.tanh %360 : vector<8x32xf32>
    %362 = vector.extract_strided_slice %347 {offsets = [0, 96], sizes = [8, 32], strides = [1, 1]} : vector<8x128xf32> to vector<8x32xf32>
    %363 = arith.negf %362 : vector<8x32xf32>
    %364 = math.exp %363 : vector<8x32xf32>
    %cst_93 = arith.constant 1.000000e+00 : f32
    %365 = vector.broadcast %cst_93 : f32 to vector<8x32xf32>
    %366 = arith.addf %365, %364 : vector<8x32xf32>
    %367 = arith.divf %365, %366 : vector<8x32xf32>
    %368 = arith.mulf %359, %341 : vector<8x32xf32>
    %369 = arith.mulf %353, %361 : vector<8x32xf32>
    %370 = arith.addf %368, %369 : vector<8x32xf32>
    %371 = math.tanh %370 : vector<8x32xf32>
    %372 = arith.mulf %367, %371 : vector<8x32xf32>
    %c24_94 = arith.constant 24 : index
    %c0_95 = arith.constant 0 : index
    %373 = vector.load %arg9[%c24_94, %c0_95] : memref<64x32xf32, #tpu.memory_space<vmem>>, vector<8x32xf32>
    tpu.vector_store %arg9[%c24_94, %c0_95], %372 {strides = array<i32>} : memref<64x32xf32, #tpu.memory_space<vmem>>, vector<8x32xf32>,
    %374 = vector.extract_strided_slice %255 {offsets = [32, 0], sizes = [8, 128], strides = [1, 1]} : vector<64x128xf32> to vector<8x128xf32>
    %cst_96 = arith.constant dense<0.000000e+00> : vector<8x128xf32>
    %375 = tpu.matmul %372, %249, %cst_96 {dimension_numbers = #tpu.dot_dimension_numbers<[1], [0], [0], [1], [0, 0, 1, 1], [], []>} : vector<8x32xf32>, vector<32x128xf32>, vector<8x128xf32> -> vector<8x128xf32>
    %376 = arith.addf %374, %375 : vector<8x128xf32>
    %377 = vector.extract_strided_slice %376 {offsets = [0, 0], sizes = [8, 32], strides = [1, 1]} : vector<8x128xf32> to vector<8x32xf32>
    %378 = arith.negf %377 : vector<8x32xf32>
    %379 = math.exp %378 : vector<8x32xf32>
    %cst_97 = arith.constant 1.000000e+00 : f32
    %380 = vector.broadcast %cst_97 : f32 to vector<8x32xf32>
    %381 = arith.addf %380, %379 : vector<8x32xf32>
    %382 = arith.divf %380, %381 : vector<8x32xf32>
    %383 = vector.extract_strided_slice %376 {offsets = [0, 32], sizes = [8, 32], strides = [1, 1]} : vector<8x128xf32> to vector<8x32xf32>
    %384 = arith.negf %383 : vector<8x32xf32>
    %385 = math.exp %384 : vector<8x32xf32>
    %cst_98 = arith.constant 1.000000e+00 : f32
    %386 = vector.broadcast %cst_98 : f32 to vector<8x32xf32>
    %387 = arith.addf %386, %385 : vector<8x32xf32>
    %388 = arith.divf %386, %387 : vector<8x32xf32>
    %389 = vector.extract_strided_slice %376 {offsets = [0, 64], sizes = [8, 32], strides = [1, 1]} : vector<8x128xf32> to vector<8x32xf32>
    %390 = math.tanh %389 : vector<8x32xf32>
    %391 = vector.extract_strided_slice %376 {offsets = [0, 96], sizes = [8, 32], strides = [1, 1]} : vector<8x128xf32> to vector<8x32xf32>
    %392 = arith.negf %391 : vector<8x32xf32>
    %393 = math.exp %392 : vector<8x32xf32>
    %cst_99 = arith.constant 1.000000e+00 : f32
    %394 = vector.broadcast %cst_99 : f32 to vector<8x32xf32>
    %395 = arith.addf %394, %393 : vector<8x32xf32>
    %396 = arith.divf %394, %395 : vector<8x32xf32>
    %397 = arith.mulf %388, %370 : vector<8x32xf32>
    %398 = arith.mulf %382, %390 : vector<8x32xf32>
    %399 = arith.addf %397, %398 : vector<8x32xf32>
    %400 = math.tanh %399 : vector<8x32xf32>
    %401 = arith.mulf %396, %400 : vector<8x32xf32>
    %c32_100 = arith.constant 32 : index
    %c0_101 = arith.constant 0 : index
    %402 = vector.load %arg9[%c32_100, %c0_101] : memref<64x32xf32, #tpu.memory_space<vmem>>, vector<8x32xf32>
    tpu.vector_store %arg9[%c32_100, %c0_101], %401 {strides = array<i32>} : memref<64x32xf32, #tpu.memory_space<vmem>>, vector<8x32xf32>,
    %403 = vector.extract_strided_slice %255 {offsets = [40, 0], sizes = [8, 128], strides = [1, 1]} : vector<64x128xf32> to vector<8x128xf32>
    %cst_102 = arith.constant dense<0.000000e+00> : vector<8x128xf32>
    %404 = tpu.matmul %401, %249, %cst_102 {dimension_numbers = #tpu.dot_dimension_numbers<[1], [0], [0], [1], [0, 0, 1, 1], [], []>} : vector<8x32xf32>, vector<32x128xf32>, vector<8x128xf32> -> vector<8x128xf32>
    %405 = arith.addf %403, %404 : vector<8x128xf32>
    %406 = vector.extract_strided_slice %405 {offsets = [0, 0], sizes = [8, 32], strides = [1, 1]} : vector<8x128xf32> to vector<8x32xf32>
    %407 = arith.negf %406 : vector<8x32xf32>
    %408 = math.exp %407 : vector<8x32xf32>
    %cst_103 = arith.constant 1.000000e+00 : f32
    %409 = vector.broadcast %cst_103 : f32 to vector<8x32xf32>
    %410 = arith.addf %409, %408 : vector<8x32xf32>
    %411 = arith.divf %409, %410 : vector<8x32xf32>
    %412 = vector.extract_strided_slice %405 {offsets = [0, 32], sizes = [8, 32], strides = [1, 1]} : vector<8x128xf32> to vector<8x32xf32>
    %413 = arith.negf %412 : vector<8x32xf32>
    %414 = math.exp %413 : vector<8x32xf32>
    %cst_104 = arith.constant 1.000000e+00 : f32
    %415 = vector.broadcast %cst_104 : f32 to vector<8x32xf32>
    %416 = arith.addf %415, %414 : vector<8x32xf32>
    %417 = arith.divf %415, %416 : vector<8x32xf32>
    %418 = vector.extract_strided_slice %405 {offsets = [0, 64], sizes = [8, 32], strides = [1, 1]} : vector<8x128xf32> to vector<8x32xf32>
    %419 = math.tanh %418 : vector<8x32xf32>
    %420 = vector.extract_strided_slice %405 {offsets = [0, 96], sizes = [8, 32], strides = [1, 1]} : vector<8x128xf32> to vector<8x32xf32>
    %421 = arith.negf %420 : vector<8x32xf32>
    %422 = math.exp %421 : vector<8x32xf32>
    %cst_105 = arith.constant 1.000000e+00 : f32
    %423 = vector.broadcast %cst_105 : f32 to vector<8x32xf32>
    %424 = arith.addf %423, %422 : vector<8x32xf32>
    %425 = arith.divf %423, %424 : vector<8x32xf32>
    %426 = arith.mulf %417, %399 : vector<8x32xf32>
    %427 = arith.mulf %411, %419 : vector<8x32xf32>
    %428 = arith.addf %426, %427 : vector<8x32xf32>
    %429 = math.tanh %428 : vector<8x32xf32>
    %430 = arith.mulf %425, %429 : vector<8x32xf32>
    %c40_106 = arith.constant 40 : index
    %c0_107 = arith.constant 0 : index
    %431 = vector.load %arg9[%c40_106, %c0_107] : memref<64x32xf32, #tpu.memory_space<vmem>>, vector<8x32xf32>
    tpu.vector_store %arg9[%c40_106, %c0_107], %430 {strides = array<i32>} : memref<64x32xf32, #tpu.memory_space<vmem>>, vector<8x32xf32>,
    %432 = vector.extract_strided_slice %255 {offsets = [48, 0], sizes = [8, 128], strides = [1, 1]} : vector<64x128xf32> to vector<8x128xf32>
    %cst_108 = arith.constant dense<0.000000e+00> : vector<8x128xf32>
    %433 = tpu.matmul %430, %249, %cst_108 {dimension_numbers = #tpu.dot_dimension_numbers<[1], [0], [0], [1], [0, 0, 1, 1], [], []>} : vector<8x32xf32>, vector<32x128xf32>, vector<8x128xf32> -> vector<8x128xf32>
    %434 = arith.addf %432, %433 : vector<8x128xf32>
    %435 = vector.extract_strided_slice %434 {offsets = [0, 0], sizes = [8, 32], strides = [1, 1]} : vector<8x128xf32> to vector<8x32xf32>
    %436 = arith.negf %435 : vector<8x32xf32>
    %437 = math.exp %436 : vector<8x32xf32>
    %cst_109 = arith.constant 1.000000e+00 : f32
    %438 = vector.broadcast %cst_109 : f32 to vector<8x32xf32>
    %439 = arith.addf %438, %437 : vector<8x32xf32>
    %440 = arith.divf %438, %439 : vector<8x32xf32>
    %441 = vector.extract_strided_slice %434 {offsets = [0, 32], sizes = [8, 32], strides = [1, 1]} : vector<8x128xf32> to vector<8x32xf32>
    %442 = arith.negf %441 : vector<8x32xf32>
    %443 = math.exp %442 : vector<8x32xf32>
    %cst_110 = arith.constant 1.000000e+00 : f32
    %444 = vector.broadcast %cst_110 : f32 to vector<8x32xf32>
    %445 = arith.addf %444, %443 : vector<8x32xf32>
    %446 = arith.divf %444, %445 : vector<8x32xf32>
    %447 = vector.extract_strided_slice %434 {offsets = [0, 64], sizes = [8, 32], strides = [1, 1]} : vector<8x128xf32> to vector<8x32xf32>
    %448 = math.tanh %447 : vector<8x32xf32>
    %449 = vector.extract_strided_slice %434 {offsets = [0, 96], sizes = [8, 32], strides = [1, 1]} : vector<8x128xf32> to vector<8x32xf32>
    %450 = arith.negf %449 : vector<8x32xf32>
    %451 = math.exp %450 : vector<8x32xf32>
    %cst_111 = arith.constant 1.000000e+00 : f32
    %452 = vector.broadcast %cst_111 : f32 to vector<8x32xf32>
    %453 = arith.addf %452, %451 : vector<8x32xf32>
    %454 = arith.divf %452, %453 : vector<8x32xf32>
    %455 = arith.mulf %446, %428 : vector<8x32xf32>
    %456 = arith.mulf %440, %448 : vector<8x32xf32>
    %457 = arith.addf %455, %456 : vector<8x32xf32>
    %458 = math.tanh %457 : vector<8x32xf32>
    %459 = arith.mulf %454, %458 : vector<8x32xf32>
    %c48_112 = arith.constant 48 : index
    %c0_113 = arith.constant 0 : index
    %460 = vector.load %arg9[%c48_112, %c0_113] : memref<64x32xf32, #tpu.memory_space<vmem>>, vector<8x32xf32>
    tpu.vector_store %arg9[%c48_112, %c0_113], %459 {strides = array<i32>} : memref<64x32xf32, #tpu.memory_space<vmem>>, vector<8x32xf32>,
    %461 = vector.extract_strided_slice %255 {offsets = [56, 0], sizes = [8, 128], strides = [1, 1]} : vector<64x128xf32> to vector<8x128xf32>
    %cst_114 = arith.constant dense<0.000000e+00> : vector<8x128xf32>
    %462 = tpu.matmul %459, %249, %cst_114 {dimension_numbers = #tpu.dot_dimension_numbers<[1], [0], [0], [1], [0, 0, 1, 1], [], []>} : vector<8x32xf32>, vector<32x128xf32>, vector<8x128xf32> -> vector<8x128xf32>
    %463 = arith.addf %461, %462 : vector<8x128xf32>
    %464 = vector.extract_strided_slice %463 {offsets = [0, 0], sizes = [8, 32], strides = [1, 1]} : vector<8x128xf32> to vector<8x32xf32>
    %465 = arith.negf %464 : vector<8x32xf32>
    %466 = math.exp %465 : vector<8x32xf32>
    %cst_115 = arith.constant 1.000000e+00 : f32
    %467 = vector.broadcast %cst_115 : f32 to vector<8x32xf32>
    %468 = arith.addf %467, %466 : vector<8x32xf32>
    %469 = arith.divf %467, %468 : vector<8x32xf32>
    %470 = vector.extract_strided_slice %463 {offsets = [0, 32], sizes = [8, 32], strides = [1, 1]} : vector<8x128xf32> to vector<8x32xf32>
    %471 = arith.negf %470 : vector<8x32xf32>
    %472 = math.exp %471 : vector<8x32xf32>
    %cst_116 = arith.constant 1.000000e+00 : f32
    %473 = vector.broadcast %cst_116 : f32 to vector<8x32xf32>
    %474 = arith.addf %473, %472 : vector<8x32xf32>
    %475 = arith.divf %473, %474 : vector<8x32xf32>
    %476 = vector.extract_strided_slice %463 {offsets = [0, 64], sizes = [8, 32], strides = [1, 1]} : vector<8x128xf32> to vector<8x32xf32>
    %477 = math.tanh %476 : vector<8x32xf32>
    %478 = vector.extract_strided_slice %463 {offsets = [0, 96], sizes = [8, 32], strides = [1, 1]} : vector<8x128xf32> to vector<8x32xf32>
    %479 = arith.negf %478 : vector<8x32xf32>
    %480 = math.exp %479 : vector<8x32xf32>
    %cst_117 = arith.constant 1.000000e+00 : f32
    %481 = vector.broadcast %cst_117 : f32 to vector<8x32xf32>
    %482 = arith.addf %481, %480 : vector<8x32xf32>
    %483 = arith.divf %481, %482 : vector<8x32xf32>
    %484 = arith.mulf %475, %457 : vector<8x32xf32>
    %485 = arith.mulf %469, %477 : vector<8x32xf32>
    %486 = arith.addf %484, %485 : vector<8x32xf32>
    %487 = math.tanh %486 : vector<8x32xf32>
    %488 = arith.mulf %483, %487 : vector<8x32xf32>
    %c56_118 = arith.constant 56 : index
    %c0_119 = arith.constant 0 : index
    %489 = vector.load %arg9[%c56_118, %c0_119] : memref<64x32xf32, #tpu.memory_space<vmem>>, vector<8x32xf32>
    tpu.vector_store %arg9[%c56_118, %c0_119], %488 {strides = array<i32>} : memref<64x32xf32, #tpu.memory_space<vmem>>, vector<8x32xf32>,
    %c2 = arith.constant 2 : index
    %c0_120 = arith.constant 0 : index
    %c0_121 = arith.constant 0 : index
    %490 = vector.load %arg3[%c2, %c0_120, %c0_121] : memref<5x32x128xf32, #tpu.memory_space<vmem>>, vector<1x32x128xf32>
    %491 = vector.shape_cast %490 : vector<1x32x128xf32> to vector<32x128xf32>
    %c2_122 = arith.constant 2 : index
    %c0_123 = arith.constant 0 : index
    %c0_124 = arith.constant 0 : index
    %492 = vector.load %arg4[%c2_122, %c0_123, %c0_124] : memref<5x32x128xf32, #tpu.memory_space<vmem>>, vector<1x32x128xf32>
    %493 = vector.shape_cast %492 : vector<1x32x128xf32> to vector<32x128xf32>
    %c2_125 = arith.constant 2 : index
    %c0_126 = arith.constant 0 : index
    %c0_127 = arith.constant 0 : index
    %494 = vector.load %arg5[%c2_125, %c0_126, %c0_127] : memref<5x1x128xf32, #tpu.memory_space<vmem>>, vector<1x1x128xf32>
    %495 = vector.shape_cast %494 : vector<1x1x128xf32> to vector<1x128xf32>
    %c0_128 = arith.constant 0 : index
    %c0_129 = arith.constant 0 : index
    %496 = vector.load %arg9[%c0_128, %c0_129] : memref<64x32xf32, #tpu.memory_space<vmem>>, vector<64x32xf32>
    %cst_130 = arith.constant dense<0.000000e+00> : vector<64x128xf32>
    %497 = tpu.matmul %496, %491, %cst_130 {dimension_numbers = #tpu.dot_dimension_numbers<[1], [0], [0], [1], [0, 0, 1, 1], [], []>} : vector<64x32xf32>, vector<32x128xf32>, vector<64x128xf32> -> vector<64x128xf32>
    %498 = vector.broadcast %495 : vector<1x128xf32> to vector<64x128xf32>
    %499 = arith.addf %497, %498 : vector<64x128xf32>
    %cst_131 = arith.constant 0.000000e+00 : f32
    %500 = vector.broadcast %cst_131 : f32 to vector<8x32xf32>
    %cst_132 = arith.constant 0.000000e+00 : f32
    %501 = vector.broadcast %cst_132 : f32 to vector<8x32xf32>
    %502 = vector.extract_strided_slice %499 {offsets = [0, 0], sizes = [8, 128], strides = [1, 1]} : vector<64x128xf32> to vector<8x128xf32>
    %cst_133 = arith.constant dense<0.000000e+00> : vector<8x128xf32>
    %503 = tpu.matmul %500, %493, %cst_133 {dimension_numbers = #tpu.dot_dimension_numbers<[1], [0], [0], [1], [0, 0, 1, 1], [], []>} : vector<8x32xf32>, vector<32x128xf32>, vector<8x128xf32> -> vector<8x128xf32>
    %504 = arith.addf %502, %503 : vector<8x128xf32>
    %505 = vector.extract_strided_slice %504 {offsets = [0, 0], sizes = [8, 32], strides = [1, 1]} : vector<8x128xf32> to vector<8x32xf32>
    %506 = arith.negf %505 : vector<8x32xf32>
    %507 = math.exp %506 : vector<8x32xf32>
    %cst_134 = arith.constant 1.000000e+00 : f32
    %508 = vector.broadcast %cst_134 : f32 to vector<8x32xf32>
    %509 = arith.addf %508, %507 : vector<8x32xf32>
    %510 = arith.divf %508, %509 : vector<8x32xf32>
    %511 = vector.extract_strided_slice %504 {offsets = [0, 32], sizes = [8, 32], strides = [1, 1]} : vector<8x128xf32> to vector<8x32xf32>
    %512 = arith.negf %511 : vector<8x32xf32>
    %513 = math.exp %512 : vector<8x32xf32>
    %cst_135 = arith.constant 1.000000e+00 : f32
    %514 = vector.broadcast %cst_135 : f32 to vector<8x32xf32>
    %515 = arith.addf %514, %513 : vector<8x32xf32>
    %516 = arith.divf %514, %515 : vector<8x32xf32>
    %517 = vector.extract_strided_slice %504 {offsets = [0, 64], sizes = [8, 32], strides = [1, 1]} : vector<8x128xf32> to vector<8x32xf32>
    %518 = math.tanh %517 : vector<8x32xf32>
    %519 = vector.extract_strided_slice %504 {offsets = [0, 96], sizes = [8, 32], strides = [1, 1]} : vector<8x128xf32> to vector<8x32xf32>
    %520 = arith.negf %519 : vector<8x32xf32>
    %521 = math.exp %520 : vector<8x32xf32>
    %cst_136 = arith.constant 1.000000e+00 : f32
    %522 = vector.broadcast %cst_136 : f32 to vector<8x32xf32>
    %523 = arith.addf %522, %521 : vector<8x32xf32>
    %524 = arith.divf %522, %523 : vector<8x32xf32>
    %525 = arith.mulf %516, %501 : vector<8x32xf32>
    %526 = arith.mulf %510, %518 : vector<8x32xf32>
    %527 = arith.addf %525, %526 : vector<8x32xf32>
    %528 = math.tanh %527 : vector<8x32xf32>
    %529 = arith.mulf %524, %528 : vector<8x32xf32>
    %c0_137 = arith.constant 0 : index
    %c0_138 = arith.constant 0 : index
    %530 = vector.load %arg9[%c0_137, %c0_138] : memref<64x32xf32, #tpu.memory_space<vmem>>, vector<8x32xf32>
    tpu.vector_store %arg9[%c0_137, %c0_138], %529 {strides = array<i32>} : memref<64x32xf32, #tpu.memory_space<vmem>>, vector<8x32xf32>,
    %531 = vector.extract_strided_slice %499 {offsets = [8, 0], sizes = [8, 128], strides = [1, 1]} : vector<64x128xf32> to vector<8x128xf32>
    %cst_139 = arith.constant dense<0.000000e+00> : vector<8x128xf32>
    %532 = tpu.matmul %529, %493, %cst_139 {dimension_numbers = #tpu.dot_dimension_numbers<[1], [0], [0], [1], [0, 0, 1, 1], [], []>} : vector<8x32xf32>, vector<32x128xf32>, vector<8x128xf32> -> vector<8x128xf32>
    %533 = arith.addf %531, %532 : vector<8x128xf32>
    %534 = vector.extract_strided_slice %533 {offsets = [0, 0], sizes = [8, 32], strides = [1, 1]} : vector<8x128xf32> to vector<8x32xf32>
    %535 = arith.negf %534 : vector<8x32xf32>
    %536 = math.exp %535 : vector<8x32xf32>
    %cst_140 = arith.constant 1.000000e+00 : f32
    %537 = vector.broadcast %cst_140 : f32 to vector<8x32xf32>
    %538 = arith.addf %537, %536 : vector<8x32xf32>
    %539 = arith.divf %537, %538 : vector<8x32xf32>
    %540 = vector.extract_strided_slice %533 {offsets = [0, 32], sizes = [8, 32], strides = [1, 1]} : vector<8x128xf32> to vector<8x32xf32>
    %541 = arith.negf %540 : vector<8x32xf32>
    %542 = math.exp %541 : vector<8x32xf32>
    %cst_141 = arith.constant 1.000000e+00 : f32
    %543 = vector.broadcast %cst_141 : f32 to vector<8x32xf32>
    %544 = arith.addf %543, %542 : vector<8x32xf32>
    %545 = arith.divf %543, %544 : vector<8x32xf32>
    %546 = vector.extract_strided_slice %533 {offsets = [0, 64], sizes = [8, 32], strides = [1, 1]} : vector<8x128xf32> to vector<8x32xf32>
    %547 = math.tanh %546 : vector<8x32xf32>
    %548 = vector.extract_strided_slice %533 {offsets = [0, 96], sizes = [8, 32], strides = [1, 1]} : vector<8x128xf32> to vector<8x32xf32>
    %549 = arith.negf %548 : vector<8x32xf32>
    %550 = math.exp %549 : vector<8x32xf32>
    %cst_142 = arith.constant 1.000000e+00 : f32
    %551 = vector.broadcast %cst_142 : f32 to vector<8x32xf32>
    %552 = arith.addf %551, %550 : vector<8x32xf32>
    %553 = arith.divf %551, %552 : vector<8x32xf32>
    %554 = arith.mulf %545, %527 : vector<8x32xf32>
    %555 = arith.mulf %539, %547 : vector<8x32xf32>
    %556 = arith.addf %554, %555 : vector<8x32xf32>
    %557 = math.tanh %556 : vector<8x32xf32>
    %558 = arith.mulf %553, %557 : vector<8x32xf32>
    %c8_143 = arith.constant 8 : index
    %c0_144 = arith.constant 0 : index
    %559 = vector.load %arg9[%c8_143, %c0_144] : memref<64x32xf32, #tpu.memory_space<vmem>>, vector<8x32xf32>
    tpu.vector_store %arg9[%c8_143, %c0_144], %558 {strides = array<i32>} : memref<64x32xf32, #tpu.memory_space<vmem>>, vector<8x32xf32>,
    %560 = vector.extract_strided_slice %499 {offsets = [16, 0], sizes = [8, 128], strides = [1, 1]} : vector<64x128xf32> to vector<8x128xf32>
    %cst_145 = arith.constant dense<0.000000e+00> : vector<8x128xf32>
    %561 = tpu.matmul %558, %493, %cst_145 {dimension_numbers = #tpu.dot_dimension_numbers<[1], [0], [0], [1], [0, 0, 1, 1], [], []>} : vector<8x32xf32>, vector<32x128xf32>, vector<8x128xf32> -> vector<8x128xf32>
    %562 = arith.addf %560, %561 : vector<8x128xf32>
    %563 = vector.extract_strided_slice %562 {offsets = [0, 0], sizes = [8, 32], strides = [1, 1]} : vector<8x128xf32> to vector<8x32xf32>
    %564 = arith.negf %563 : vector<8x32xf32>
    %565 = math.exp %564 : vector<8x32xf32>
    %cst_146 = arith.constant 1.000000e+00 : f32
    %566 = vector.broadcast %cst_146 : f32 to vector<8x32xf32>
    %567 = arith.addf %566, %565 : vector<8x32xf32>
    %568 = arith.divf %566, %567 : vector<8x32xf32>
    %569 = vector.extract_strided_slice %562 {offsets = [0, 32], sizes = [8, 32], strides = [1, 1]} : vector<8x128xf32> to vector<8x32xf32>
    %570 = arith.negf %569 : vector<8x32xf32>
    %571 = math.exp %570 : vector<8x32xf32>
    %cst_147 = arith.constant 1.000000e+00 : f32
    %572 = vector.broadcast %cst_147 : f32 to vector<8x32xf32>
    %573 = arith.addf %572, %571 : vector<8x32xf32>
    %574 = arith.divf %572, %573 : vector<8x32xf32>
    %575 = vector.extract_strided_slice %562 {offsets = [0, 64], sizes = [8, 32], strides = [1, 1]} : vector<8x128xf32> to vector<8x32xf32>
    %576 = math.tanh %575 : vector<8x32xf32>
    %577 = vector.extract_strided_slice %562 {offsets = [0, 96], sizes = [8, 32], strides = [1, 1]} : vector<8x128xf32> to vector<8x32xf32>
    %578 = arith.negf %577 : vector<8x32xf32>
    %579 = math.exp %578 : vector<8x32xf32>
    %cst_148 = arith.constant 1.000000e+00 : f32
    %580 = vector.broadcast %cst_148 : f32 to vector<8x32xf32>
    %581 = arith.addf %580, %579 : vector<8x32xf32>
    %582 = arith.divf %580, %581 : vector<8x32xf32>
    %583 = arith.mulf %574, %556 : vector<8x32xf32>
    %584 = arith.mulf %568, %576 : vector<8x32xf32>
    %585 = arith.addf %583, %584 : vector<8x32xf32>
    %586 = math.tanh %585 : vector<8x32xf32>
    %587 = arith.mulf %582, %586 : vector<8x32xf32>
    %c16_149 = arith.constant 16 : index
    %c0_150 = arith.constant 0 : index
    %588 = vector.load %arg9[%c16_149, %c0_150] : memref<64x32xf32, #tpu.memory_space<vmem>>, vector<8x32xf32>
    tpu.vector_store %arg9[%c16_149, %c0_150], %587 {strides = array<i32>} : memref<64x32xf32, #tpu.memory_space<vmem>>, vector<8x32xf32>,
    %589 = vector.extract_strided_slice %499 {offsets = [24, 0], sizes = [8, 128], strides = [1, 1]} : vector<64x128xf32> to vector<8x128xf32>
    %cst_151 = arith.constant dense<0.000000e+00> : vector<8x128xf32>
    %590 = tpu.matmul %587, %493, %cst_151 {dimension_numbers = #tpu.dot_dimension_numbers<[1], [0], [0], [1], [0, 0, 1, 1], [], []>} : vector<8x32xf32>, vector<32x128xf32>, vector<8x128xf32> -> vector<8x128xf32>
    %591 = arith.addf %589, %590 : vector<8x128xf32>
    %592 = vector.extract_strided_slice %591 {offsets = [0, 0], sizes = [8, 32], strides = [1, 1]} : vector<8x128xf32> to vector<8x32xf32>
    %593 = arith.negf %592 : vector<8x32xf32>
    %594 = math.exp %593 : vector<8x32xf32>
    %cst_152 = arith.constant 1.000000e+00 : f32
    %595 = vector.broadcast %cst_152 : f32 to vector<8x32xf32>
    %596 = arith.addf %595, %594 : vector<8x32xf32>
    %597 = arith.divf %595, %596 : vector<8x32xf32>
    %598 = vector.extract_strided_slice %591 {offsets = [0, 32], sizes = [8, 32], strides = [1, 1]} : vector<8x128xf32> to vector<8x32xf32>
    %599 = arith.negf %598 : vector<8x32xf32>
    %600 = math.exp %599 : vector<8x32xf32>
    %cst_153 = arith.constant 1.000000e+00 : f32
    %601 = vector.broadcast %cst_153 : f32 to vector<8x32xf32>
    %602 = arith.addf %601, %600 : vector<8x32xf32>
    %603 = arith.divf %601, %602 : vector<8x32xf32>
    %604 = vector.extract_strided_slice %591 {offsets = [0, 64], sizes = [8, 32], strides = [1, 1]} : vector<8x128xf32> to vector<8x32xf32>
    %605 = math.tanh %604 : vector<8x32xf32>
    %606 = vector.extract_strided_slice %591 {offsets = [0, 96], sizes = [8, 32], strides = [1, 1]} : vector<8x128xf32> to vector<8x32xf32>
    %607 = arith.negf %606 : vector<8x32xf32>
    %608 = math.exp %607 : vector<8x32xf32>
    %cst_154 = arith.constant 1.000000e+00 : f32
    %609 = vector.broadcast %cst_154 : f32 to vector<8x32xf32>
    %610 = arith.addf %609, %608 : vector<8x32xf32>
    %611 = arith.divf %609, %610 : vector<8x32xf32>
    %612 = arith.mulf %603, %585 : vector<8x32xf32>
    %613 = arith.mulf %597, %605 : vector<8x32xf32>
    %614 = arith.addf %612, %613 : vector<8x32xf32>
    %615 = math.tanh %614 : vector<8x32xf32>
    %616 = arith.mulf %611, %615 : vector<8x32xf32>
    %c24_155 = arith.constant 24 : index
    %c0_156 = arith.constant 0 : index
    %617 = vector.load %arg9[%c24_155, %c0_156] : memref<64x32xf32, #tpu.memory_space<vmem>>, vector<8x32xf32>
    tpu.vector_store %arg9[%c24_155, %c0_156], %616 {strides = array<i32>} : memref<64x32xf32, #tpu.memory_space<vmem>>, vector<8x32xf32>,
    %618 = vector.extract_strided_slice %499 {offsets = [32, 0], sizes = [8, 128], strides = [1, 1]} : vector<64x128xf32> to vector<8x128xf32>
    %cst_157 = arith.constant dense<0.000000e+00> : vector<8x128xf32>
    %619 = tpu.matmul %616, %493, %cst_157 {dimension_numbers = #tpu.dot_dimension_numbers<[1], [0], [0], [1], [0, 0, 1, 1], [], []>} : vector<8x32xf32>, vector<32x128xf32>, vector<8x128xf32> -> vector<8x128xf32>
    %620 = arith.addf %618, %619 : vector<8x128xf32>
    %621 = vector.extract_strided_slice %620 {offsets = [0, 0], sizes = [8, 32], strides = [1, 1]} : vector<8x128xf32> to vector<8x32xf32>
    %622 = arith.negf %621 : vector<8x32xf32>
    %623 = math.exp %622 : vector<8x32xf32>
    %cst_158 = arith.constant 1.000000e+00 : f32
    %624 = vector.broadcast %cst_158 : f32 to vector<8x32xf32>
    %625 = arith.addf %624, %623 : vector<8x32xf32>
    %626 = arith.divf %624, %625 : vector<8x32xf32>
    %627 = vector.extract_strided_slice %620 {offsets = [0, 32], sizes = [8, 32], strides = [1, 1]} : vector<8x128xf32> to vector<8x32xf32>
    %628 = arith.negf %627 : vector<8x32xf32>
    %629 = math.exp %628 : vector<8x32xf32>
    %cst_159 = arith.constant 1.000000e+00 : f32
    %630 = vector.broadcast %cst_159 : f32 to vector<8x32xf32>
    %631 = arith.addf %630, %629 : vector<8x32xf32>
    %632 = arith.divf %630, %631 : vector<8x32xf32>
    %633 = vector.extract_strided_slice %620 {offsets = [0, 64], sizes = [8, 32], strides = [1, 1]} : vector<8x128xf32> to vector<8x32xf32>
    %634 = math.tanh %633 : vector<8x32xf32>
    %635 = vector.extract_strided_slice %620 {offsets = [0, 96], sizes = [8, 32], strides = [1, 1]} : vector<8x128xf32> to vector<8x32xf32>
    %636 = arith.negf %635 : vector<8x32xf32>
    %637 = math.exp %636 : vector<8x32xf32>
    %cst_160 = arith.constant 1.000000e+00 : f32
    %638 = vector.broadcast %cst_160 : f32 to vector<8x32xf32>
    %639 = arith.addf %638, %637 : vector<8x32xf32>
    %640 = arith.divf %638, %639 : vector<8x32xf32>
    %641 = arith.mulf %632, %614 : vector<8x32xf32>
    %642 = arith.mulf %626, %634 : vector<8x32xf32>
    %643 = arith.addf %641, %642 : vector<8x32xf32>
    %644 = math.tanh %643 : vector<8x32xf32>
    %645 = arith.mulf %640, %644 : vector<8x32xf32>
    %c32_161 = arith.constant 32 : index
    %c0_162 = arith.constant 0 : index
    %646 = vector.load %arg9[%c32_161, %c0_162] : memref<64x32xf32, #tpu.memory_space<vmem>>, vector<8x32xf32>
    tpu.vector_store %arg9[%c32_161, %c0_162], %645 {strides = array<i32>} : memref<64x32xf32, #tpu.memory_space<vmem>>, vector<8x32xf32>,
    %647 = vector.extract_strided_slice %499 {offsets = [40, 0], sizes = [8, 128], strides = [1, 1]} : vector<64x128xf32> to vector<8x128xf32>
    %cst_163 = arith.constant dense<0.000000e+00> : vector<8x128xf32>
    %648 = tpu.matmul %645, %493, %cst_163 {dimension_numbers = #tpu.dot_dimension_numbers<[1], [0], [0], [1], [0, 0, 1, 1], [], []>} : vector<8x32xf32>, vector<32x128xf32>, vector<8x128xf32> -> vector<8x128xf32>
    %649 = arith.addf %647, %648 : vector<8x128xf32>
    %650 = vector.extract_strided_slice %649 {offsets = [0, 0], sizes = [8, 32], strides = [1, 1]} : vector<8x128xf32> to vector<8x32xf32>
    %651 = arith.negf %650 : vector<8x32xf32>
    %652 = math.exp %651 : vector<8x32xf32>
    %cst_164 = arith.constant 1.000000e+00 : f32
    %653 = vector.broadcast %cst_164 : f32 to vector<8x32xf32>
    %654 = arith.addf %653, %652 : vector<8x32xf32>
    %655 = arith.divf %653, %654 : vector<8x32xf32>
    %656 = vector.extract_strided_slice %649 {offsets = [0, 32], sizes = [8, 32], strides = [1, 1]} : vector<8x128xf32> to vector<8x32xf32>
    %657 = arith.negf %656 : vector<8x32xf32>
    %658 = math.exp %657 : vector<8x32xf32>
    %cst_165 = arith.constant 1.000000e+00 : f32
    %659 = vector.broadcast %cst_165 : f32 to vector<8x32xf32>
    %660 = arith.addf %659, %658 : vector<8x32xf32>
    %661 = arith.divf %659, %660 : vector<8x32xf32>
    %662 = vector.extract_strided_slice %649 {offsets = [0, 64], sizes = [8, 32], strides = [1, 1]} : vector<8x128xf32> to vector<8x32xf32>
    %663 = math.tanh %662 : vector<8x32xf32>
    %664 = vector.extract_strided_slice %649 {offsets = [0, 96], sizes = [8, 32], strides = [1, 1]} : vector<8x128xf32> to vector<8x32xf32>
    %665 = arith.negf %664 : vector<8x32xf32>
    %666 = math.exp %665 : vector<8x32xf32>
    %cst_166 = arith.constant 1.000000e+00 : f32
    %667 = vector.broadcast %cst_166 : f32 to vector<8x32xf32>
    %668 = arith.addf %667, %666 : vector<8x32xf32>
    %669 = arith.divf %667, %668 : vector<8x32xf32>
    %670 = arith.mulf %661, %643 : vector<8x32xf32>
    %671 = arith.mulf %655, %663 : vector<8x32xf32>
    %672 = arith.addf %670, %671 : vector<8x32xf32>
    %673 = math.tanh %672 : vector<8x32xf32>
    %674 = arith.mulf %669, %673 : vector<8x32xf32>
    %c40_167 = arith.constant 40 : index
    %c0_168 = arith.constant 0 : index
    %675 = vector.load %arg9[%c40_167, %c0_168] : memref<64x32xf32, #tpu.memory_space<vmem>>, vector<8x32xf32>
    tpu.vector_store %arg9[%c40_167, %c0_168], %674 {strides = array<i32>} : memref<64x32xf32, #tpu.memory_space<vmem>>, vector<8x32xf32>,
    %676 = vector.extract_strided_slice %499 {offsets = [48, 0], sizes = [8, 128], strides = [1, 1]} : vector<64x128xf32> to vector<8x128xf32>
    %cst_169 = arith.constant dense<0.000000e+00> : vector<8x128xf32>
    %677 = tpu.matmul %674, %493, %cst_169 {dimension_numbers = #tpu.dot_dimension_numbers<[1], [0], [0], [1], [0, 0, 1, 1], [], []>} : vector<8x32xf32>, vector<32x128xf32>, vector<8x128xf32> -> vector<8x128xf32>
    %678 = arith.addf %676, %677 : vector<8x128xf32>
    %679 = vector.extract_strided_slice %678 {offsets = [0, 0], sizes = [8, 32], strides = [1, 1]} : vector<8x128xf32> to vector<8x32xf32>
    %680 = arith.negf %679 : vector<8x32xf32>
    %681 = math.exp %680 : vector<8x32xf32>
    %cst_170 = arith.constant 1.000000e+00 : f32
    %682 = vector.broadcast %cst_170 : f32 to vector<8x32xf32>
    %683 = arith.addf %682, %681 : vector<8x32xf32>
    %684 = arith.divf %682, %683 : vector<8x32xf32>
    %685 = vector.extract_strided_slice %678 {offsets = [0, 32], sizes = [8, 32], strides = [1, 1]} : vector<8x128xf32> to vector<8x32xf32>
    %686 = arith.negf %685 : vector<8x32xf32>
    %687 = math.exp %686 : vector<8x32xf32>
    %cst_171 = arith.constant 1.000000e+00 : f32
    %688 = vector.broadcast %cst_171 : f32 to vector<8x32xf32>
    %689 = arith.addf %688, %687 : vector<8x32xf32>
    %690 = arith.divf %688, %689 : vector<8x32xf32>
    %691 = vector.extract_strided_slice %678 {offsets = [0, 64], sizes = [8, 32], strides = [1, 1]} : vector<8x128xf32> to vector<8x32xf32>
    %692 = math.tanh %691 : vector<8x32xf32>
    %693 = vector.extract_strided_slice %678 {offsets = [0, 96], sizes = [8, 32], strides = [1, 1]} : vector<8x128xf32> to vector<8x32xf32>
    %694 = arith.negf %693 : vector<8x32xf32>
    %695 = math.exp %694 : vector<8x32xf32>
    %cst_172 = arith.constant 1.000000e+00 : f32
    %696 = vector.broadcast %cst_172 : f32 to vector<8x32xf32>
    %697 = arith.addf %696, %695 : vector<8x32xf32>
    %698 = arith.divf %696, %697 : vector<8x32xf32>
    %699 = arith.mulf %690, %672 : vector<8x32xf32>
    %700 = arith.mulf %684, %692 : vector<8x32xf32>
    %701 = arith.addf %699, %700 : vector<8x32xf32>
    %702 = math.tanh %701 : vector<8x32xf32>
    %703 = arith.mulf %698, %702 : vector<8x32xf32>
    %c48_173 = arith.constant 48 : index
    %c0_174 = arith.constant 0 : index
    %704 = vector.load %arg9[%c48_173, %c0_174] : memref<64x32xf32, #tpu.memory_space<vmem>>, vector<8x32xf32>
    tpu.vector_store %arg9[%c48_173, %c0_174], %703 {strides = array<i32>} : memref<64x32xf32, #tpu.memory_space<vmem>>, vector<8x32xf32>,
    %705 = vector.extract_strided_slice %499 {offsets = [56, 0], sizes = [8, 128], strides = [1, 1]} : vector<64x128xf32> to vector<8x128xf32>
    %cst_175 = arith.constant dense<0.000000e+00> : vector<8x128xf32>
    %706 = tpu.matmul %703, %493, %cst_175 {dimension_numbers = #tpu.dot_dimension_numbers<[1], [0], [0], [1], [0, 0, 1, 1], [], []>} : vector<8x32xf32>, vector<32x128xf32>, vector<8x128xf32> -> vector<8x128xf32>
    %707 = arith.addf %705, %706 : vector<8x128xf32>
    %708 = vector.extract_strided_slice %707 {offsets = [0, 0], sizes = [8, 32], strides = [1, 1]} : vector<8x128xf32> to vector<8x32xf32>
    %709 = arith.negf %708 : vector<8x32xf32>
    %710 = math.exp %709 : vector<8x32xf32>
    %cst_176 = arith.constant 1.000000e+00 : f32
    %711 = vector.broadcast %cst_176 : f32 to vector<8x32xf32>
    %712 = arith.addf %711, %710 : vector<8x32xf32>
    %713 = arith.divf %711, %712 : vector<8x32xf32>
    %714 = vector.extract_strided_slice %707 {offsets = [0, 32], sizes = [8, 32], strides = [1, 1]} : vector<8x128xf32> to vector<8x32xf32>
    %715 = arith.negf %714 : vector<8x32xf32>
    %716 = math.exp %715 : vector<8x32xf32>
    %cst_177 = arith.constant 1.000000e+00 : f32
    %717 = vector.broadcast %cst_177 : f32 to vector<8x32xf32>
    %718 = arith.addf %717, %716 : vector<8x32xf32>
    %719 = arith.divf %717, %718 : vector<8x32xf32>
    %720 = vector.extract_strided_slice %707 {offsets = [0, 64], sizes = [8, 32], strides = [1, 1]} : vector<8x128xf32> to vector<8x32xf32>
    %721 = math.tanh %720 : vector<8x32xf32>
    %722 = vector.extract_strided_slice %707 {offsets = [0, 96], sizes = [8, 32], strides = [1, 1]} : vector<8x128xf32> to vector<8x32xf32>
    %723 = arith.negf %722 : vector<8x32xf32>
    %724 = math.exp %723 : vector<8x32xf32>
    %cst_178 = arith.constant 1.000000e+00 : f32
    %725 = vector.broadcast %cst_178 : f32 to vector<8x32xf32>
    %726 = arith.addf %725, %724 : vector<8x32xf32>
    %727 = arith.divf %725, %726 : vector<8x32xf32>
    %728 = arith.mulf %719, %701 : vector<8x32xf32>
    %729 = arith.mulf %713, %721 : vector<8x32xf32>
    %730 = arith.addf %728, %729 : vector<8x32xf32>
    %731 = math.tanh %730 : vector<8x32xf32>
    %732 = arith.mulf %727, %731 : vector<8x32xf32>
    %c56_179 = arith.constant 56 : index
    %c0_180 = arith.constant 0 : index
    %733 = vector.load %arg9[%c56_179, %c0_180] : memref<64x32xf32, #tpu.memory_space<vmem>>, vector<8x32xf32>
    tpu.vector_store %arg9[%c56_179, %c0_180], %732 {strides = array<i32>} : memref<64x32xf32, #tpu.memory_space<vmem>>, vector<8x32xf32>,
    %c3 = arith.constant 3 : index
    %c0_181 = arith.constant 0 : index
    %c0_182 = arith.constant 0 : index
    %734 = vector.load %arg3[%c3, %c0_181, %c0_182] : memref<5x32x128xf32, #tpu.memory_space<vmem>>, vector<1x32x128xf32>
    %735 = vector.shape_cast %734 : vector<1x32x128xf32> to vector<32x128xf32>
    %c3_183 = arith.constant 3 : index
    %c0_184 = arith.constant 0 : index
    %c0_185 = arith.constant 0 : index
    %736 = vector.load %arg4[%c3_183, %c0_184, %c0_185] : memref<5x32x128xf32, #tpu.memory_space<vmem>>, vector<1x32x128xf32>
    %737 = vector.shape_cast %736 : vector<1x32x128xf32> to vector<32x128xf32>
    %c3_186 = arith.constant 3 : index
    %c0_187 = arith.constant 0 : index
    %c0_188 = arith.constant 0 : index
    %738 = vector.load %arg5[%c3_186, %c0_187, %c0_188] : memref<5x1x128xf32, #tpu.memory_space<vmem>>, vector<1x1x128xf32>
    %739 = vector.shape_cast %738 : vector<1x1x128xf32> to vector<1x128xf32>
    %c0_189 = arith.constant 0 : index
    %c0_190 = arith.constant 0 : index
    %740 = vector.load %arg9[%c0_189, %c0_190] : memref<64x32xf32, #tpu.memory_space<vmem>>, vector<64x32xf32>
    %cst_191 = arith.constant dense<0.000000e+00> : vector<64x128xf32>
    %741 = tpu.matmul %740, %735, %cst_191 {dimension_numbers = #tpu.dot_dimension_numbers<[1], [0], [0], [1], [0, 0, 1, 1], [], []>} : vector<64x32xf32>, vector<32x128xf32>, vector<64x128xf32> -> vector<64x128xf32>
    %742 = vector.broadcast %739 : vector<1x128xf32> to vector<64x128xf32>
    %743 = arith.addf %741, %742 : vector<64x128xf32>
    %cst_192 = arith.constant 0.000000e+00 : f32
    %744 = vector.broadcast %cst_192 : f32 to vector<8x32xf32>
    %cst_193 = arith.constant 0.000000e+00 : f32
    %745 = vector.broadcast %cst_193 : f32 to vector<8x32xf32>
    %746 = vector.extract_strided_slice %743 {offsets = [0, 0], sizes = [8, 128], strides = [1, 1]} : vector<64x128xf32> to vector<8x128xf32>
    %cst_194 = arith.constant dense<0.000000e+00> : vector<8x128xf32>
    %747 = tpu.matmul %744, %737, %cst_194 {dimension_numbers = #tpu.dot_dimension_numbers<[1], [0], [0], [1], [0, 0, 1, 1], [], []>} : vector<8x32xf32>, vector<32x128xf32>, vector<8x128xf32> -> vector<8x128xf32>
    %748 = arith.addf %746, %747 : vector<8x128xf32>
    %749 = vector.extract_strided_slice %748 {offsets = [0, 0], sizes = [8, 32], strides = [1, 1]} : vector<8x128xf32> to vector<8x32xf32>
    %750 = arith.negf %749 : vector<8x32xf32>
    %751 = math.exp %750 : vector<8x32xf32>
    %cst_195 = arith.constant 1.000000e+00 : f32
    %752 = vector.broadcast %cst_195 : f32 to vector<8x32xf32>
    %753 = arith.addf %752, %751 : vector<8x32xf32>
    %754 = arith.divf %752, %753 : vector<8x32xf32>
    %755 = vector.extract_strided_slice %748 {offsets = [0, 32], sizes = [8, 32], strides = [1, 1]} : vector<8x128xf32> to vector<8x32xf32>
    %756 = arith.negf %755 : vector<8x32xf32>
    %757 = math.exp %756 : vector<8x32xf32>
    %cst_196 = arith.constant 1.000000e+00 : f32
    %758 = vector.broadcast %cst_196 : f32 to vector<8x32xf32>
    %759 = arith.addf %758, %757 : vector<8x32xf32>
    %760 = arith.divf %758, %759 : vector<8x32xf32>
    %761 = vector.extract_strided_slice %748 {offsets = [0, 64], sizes = [8, 32], strides = [1, 1]} : vector<8x128xf32> to vector<8x32xf32>
    %762 = math.tanh %761 : vector<8x32xf32>
    %763 = vector.extract_strided_slice %748 {offsets = [0, 96], sizes = [8, 32], strides = [1, 1]} : vector<8x128xf32> to vector<8x32xf32>
    %764 = arith.negf %763 : vector<8x32xf32>
    %765 = math.exp %764 : vector<8x32xf32>
    %cst_197 = arith.constant 1.000000e+00 : f32
    %766 = vector.broadcast %cst_197 : f32 to vector<8x32xf32>
    %767 = arith.addf %766, %765 : vector<8x32xf32>
    %768 = arith.divf %766, %767 : vector<8x32xf32>
    %769 = arith.mulf %760, %745 : vector<8x32xf32>
    %770 = arith.mulf %754, %762 : vector<8x32xf32>
    %771 = arith.addf %769, %770 : vector<8x32xf32>
    %772 = math.tanh %771 : vector<8x32xf32>
    %773 = arith.mulf %768, %772 : vector<8x32xf32>
    %c0_198 = arith.constant 0 : index
    %c0_199 = arith.constant 0 : index
    %774 = vector.load %arg9[%c0_198, %c0_199] : memref<64x32xf32, #tpu.memory_space<vmem>>, vector<8x32xf32>
    tpu.vector_store %arg9[%c0_198, %c0_199], %773 {strides = array<i32>} : memref<64x32xf32, #tpu.memory_space<vmem>>, vector<8x32xf32>,
    %775 = vector.extract_strided_slice %743 {offsets = [8, 0], sizes = [8, 128], strides = [1, 1]} : vector<64x128xf32> to vector<8x128xf32>
    %cst_200 = arith.constant dense<0.000000e+00> : vector<8x128xf32>
    %776 = tpu.matmul %773, %737, %cst_200 {dimension_numbers = #tpu.dot_dimension_numbers<[1], [0], [0], [1], [0, 0, 1, 1], [], []>} : vector<8x32xf32>, vector<32x128xf32>, vector<8x128xf32> -> vector<8x128xf32>
    %777 = arith.addf %775, %776 : vector<8x128xf32>
    %778 = vector.extract_strided_slice %777 {offsets = [0, 0], sizes = [8, 32], strides = [1, 1]} : vector<8x128xf32> to vector<8x32xf32>
    %779 = arith.negf %778 : vector<8x32xf32>
    %780 = math.exp %779 : vector<8x32xf32>
    %cst_201 = arith.constant 1.000000e+00 : f32
    %781 = vector.broadcast %cst_201 : f32 to vector<8x32xf32>
    %782 = arith.addf %781, %780 : vector<8x32xf32>
    %783 = arith.divf %781, %782 : vector<8x32xf32>
    %784 = vector.extract_strided_slice %777 {offsets = [0, 32], sizes = [8, 32], strides = [1, 1]} : vector<8x128xf32> to vector<8x32xf32>
    %785 = arith.negf %784 : vector<8x32xf32>
    %786 = math.exp %785 : vector<8x32xf32>
    %cst_202 = arith.constant 1.000000e+00 : f32
    %787 = vector.broadcast %cst_202 : f32 to vector<8x32xf32>
    %788 = arith.addf %787, %786 : vector<8x32xf32>
    %789 = arith.divf %787, %788 : vector<8x32xf32>
    %790 = vector.extract_strided_slice %777 {offsets = [0, 64], sizes = [8, 32], strides = [1, 1]} : vector<8x128xf32> to vector<8x32xf32>
    %791 = math.tanh %790 : vector<8x32xf32>
    %792 = vector.extract_strided_slice %777 {offsets = [0, 96], sizes = [8, 32], strides = [1, 1]} : vector<8x128xf32> to vector<8x32xf32>
    %793 = arith.negf %792 : vector<8x32xf32>
    %794 = math.exp %793 : vector<8x32xf32>
    %cst_203 = arith.constant 1.000000e+00 : f32
    %795 = vector.broadcast %cst_203 : f32 to vector<8x32xf32>
    %796 = arith.addf %795, %794 : vector<8x32xf32>
    %797 = arith.divf %795, %796 : vector<8x32xf32>
    %798 = arith.mulf %789, %771 : vector<8x32xf32>
    %799 = arith.mulf %783, %791 : vector<8x32xf32>
    %800 = arith.addf %798, %799 : vector<8x32xf32>
    %801 = math.tanh %800 : vector<8x32xf32>
    %802 = arith.mulf %797, %801 : vector<8x32xf32>
    %c8_204 = arith.constant 8 : index
    %c0_205 = arith.constant 0 : index
    %803 = vector.load %arg9[%c8_204, %c0_205] : memref<64x32xf32, #tpu.memory_space<vmem>>, vector<8x32xf32>
    tpu.vector_store %arg9[%c8_204, %c0_205], %802 {strides = array<i32>} : memref<64x32xf32, #tpu.memory_space<vmem>>, vector<8x32xf32>,
    %804 = vector.extract_strided_slice %743 {offsets = [16, 0], sizes = [8, 128], strides = [1, 1]} : vector<64x128xf32> to vector<8x128xf32>
    %cst_206 = arith.constant dense<0.000000e+00> : vector<8x128xf32>
    %805 = tpu.matmul %802, %737, %cst_206 {dimension_numbers = #tpu.dot_dimension_numbers<[1], [0], [0], [1], [0, 0, 1, 1], [], []>} : vector<8x32xf32>, vector<32x128xf32>, vector<8x128xf32> -> vector<8x128xf32>
    %806 = arith.addf %804, %805 : vector<8x128xf32>
    %807 = vector.extract_strided_slice %806 {offsets = [0, 0], sizes = [8, 32], strides = [1, 1]} : vector<8x128xf32> to vector<8x32xf32>
    %808 = arith.negf %807 : vector<8x32xf32>
    %809 = math.exp %808 : vector<8x32xf32>
    %cst_207 = arith.constant 1.000000e+00 : f32
    %810 = vector.broadcast %cst_207 : f32 to vector<8x32xf32>
    %811 = arith.addf %810, %809 : vector<8x32xf32>
    %812 = arith.divf %810, %811 : vector<8x32xf32>
    %813 = vector.extract_strided_slice %806 {offsets = [0, 32], sizes = [8, 32], strides = [1, 1]} : vector<8x128xf32> to vector<8x32xf32>
    %814 = arith.negf %813 : vector<8x32xf32>
    %815 = math.exp %814 : vector<8x32xf32>
    %cst_208 = arith.constant 1.000000e+00 : f32
    %816 = vector.broadcast %cst_208 : f32 to vector<8x32xf32>
    %817 = arith.addf %816, %815 : vector<8x32xf32>
    %818 = arith.divf %816, %817 : vector<8x32xf32>
    %819 = vector.extract_strided_slice %806 {offsets = [0, 64], sizes = [8, 32], strides = [1, 1]} : vector<8x128xf32> to vector<8x32xf32>
    %820 = math.tanh %819 : vector<8x32xf32>
    %821 = vector.extract_strided_slice %806 {offsets = [0, 96], sizes = [8, 32], strides = [1, 1]} : vector<8x128xf32> to vector<8x32xf32>
    %822 = arith.negf %821 : vector<8x32xf32>
    %823 = math.exp %822 : vector<8x32xf32>
    %cst_209 = arith.constant 1.000000e+00 : f32
    %824 = vector.broadcast %cst_209 : f32 to vector<8x32xf32>
    %825 = arith.addf %824, %823 : vector<8x32xf32>
    %826 = arith.divf %824, %825 : vector<8x32xf32>
    %827 = arith.mulf %818, %800 : vector<8x32xf32>
    %828 = arith.mulf %812, %820 : vector<8x32xf32>
    %829 = arith.addf %827, %828 : vector<8x32xf32>
    %830 = math.tanh %829 : vector<8x32xf32>
    %831 = arith.mulf %826, %830 : vector<8x32xf32>
    %c16_210 = arith.constant 16 : index
    %c0_211 = arith.constant 0 : index
    %832 = vector.load %arg9[%c16_210, %c0_211] : memref<64x32xf32, #tpu.memory_space<vmem>>, vector<8x32xf32>
    tpu.vector_store %arg9[%c16_210, %c0_211], %831 {strides = array<i32>} : memref<64x32xf32, #tpu.memory_space<vmem>>, vector<8x32xf32>,
    %833 = vector.extract_strided_slice %743 {offsets = [24, 0], sizes = [8, 128], strides = [1, 1]} : vector<64x128xf32> to vector<8x128xf32>
    %cst_212 = arith.constant dense<0.000000e+00> : vector<8x128xf32>
    %834 = tpu.matmul %831, %737, %cst_212 {dimension_numbers = #tpu.dot_dimension_numbers<[1], [0], [0], [1], [0, 0, 1, 1], [], []>} : vector<8x32xf32>, vector<32x128xf32>, vector<8x128xf32> -> vector<8x128xf32>
    %835 = arith.addf %833, %834 : vector<8x128xf32>
    %836 = vector.extract_strided_slice %835 {offsets = [0, 0], sizes = [8, 32], strides = [1, 1]} : vector<8x128xf32> to vector<8x32xf32>
    %837 = arith.negf %836 : vector<8x32xf32>
    %838 = math.exp %837 : vector<8x32xf32>
    %cst_213 = arith.constant 1.000000e+00 : f32
    %839 = vector.broadcast %cst_213 : f32 to vector<8x32xf32>
    %840 = arith.addf %839, %838 : vector<8x32xf32>
    %841 = arith.divf %839, %840 : vector<8x32xf32>
    %842 = vector.extract_strided_slice %835 {offsets = [0, 32], sizes = [8, 32], strides = [1, 1]} : vector<8x128xf32> to vector<8x32xf32>
    %843 = arith.negf %842 : vector<8x32xf32>
    %844 = math.exp %843 : vector<8x32xf32>
    %cst_214 = arith.constant 1.000000e+00 : f32
    %845 = vector.broadcast %cst_214 : f32 to vector<8x32xf32>
    %846 = arith.addf %845, %844 : vector<8x32xf32>
    %847 = arith.divf %845, %846 : vector<8x32xf32>
    %848 = vector.extract_strided_slice %835 {offsets = [0, 64], sizes = [8, 32], strides = [1, 1]} : vector<8x128xf32> to vector<8x32xf32>
    %849 = math.tanh %848 : vector<8x32xf32>
    %850 = vector.extract_strided_slice %835 {offsets = [0, 96], sizes = [8, 32], strides = [1, 1]} : vector<8x128xf32> to vector<8x32xf32>
    %851 = arith.negf %850 : vector<8x32xf32>
    %852 = math.exp %851 : vector<8x32xf32>
    %cst_215 = arith.constant 1.000000e+00 : f32
    %853 = vector.broadcast %cst_215 : f32 to vector<8x32xf32>
    %854 = arith.addf %853, %852 : vector<8x32xf32>
    %855 = arith.divf %853, %854 : vector<8x32xf32>
    %856 = arith.mulf %847, %829 : vector<8x32xf32>
    %857 = arith.mulf %841, %849 : vector<8x32xf32>
    %858 = arith.addf %856, %857 : vector<8x32xf32>
    %859 = math.tanh %858 : vector<8x32xf32>
    %860 = arith.mulf %855, %859 : vector<8x32xf32>
    %c24_216 = arith.constant 24 : index
    %c0_217 = arith.constant 0 : index
    %861 = vector.load %arg9[%c24_216, %c0_217] : memref<64x32xf32, #tpu.memory_space<vmem>>, vector<8x32xf32>
    tpu.vector_store %arg9[%c24_216, %c0_217], %860 {strides = array<i32>} : memref<64x32xf32, #tpu.memory_space<vmem>>, vector<8x32xf32>,
    %862 = vector.extract_strided_slice %743 {offsets = [32, 0], sizes = [8, 128], strides = [1, 1]} : vector<64x128xf32> to vector<8x128xf32>
    %cst_218 = arith.constant dense<0.000000e+00> : vector<8x128xf32>
    %863 = tpu.matmul %860, %737, %cst_218 {dimension_numbers = #tpu.dot_dimension_numbers<[1], [0], [0], [1], [0, 0, 1, 1], [], []>} : vector<8x32xf32>, vector<32x128xf32>, vector<8x128xf32> -> vector<8x128xf32>
    %864 = arith.addf %862, %863 : vector<8x128xf32>
    %865 = vector.extract_strided_slice %864 {offsets = [0, 0], sizes = [8, 32], strides = [1, 1]} : vector<8x128xf32> to vector<8x32xf32>
    %866 = arith.negf %865 : vector<8x32xf32>
    %867 = math.exp %866 : vector<8x32xf32>
    %cst_219 = arith.constant 1.000000e+00 : f32
    %868 = vector.broadcast %cst_219 : f32 to vector<8x32xf32>
    %869 = arith.addf %868, %867 : vector<8x32xf32>
    %870 = arith.divf %868, %869 : vector<8x32xf32>
    %871 = vector.extract_strided_slice %864 {offsets = [0, 32], sizes = [8, 32], strides = [1, 1]} : vector<8x128xf32> to vector<8x32xf32>
    %872 = arith.negf %871 : vector<8x32xf32>
    %873 = math.exp %872 : vector<8x32xf32>
    %cst_220 = arith.constant 1.000000e+00 : f32
    %874 = vector.broadcast %cst_220 : f32 to vector<8x32xf32>
    %875 = arith.addf %874, %873 : vector<8x32xf32>
    %876 = arith.divf %874, %875 : vector<8x32xf32>
    %877 = vector.extract_strided_slice %864 {offsets = [0, 64], sizes = [8, 32], strides = [1, 1]} : vector<8x128xf32> to vector<8x32xf32>
    %878 = math.tanh %877 : vector<8x32xf32>
    %879 = vector.extract_strided_slice %864 {offsets = [0, 96], sizes = [8, 32], strides = [1, 1]} : vector<8x128xf32> to vector<8x32xf32>
    %880 = arith.negf %879 : vector<8x32xf32>
    %881 = math.exp %880 : vector<8x32xf32>
    %cst_221 = arith.constant 1.000000e+00 : f32
    %882 = vector.broadcast %cst_221 : f32 to vector<8x32xf32>
    %883 = arith.addf %882, %881 : vector<8x32xf32>
    %884 = arith.divf %882, %883 : vector<8x32xf32>
    %885 = arith.mulf %876, %858 : vector<8x32xf32>
    %886 = arith.mulf %870, %878 : vector<8x32xf32>
    %887 = arith.addf %885, %886 : vector<8x32xf32>
    %888 = math.tanh %887 : vector<8x32xf32>
    %889 = arith.mulf %884, %888 : vector<8x32xf32>
    %c32_222 = arith.constant 32 : index
    %c0_223 = arith.constant 0 : index
    %890 = vector.load %arg9[%c32_222, %c0_223] : memref<64x32xf32, #tpu.memory_space<vmem>>, vector<8x32xf32>
    tpu.vector_store %arg9[%c32_222, %c0_223], %889 {strides = array<i32>} : memref<64x32xf32, #tpu.memory_space<vmem>>, vector<8x32xf32>,
    %891 = vector.extract_strided_slice %743 {offsets = [40, 0], sizes = [8, 128], strides = [1, 1]} : vector<64x128xf32> to vector<8x128xf32>
    %cst_224 = arith.constant dense<0.000000e+00> : vector<8x128xf32>
    %892 = tpu.matmul %889, %737, %cst_224 {dimension_numbers = #tpu.dot_dimension_numbers<[1], [0], [0], [1], [0, 0, 1, 1], [], []>} : vector<8x32xf32>, vector<32x128xf32>, vector<8x128xf32> -> vector<8x128xf32>
    %893 = arith.addf %891, %892 : vector<8x128xf32>
    %894 = vector.extract_strided_slice %893 {offsets = [0, 0], sizes = [8, 32], strides = [1, 1]} : vector<8x128xf32> to vector<8x32xf32>
    %895 = arith.negf %894 : vector<8x32xf32>
    %896 = math.exp %895 : vector<8x32xf32>
    %cst_225 = arith.constant 1.000000e+00 : f32
    %897 = vector.broadcast %cst_225 : f32 to vector<8x32xf32>
    %898 = arith.addf %897, %896 : vector<8x32xf32>
    %899 = arith.divf %897, %898 : vector<8x32xf32>
    %900 = vector.extract_strided_slice %893 {offsets = [0, 32], sizes = [8, 32], strides = [1, 1]} : vector<8x128xf32> to vector<8x32xf32>
    %901 = arith.negf %900 : vector<8x32xf32>
    %902 = math.exp %901 : vector<8x32xf32>
    %cst_226 = arith.constant 1.000000e+00 : f32
    %903 = vector.broadcast %cst_226 : f32 to vector<8x32xf32>
    %904 = arith.addf %903, %902 : vector<8x32xf32>
    %905 = arith.divf %903, %904 : vector<8x32xf32>
    %906 = vector.extract_strided_slice %893 {offsets = [0, 64], sizes = [8, 32], strides = [1, 1]} : vector<8x128xf32> to vector<8x32xf32>
    %907 = math.tanh %906 : vector<8x32xf32>
    %908 = vector.extract_strided_slice %893 {offsets = [0, 96], sizes = [8, 32], strides = [1, 1]} : vector<8x128xf32> to vector<8x32xf32>
    %909 = arith.negf %908 : vector<8x32xf32>
    %910 = math.exp %909 : vector<8x32xf32>
    %cst_227 = arith.constant 1.000000e+00 : f32
    %911 = vector.broadcast %cst_227 : f32 to vector<8x32xf32>
    %912 = arith.addf %911, %910 : vector<8x32xf32>
    %913 = arith.divf %911, %912 : vector<8x32xf32>
    %914 = arith.mulf %905, %887 : vector<8x32xf32>
    %915 = arith.mulf %899, %907 : vector<8x32xf32>
    %916 = arith.addf %914, %915 : vector<8x32xf32>
    %917 = math.tanh %916 : vector<8x32xf32>
    %918 = arith.mulf %913, %917 : vector<8x32xf32>
    %c40_228 = arith.constant 40 : index
    %c0_229 = arith.constant 0 : index
    %919 = vector.load %arg9[%c40_228, %c0_229] : memref<64x32xf32, #tpu.memory_space<vmem>>, vector<8x32xf32>
    tpu.vector_store %arg9[%c40_228, %c0_229], %918 {strides = array<i32>} : memref<64x32xf32, #tpu.memory_space<vmem>>, vector<8x32xf32>,
    %920 = vector.extract_strided_slice %743 {offsets = [48, 0], sizes = [8, 128], strides = [1, 1]} : vector<64x128xf32> to vector<8x128xf32>
    %cst_230 = arith.constant dense<0.000000e+00> : vector<8x128xf32>
    %921 = tpu.matmul %918, %737, %cst_230 {dimension_numbers = #tpu.dot_dimension_numbers<[1], [0], [0], [1], [0, 0, 1, 1], [], []>} : vector<8x32xf32>, vector<32x128xf32>, vector<8x128xf32> -> vector<8x128xf32>
    %922 = arith.addf %920, %921 : vector<8x128xf32>
    %923 = vector.extract_strided_slice %922 {offsets = [0, 0], sizes = [8, 32], strides = [1, 1]} : vector<8x128xf32> to vector<8x32xf32>
    %924 = arith.negf %923 : vector<8x32xf32>
    %925 = math.exp %924 : vector<8x32xf32>
    %cst_231 = arith.constant 1.000000e+00 : f32
    %926 = vector.broadcast %cst_231 : f32 to vector<8x32xf32>
    %927 = arith.addf %926, %925 : vector<8x32xf32>
    %928 = arith.divf %926, %927 : vector<8x32xf32>
    %929 = vector.extract_strided_slice %922 {offsets = [0, 32], sizes = [8, 32], strides = [1, 1]} : vector<8x128xf32> to vector<8x32xf32>
    %930 = arith.negf %929 : vector<8x32xf32>
    %931 = math.exp %930 : vector<8x32xf32>
    %cst_232 = arith.constant 1.000000e+00 : f32
    %932 = vector.broadcast %cst_232 : f32 to vector<8x32xf32>
    %933 = arith.addf %932, %931 : vector<8x32xf32>
    %934 = arith.divf %932, %933 : vector<8x32xf32>
    %935 = vector.extract_strided_slice %922 {offsets = [0, 64], sizes = [8, 32], strides = [1, 1]} : vector<8x128xf32> to vector<8x32xf32>
    %936 = math.tanh %935 : vector<8x32xf32>
    %937 = vector.extract_strided_slice %922 {offsets = [0, 96], sizes = [8, 32], strides = [1, 1]} : vector<8x128xf32> to vector<8x32xf32>
    %938 = arith.negf %937 : vector<8x32xf32>
    %939 = math.exp %938 : vector<8x32xf32>
    %cst_233 = arith.constant 1.000000e+00 : f32
    %940 = vector.broadcast %cst_233 : f32 to vector<8x32xf32>
    %941 = arith.addf %940, %939 : vector<8x32xf32>
    %942 = arith.divf %940, %941 : vector<8x32xf32>
    %943 = arith.mulf %934, %916 : vector<8x32xf32>
    %944 = arith.mulf %928, %936 : vector<8x32xf32>
    %945 = arith.addf %943, %944 : vector<8x32xf32>
    %946 = math.tanh %945 : vector<8x32xf32>
    %947 = arith.mulf %942, %946 : vector<8x32xf32>
    %c48_234 = arith.constant 48 : index
    %c0_235 = arith.constant 0 : index
    %948 = vector.load %arg9[%c48_234, %c0_235] : memref<64x32xf32, #tpu.memory_space<vmem>>, vector<8x32xf32>
    tpu.vector_store %arg9[%c48_234, %c0_235], %947 {strides = array<i32>} : memref<64x32xf32, #tpu.memory_space<vmem>>, vector<8x32xf32>,
    %949 = vector.extract_strided_slice %743 {offsets = [56, 0], sizes = [8, 128], strides = [1, 1]} : vector<64x128xf32> to vector<8x128xf32>
    %cst_236 = arith.constant dense<0.000000e+00> : vector<8x128xf32>
    %950 = tpu.matmul %947, %737, %cst_236 {dimension_numbers = #tpu.dot_dimension_numbers<[1], [0], [0], [1], [0, 0, 1, 1], [], []>} : vector<8x32xf32>, vector<32x128xf32>, vector<8x128xf32> -> vector<8x128xf32>
    %951 = arith.addf %949, %950 : vector<8x128xf32>
    %952 = vector.extract_strided_slice %951 {offsets = [0, 0], sizes = [8, 32], strides = [1, 1]} : vector<8x128xf32> to vector<8x32xf32>
    %953 = arith.negf %952 : vector<8x32xf32>
    %954 = math.exp %953 : vector<8x32xf32>
    %cst_237 = arith.constant 1.000000e+00 : f32
    %955 = vector.broadcast %cst_237 : f32 to vector<8x32xf32>
    %956 = arith.addf %955, %954 : vector<8x32xf32>
    %957 = arith.divf %955, %956 : vector<8x32xf32>
    %958 = vector.extract_strided_slice %951 {offsets = [0, 32], sizes = [8, 32], strides = [1, 1]} : vector<8x128xf32> to vector<8x32xf32>
    %959 = arith.negf %958 : vector<8x32xf32>
    %960 = math.exp %959 : vector<8x32xf32>
    %cst_238 = arith.constant 1.000000e+00 : f32
    %961 = vector.broadcast %cst_238 : f32 to vector<8x32xf32>
    %962 = arith.addf %961, %960 : vector<8x32xf32>
    %963 = arith.divf %961, %962 : vector<8x32xf32>
    %964 = vector.extract_strided_slice %951 {offsets = [0, 64], sizes = [8, 32], strides = [1, 1]} : vector<8x128xf32> to vector<8x32xf32>
    %965 = math.tanh %964 : vector<8x32xf32>
    %966 = vector.extract_strided_slice %951 {offsets = [0, 96], sizes = [8, 32], strides = [1, 1]} : vector<8x128xf32> to vector<8x32xf32>
    %967 = arith.negf %966 : vector<8x32xf32>
    %968 = math.exp %967 : vector<8x32xf32>
    %cst_239 = arith.constant 1.000000e+00 : f32
    %969 = vector.broadcast %cst_239 : f32 to vector<8x32xf32>
    %970 = arith.addf %969, %968 : vector<8x32xf32>
    %971 = arith.divf %969, %970 : vector<8x32xf32>
    %972 = arith.mulf %963, %945 : vector<8x32xf32>
    %973 = arith.mulf %957, %965 : vector<8x32xf32>
    %974 = arith.addf %972, %973 : vector<8x32xf32>
    %975 = math.tanh %974 : vector<8x32xf32>
    %976 = arith.mulf %971, %975 : vector<8x32xf32>
    %c56_240 = arith.constant 56 : index
    %c0_241 = arith.constant 0 : index
    %977 = vector.load %arg9[%c56_240, %c0_241] : memref<64x32xf32, #tpu.memory_space<vmem>>, vector<8x32xf32>
    tpu.vector_store %arg9[%c56_240, %c0_241], %976 {strides = array<i32>} : memref<64x32xf32, #tpu.memory_space<vmem>>, vector<8x32xf32>,
    %c4 = arith.constant 4 : index
    %c0_242 = arith.constant 0 : index
    %c0_243 = arith.constant 0 : index
    %978 = vector.load %arg3[%c4, %c0_242, %c0_243] : memref<5x32x128xf32, #tpu.memory_space<vmem>>, vector<1x32x128xf32>
    %979 = vector.shape_cast %978 : vector<1x32x128xf32> to vector<32x128xf32>
    %c4_244 = arith.constant 4 : index
    %c0_245 = arith.constant 0 : index
    %c0_246 = arith.constant 0 : index
    %980 = vector.load %arg4[%c4_244, %c0_245, %c0_246] : memref<5x32x128xf32, #tpu.memory_space<vmem>>, vector<1x32x128xf32>
    %981 = vector.shape_cast %980 : vector<1x32x128xf32> to vector<32x128xf32>
    %c4_247 = arith.constant 4 : index
    %c0_248 = arith.constant 0 : index
    %c0_249 = arith.constant 0 : index
    %982 = vector.load %arg5[%c4_247, %c0_248, %c0_249] : memref<5x1x128xf32, #tpu.memory_space<vmem>>, vector<1x1x128xf32>
    %983 = vector.shape_cast %982 : vector<1x1x128xf32> to vector<1x128xf32>
    %c0_250 = arith.constant 0 : index
    %c0_251 = arith.constant 0 : index
    %984 = vector.load %arg9[%c0_250, %c0_251] : memref<64x32xf32, #tpu.memory_space<vmem>>, vector<64x32xf32>
    %cst_252 = arith.constant dense<0.000000e+00> : vector<64x128xf32>
    %985 = tpu.matmul %984, %979, %cst_252 {dimension_numbers = #tpu.dot_dimension_numbers<[1], [0], [0], [1], [0, 0, 1, 1], [], []>} : vector<64x32xf32>, vector<32x128xf32>, vector<64x128xf32> -> vector<64x128xf32>
    %986 = vector.broadcast %983 : vector<1x128xf32> to vector<64x128xf32>
    %987 = arith.addf %985, %986 : vector<64x128xf32>
    %cst_253 = arith.constant 0.000000e+00 : f32
    %988 = vector.broadcast %cst_253 : f32 to vector<8x32xf32>
    %cst_254 = arith.constant 0.000000e+00 : f32
    %989 = vector.broadcast %cst_254 : f32 to vector<8x32xf32>
    %990 = vector.extract_strided_slice %987 {offsets = [0, 0], sizes = [8, 128], strides = [1, 1]} : vector<64x128xf32> to vector<8x128xf32>
    %cst_255 = arith.constant dense<0.000000e+00> : vector<8x128xf32>
    %991 = tpu.matmul %988, %981, %cst_255 {dimension_numbers = #tpu.dot_dimension_numbers<[1], [0], [0], [1], [0, 0, 1, 1], [], []>} : vector<8x32xf32>, vector<32x128xf32>, vector<8x128xf32> -> vector<8x128xf32>
    %992 = arith.addf %990, %991 : vector<8x128xf32>
    %993 = vector.extract_strided_slice %992 {offsets = [0, 0], sizes = [8, 32], strides = [1, 1]} : vector<8x128xf32> to vector<8x32xf32>
    %994 = arith.negf %993 : vector<8x32xf32>
    %995 = math.exp %994 : vector<8x32xf32>
    %cst_256 = arith.constant 1.000000e+00 : f32
    %996 = vector.broadcast %cst_256 : f32 to vector<8x32xf32>
    %997 = arith.addf %996, %995 : vector<8x32xf32>
    %998 = arith.divf %996, %997 : vector<8x32xf32>
    %999 = vector.extract_strided_slice %992 {offsets = [0, 32], sizes = [8, 32], strides = [1, 1]} : vector<8x128xf32> to vector<8x32xf32>
    %1000 = arith.negf %999 : vector<8x32xf32>
    %1001 = math.exp %1000 : vector<8x32xf32>
    %cst_257 = arith.constant 1.000000e+00 : f32
    %1002 = vector.broadcast %cst_257 : f32 to vector<8x32xf32>
    %1003 = arith.addf %1002, %1001 : vector<8x32xf32>
    %1004 = arith.divf %1002, %1003 : vector<8x32xf32>
    %1005 = vector.extract_strided_slice %992 {offsets = [0, 64], sizes = [8, 32], strides = [1, 1]} : vector<8x128xf32> to vector<8x32xf32>
    %1006 = math.tanh %1005 : vector<8x32xf32>
    %1007 = vector.extract_strided_slice %992 {offsets = [0, 96], sizes = [8, 32], strides = [1, 1]} : vector<8x128xf32> to vector<8x32xf32>
    %1008 = arith.negf %1007 : vector<8x32xf32>
    %1009 = math.exp %1008 : vector<8x32xf32>
    %cst_258 = arith.constant 1.000000e+00 : f32
    %1010 = vector.broadcast %cst_258 : f32 to vector<8x32xf32>
    %1011 = arith.addf %1010, %1009 : vector<8x32xf32>
    %1012 = arith.divf %1010, %1011 : vector<8x32xf32>
    %1013 = arith.mulf %1004, %989 : vector<8x32xf32>
    %1014 = arith.mulf %998, %1006 : vector<8x32xf32>
    %1015 = arith.addf %1013, %1014 : vector<8x32xf32>
    %1016 = math.tanh %1015 : vector<8x32xf32>
    %1017 = arith.mulf %1012, %1016 : vector<8x32xf32>
    %c0_259 = arith.constant 0 : index
    %c0_260 = arith.constant 0 : index
    %1018 = vector.load %arg9[%c0_259, %c0_260] : memref<64x32xf32, #tpu.memory_space<vmem>>, vector<8x32xf32>
    tpu.vector_store %arg9[%c0_259, %c0_260], %1017 {strides = array<i32>} : memref<64x32xf32, #tpu.memory_space<vmem>>, vector<8x32xf32>,
    %1019 = vector.extract_strided_slice %987 {offsets = [8, 0], sizes = [8, 128], strides = [1, 1]} : vector<64x128xf32> to vector<8x128xf32>
    %cst_261 = arith.constant dense<0.000000e+00> : vector<8x128xf32>
    %1020 = tpu.matmul %1017, %981, %cst_261 {dimension_numbers = #tpu.dot_dimension_numbers<[1], [0], [0], [1], [0, 0, 1, 1], [], []>} : vector<8x32xf32>, vector<32x128xf32>, vector<8x128xf32> -> vector<8x128xf32>
    %1021 = arith.addf %1019, %1020 : vector<8x128xf32>
    %1022 = vector.extract_strided_slice %1021 {offsets = [0, 0], sizes = [8, 32], strides = [1, 1]} : vector<8x128xf32> to vector<8x32xf32>
    %1023 = arith.negf %1022 : vector<8x32xf32>
    %1024 = math.exp %1023 : vector<8x32xf32>
    %cst_262 = arith.constant 1.000000e+00 : f32
    %1025 = vector.broadcast %cst_262 : f32 to vector<8x32xf32>
    %1026 = arith.addf %1025, %1024 : vector<8x32xf32>
    %1027 = arith.divf %1025, %1026 : vector<8x32xf32>
    %1028 = vector.extract_strided_slice %1021 {offsets = [0, 32], sizes = [8, 32], strides = [1, 1]} : vector<8x128xf32> to vector<8x32xf32>
    %1029 = arith.negf %1028 : vector<8x32xf32>
    %1030 = math.exp %1029 : vector<8x32xf32>
    %cst_263 = arith.constant 1.000000e+00 : f32
    %1031 = vector.broadcast %cst_263 : f32 to vector<8x32xf32>
    %1032 = arith.addf %1031, %1030 : vector<8x32xf32>
    %1033 = arith.divf %1031, %1032 : vector<8x32xf32>
    %1034 = vector.extract_strided_slice %1021 {offsets = [0, 64], sizes = [8, 32], strides = [1, 1]} : vector<8x128xf32> to vector<8x32xf32>
    %1035 = math.tanh %1034 : vector<8x32xf32>
    %1036 = vector.extract_strided_slice %1021 {offsets = [0, 96], sizes = [8, 32], strides = [1, 1]} : vector<8x128xf32> to vector<8x32xf32>
    %1037 = arith.negf %1036 : vector<8x32xf32>
    %1038 = math.exp %1037 : vector<8x32xf32>
    %cst_264 = arith.constant 1.000000e+00 : f32
    %1039 = vector.broadcast %cst_264 : f32 to vector<8x32xf32>
    %1040 = arith.addf %1039, %1038 : vector<8x32xf32>
    %1041 = arith.divf %1039, %1040 : vector<8x32xf32>
    %1042 = arith.mulf %1033, %1015 : vector<8x32xf32>
    %1043 = arith.mulf %1027, %1035 : vector<8x32xf32>
    %1044 = arith.addf %1042, %1043 : vector<8x32xf32>
    %1045 = math.tanh %1044 : vector<8x32xf32>
    %1046 = arith.mulf %1041, %1045 : vector<8x32xf32>
    %c8_265 = arith.constant 8 : index
    %c0_266 = arith.constant 0 : index
    %1047 = vector.load %arg9[%c8_265, %c0_266] : memref<64x32xf32, #tpu.memory_space<vmem>>, vector<8x32xf32>
    tpu.vector_store %arg9[%c8_265, %c0_266], %1046 {strides = array<i32>} : memref<64x32xf32, #tpu.memory_space<vmem>>, vector<8x32xf32>,
    %1048 = vector.extract_strided_slice %987 {offsets = [16, 0], sizes = [8, 128], strides = [1, 1]} : vector<64x128xf32> to vector<8x128xf32>
    %cst_267 = arith.constant dense<0.000000e+00> : vector<8x128xf32>
    %1049 = tpu.matmul %1046, %981, %cst_267 {dimension_numbers = #tpu.dot_dimension_numbers<[1], [0], [0], [1], [0, 0, 1, 1], [], []>} : vector<8x32xf32>, vector<32x128xf32>, vector<8x128xf32> -> vector<8x128xf32>
    %1050 = arith.addf %1048, %1049 : vector<8x128xf32>
    %1051 = vector.extract_strided_slice %1050 {offsets = [0, 0], sizes = [8, 32], strides = [1, 1]} : vector<8x128xf32> to vector<8x32xf32>
    %1052 = arith.negf %1051 : vector<8x32xf32>
    %1053 = math.exp %1052 : vector<8x32xf32>
    %cst_268 = arith.constant 1.000000e+00 : f32
    %1054 = vector.broadcast %cst_268 : f32 to vector<8x32xf32>
    %1055 = arith.addf %1054, %1053 : vector<8x32xf32>
    %1056 = arith.divf %1054, %1055 : vector<8x32xf32>
    %1057 = vector.extract_strided_slice %1050 {offsets = [0, 32], sizes = [8, 32], strides = [1, 1]} : vector<8x128xf32> to vector<8x32xf32>
    %1058 = arith.negf %1057 : vector<8x32xf32>
    %1059 = math.exp %1058 : vector<8x32xf32>
    %cst_269 = arith.constant 1.000000e+00 : f32
    %1060 = vector.broadcast %cst_269 : f32 to vector<8x32xf32>
    %1061 = arith.addf %1060, %1059 : vector<8x32xf32>
    %1062 = arith.divf %1060, %1061 : vector<8x32xf32>
    %1063 = vector.extract_strided_slice %1050 {offsets = [0, 64], sizes = [8, 32], strides = [1, 1]} : vector<8x128xf32> to vector<8x32xf32>
    %1064 = math.tanh %1063 : vector<8x32xf32>
    %1065 = vector.extract_strided_slice %1050 {offsets = [0, 96], sizes = [8, 32], strides = [1, 1]} : vector<8x128xf32> to vector<8x32xf32>
    %1066 = arith.negf %1065 : vector<8x32xf32>
    %1067 = math.exp %1066 : vector<8x32xf32>
    %cst_270 = arith.constant 1.000000e+00 : f32
    %1068 = vector.broadcast %cst_270 : f32 to vector<8x32xf32>
    %1069 = arith.addf %1068, %1067 : vector<8x32xf32>
    %1070 = arith.divf %1068, %1069 : vector<8x32xf32>
    %1071 = arith.mulf %1062, %1044 : vector<8x32xf32>
    %1072 = arith.mulf %1056, %1064 : vector<8x32xf32>
    %1073 = arith.addf %1071, %1072 : vector<8x32xf32>
    %1074 = math.tanh %1073 : vector<8x32xf32>
    %1075 = arith.mulf %1070, %1074 : vector<8x32xf32>
    %c16_271 = arith.constant 16 : index
    %c0_272 = arith.constant 0 : index
    %1076 = vector.load %arg9[%c16_271, %c0_272] : memref<64x32xf32, #tpu.memory_space<vmem>>, vector<8x32xf32>
    tpu.vector_store %arg9[%c16_271, %c0_272], %1075 {strides = array<i32>} : memref<64x32xf32, #tpu.memory_space<vmem>>, vector<8x32xf32>,
    %1077 = vector.extract_strided_slice %987 {offsets = [24, 0], sizes = [8, 128], strides = [1, 1]} : vector<64x128xf32> to vector<8x128xf32>
    %cst_273 = arith.constant dense<0.000000e+00> : vector<8x128xf32>
    %1078 = tpu.matmul %1075, %981, %cst_273 {dimension_numbers = #tpu.dot_dimension_numbers<[1], [0], [0], [1], [0, 0, 1, 1], [], []>} : vector<8x32xf32>, vector<32x128xf32>, vector<8x128xf32> -> vector<8x128xf32>
    %1079 = arith.addf %1077, %1078 : vector<8x128xf32>
    %1080 = vector.extract_strided_slice %1079 {offsets = [0, 0], sizes = [8, 32], strides = [1, 1]} : vector<8x128xf32> to vector<8x32xf32>
    %1081 = arith.negf %1080 : vector<8x32xf32>
    %1082 = math.exp %1081 : vector<8x32xf32>
    %cst_274 = arith.constant 1.000000e+00 : f32
    %1083 = vector.broadcast %cst_274 : f32 to vector<8x32xf32>
    %1084 = arith.addf %1083, %1082 : vector<8x32xf32>
    %1085 = arith.divf %1083, %1084 : vector<8x32xf32>
    %1086 = vector.extract_strided_slice %1079 {offsets = [0, 32], sizes = [8, 32], strides = [1, 1]} : vector<8x128xf32> to vector<8x32xf32>
    %1087 = arith.negf %1086 : vector<8x32xf32>
    %1088 = math.exp %1087 : vector<8x32xf32>
    %cst_275 = arith.constant 1.000000e+00 : f32
    %1089 = vector.broadcast %cst_275 : f32 to vector<8x32xf32>
    %1090 = arith.addf %1089, %1088 : vector<8x32xf32>
    %1091 = arith.divf %1089, %1090 : vector<8x32xf32>
    %1092 = vector.extract_strided_slice %1079 {offsets = [0, 64], sizes = [8, 32], strides = [1, 1]} : vector<8x128xf32> to vector<8x32xf32>
    %1093 = math.tanh %1092 : vector<8x32xf32>
    %1094 = vector.extract_strided_slice %1079 {offsets = [0, 96], sizes = [8, 32], strides = [1, 1]} : vector<8x128xf32> to vector<8x32xf32>
    %1095 = arith.negf %1094 : vector<8x32xf32>
    %1096 = math.exp %1095 : vector<8x32xf32>
    %cst_276 = arith.constant 1.000000e+00 : f32
    %1097 = vector.broadcast %cst_276 : f32 to vector<8x32xf32>
    %1098 = arith.addf %1097, %1096 : vector<8x32xf32>
    %1099 = arith.divf %1097, %1098 : vector<8x32xf32>
    %1100 = arith.mulf %1091, %1073 : vector<8x32xf32>
    %1101 = arith.mulf %1085, %1093 : vector<8x32xf32>
    %1102 = arith.addf %1100, %1101 : vector<8x32xf32>
    %1103 = math.tanh %1102 : vector<8x32xf32>
    %1104 = arith.mulf %1099, %1103 : vector<8x32xf32>
    %c24_277 = arith.constant 24 : index
    %c0_278 = arith.constant 0 : index
    %1105 = vector.load %arg9[%c24_277, %c0_278] : memref<64x32xf32, #tpu.memory_space<vmem>>, vector<8x32xf32>
    tpu.vector_store %arg9[%c24_277, %c0_278], %1104 {strides = array<i32>} : memref<64x32xf32, #tpu.memory_space<vmem>>, vector<8x32xf32>,
    %1106 = vector.extract_strided_slice %987 {offsets = [32, 0], sizes = [8, 128], strides = [1, 1]} : vector<64x128xf32> to vector<8x128xf32>
    %cst_279 = arith.constant dense<0.000000e+00> : vector<8x128xf32>
    %1107 = tpu.matmul %1104, %981, %cst_279 {dimension_numbers = #tpu.dot_dimension_numbers<[1], [0], [0], [1], [0, 0, 1, 1], [], []>} : vector<8x32xf32>, vector<32x128xf32>, vector<8x128xf32> -> vector<8x128xf32>
    %1108 = arith.addf %1106, %1107 : vector<8x128xf32>
    %1109 = vector.extract_strided_slice %1108 {offsets = [0, 0], sizes = [8, 32], strides = [1, 1]} : vector<8x128xf32> to vector<8x32xf32>
    %1110 = arith.negf %1109 : vector<8x32xf32>
    %1111 = math.exp %1110 : vector<8x32xf32>
    %cst_280 = arith.constant 1.000000e+00 : f32
    %1112 = vector.broadcast %cst_280 : f32 to vector<8x32xf32>
    %1113 = arith.addf %1112, %1111 : vector<8x32xf32>
    %1114 = arith.divf %1112, %1113 : vector<8x32xf32>
    %1115 = vector.extract_strided_slice %1108 {offsets = [0, 32], sizes = [8, 32], strides = [1, 1]} : vector<8x128xf32> to vector<8x32xf32>
    %1116 = arith.negf %1115 : vector<8x32xf32>
    %1117 = math.exp %1116 : vector<8x32xf32>
    %cst_281 = arith.constant 1.000000e+00 : f32
    %1118 = vector.broadcast %cst_281 : f32 to vector<8x32xf32>
    %1119 = arith.addf %1118, %1117 : vector<8x32xf32>
    %1120 = arith.divf %1118, %1119 : vector<8x32xf32>
    %1121 = vector.extract_strided_slice %1108 {offsets = [0, 64], sizes = [8, 32], strides = [1, 1]} : vector<8x128xf32> to vector<8x32xf32>
    %1122 = math.tanh %1121 : vector<8x32xf32>
    %1123 = vector.extract_strided_slice %1108 {offsets = [0, 96], sizes = [8, 32], strides = [1, 1]} : vector<8x128xf32> to vector<8x32xf32>
    %1124 = arith.negf %1123 : vector<8x32xf32>
    %1125 = math.exp %1124 : vector<8x32xf32>
    %cst_282 = arith.constant 1.000000e+00 : f32
    %1126 = vector.broadcast %cst_282 : f32 to vector<8x32xf32>
    %1127 = arith.addf %1126, %1125 : vector<8x32xf32>
    %1128 = arith.divf %1126, %1127 : vector<8x32xf32>
    %1129 = arith.mulf %1120, %1102 : vector<8x32xf32>
    %1130 = arith.mulf %1114, %1122 : vector<8x32xf32>
    %1131 = arith.addf %1129, %1130 : vector<8x32xf32>
    %1132 = math.tanh %1131 : vector<8x32xf32>
    %1133 = arith.mulf %1128, %1132 : vector<8x32xf32>
    %c32_283 = arith.constant 32 : index
    %c0_284 = arith.constant 0 : index
    %1134 = vector.load %arg9[%c32_283, %c0_284] : memref<64x32xf32, #tpu.memory_space<vmem>>, vector<8x32xf32>
    tpu.vector_store %arg9[%c32_283, %c0_284], %1133 {strides = array<i32>} : memref<64x32xf32, #tpu.memory_space<vmem>>, vector<8x32xf32>,
    %1135 = vector.extract_strided_slice %987 {offsets = [40, 0], sizes = [8, 128], strides = [1, 1]} : vector<64x128xf32> to vector<8x128xf32>
    %cst_285 = arith.constant dense<0.000000e+00> : vector<8x128xf32>
    %1136 = tpu.matmul %1133, %981, %cst_285 {dimension_numbers = #tpu.dot_dimension_numbers<[1], [0], [0], [1], [0, 0, 1, 1], [], []>} : vector<8x32xf32>, vector<32x128xf32>, vector<8x128xf32> -> vector<8x128xf32>
    %1137 = arith.addf %1135, %1136 : vector<8x128xf32>
    %1138 = vector.extract_strided_slice %1137 {offsets = [0, 0], sizes = [8, 32], strides = [1, 1]} : vector<8x128xf32> to vector<8x32xf32>
    %1139 = arith.negf %1138 : vector<8x32xf32>
    %1140 = math.exp %1139 : vector<8x32xf32>
    %cst_286 = arith.constant 1.000000e+00 : f32
    %1141 = vector.broadcast %cst_286 : f32 to vector<8x32xf32>
    %1142 = arith.addf %1141, %1140 : vector<8x32xf32>
    %1143 = arith.divf %1141, %1142 : vector<8x32xf32>
    %1144 = vector.extract_strided_slice %1137 {offsets = [0, 32], sizes = [8, 32], strides = [1, 1]} : vector<8x128xf32> to vector<8x32xf32>
    %1145 = arith.negf %1144 : vector<8x32xf32>
    %1146 = math.exp %1145 : vector<8x32xf32>
    %cst_287 = arith.constant 1.000000e+00 : f32
    %1147 = vector.broadcast %cst_287 : f32 to vector<8x32xf32>
    %1148 = arith.addf %1147, %1146 : vector<8x32xf32>
    %1149 = arith.divf %1147, %1148 : vector<8x32xf32>
    %1150 = vector.extract_strided_slice %1137 {offsets = [0, 64], sizes = [8, 32], strides = [1, 1]} : vector<8x128xf32> to vector<8x32xf32>
    %1151 = math.tanh %1150 : vector<8x32xf32>
    %1152 = vector.extract_strided_slice %1137 {offsets = [0, 96], sizes = [8, 32], strides = [1, 1]} : vector<8x128xf32> to vector<8x32xf32>
    %1153 = arith.negf %1152 : vector<8x32xf32>
    %1154 = math.exp %1153 : vector<8x32xf32>
    %cst_288 = arith.constant 1.000000e+00 : f32
    %1155 = vector.broadcast %cst_288 : f32 to vector<8x32xf32>
    %1156 = arith.addf %1155, %1154 : vector<8x32xf32>
    %1157 = arith.divf %1155, %1156 : vector<8x32xf32>
    %1158 = arith.mulf %1149, %1131 : vector<8x32xf32>
    %1159 = arith.mulf %1143, %1151 : vector<8x32xf32>
    %1160 = arith.addf %1158, %1159 : vector<8x32xf32>
    %1161 = math.tanh %1160 : vector<8x32xf32>
    %1162 = arith.mulf %1157, %1161 : vector<8x32xf32>
    %c40_289 = arith.constant 40 : index
    %c0_290 = arith.constant 0 : index
    %1163 = vector.load %arg9[%c40_289, %c0_290] : memref<64x32xf32, #tpu.memory_space<vmem>>, vector<8x32xf32>
    tpu.vector_store %arg9[%c40_289, %c0_290], %1162 {strides = array<i32>} : memref<64x32xf32, #tpu.memory_space<vmem>>, vector<8x32xf32>,
    %1164 = vector.extract_strided_slice %987 {offsets = [48, 0], sizes = [8, 128], strides = [1, 1]} : vector<64x128xf32> to vector<8x128xf32>
    %cst_291 = arith.constant dense<0.000000e+00> : vector<8x128xf32>
    %1165 = tpu.matmul %1162, %981, %cst_291 {dimension_numbers = #tpu.dot_dimension_numbers<[1], [0], [0], [1], [0, 0, 1, 1], [], []>} : vector<8x32xf32>, vector<32x128xf32>, vector<8x128xf32> -> vector<8x128xf32>
    %1166 = arith.addf %1164, %1165 : vector<8x128xf32>
    %1167 = vector.extract_strided_slice %1166 {offsets = [0, 0], sizes = [8, 32], strides = [1, 1]} : vector<8x128xf32> to vector<8x32xf32>
    %1168 = arith.negf %1167 : vector<8x32xf32>
    %1169 = math.exp %1168 : vector<8x32xf32>
    %cst_292 = arith.constant 1.000000e+00 : f32
    %1170 = vector.broadcast %cst_292 : f32 to vector<8x32xf32>
    %1171 = arith.addf %1170, %1169 : vector<8x32xf32>
    %1172 = arith.divf %1170, %1171 : vector<8x32xf32>
    %1173 = vector.extract_strided_slice %1166 {offsets = [0, 32], sizes = [8, 32], strides = [1, 1]} : vector<8x128xf32> to vector<8x32xf32>
    %1174 = arith.negf %1173 : vector<8x32xf32>
    %1175 = math.exp %1174 : vector<8x32xf32>
    %cst_293 = arith.constant 1.000000e+00 : f32
    %1176 = vector.broadcast %cst_293 : f32 to vector<8x32xf32>
    %1177 = arith.addf %1176, %1175 : vector<8x32xf32>
    %1178 = arith.divf %1176, %1177 : vector<8x32xf32>
    %1179 = vector.extract_strided_slice %1166 {offsets = [0, 64], sizes = [8, 32], strides = [1, 1]} : vector<8x128xf32> to vector<8x32xf32>
    %1180 = math.tanh %1179 : vector<8x32xf32>
    %1181 = vector.extract_strided_slice %1166 {offsets = [0, 96], sizes = [8, 32], strides = [1, 1]} : vector<8x128xf32> to vector<8x32xf32>
    %1182 = arith.negf %1181 : vector<8x32xf32>
    %1183 = math.exp %1182 : vector<8x32xf32>
    %cst_294 = arith.constant 1.000000e+00 : f32
    %1184 = vector.broadcast %cst_294 : f32 to vector<8x32xf32>
    %1185 = arith.addf %1184, %1183 : vector<8x32xf32>
    %1186 = arith.divf %1184, %1185 : vector<8x32xf32>
    %1187 = arith.mulf %1178, %1160 : vector<8x32xf32>
    %1188 = arith.mulf %1172, %1180 : vector<8x32xf32>
    %1189 = arith.addf %1187, %1188 : vector<8x32xf32>
    %1190 = math.tanh %1189 : vector<8x32xf32>
    %1191 = arith.mulf %1186, %1190 : vector<8x32xf32>
    %c48_295 = arith.constant 48 : index
    %c0_296 = arith.constant 0 : index
    %1192 = vector.load %arg9[%c48_295, %c0_296] : memref<64x32xf32, #tpu.memory_space<vmem>>, vector<8x32xf32>
    tpu.vector_store %arg9[%c48_295, %c0_296], %1191 {strides = array<i32>} : memref<64x32xf32, #tpu.memory_space<vmem>>, vector<8x32xf32>,
    %1193 = vector.extract_strided_slice %987 {offsets = [56, 0], sizes = [8, 128], strides = [1, 1]} : vector<64x128xf32> to vector<8x128xf32>
    %cst_297 = arith.constant dense<0.000000e+00> : vector<8x128xf32>
    %1194 = tpu.matmul %1191, %981, %cst_297 {dimension_numbers = #tpu.dot_dimension_numbers<[1], [0], [0], [1], [0, 0, 1, 1], [], []>} : vector<8x32xf32>, vector<32x128xf32>, vector<8x128xf32> -> vector<8x128xf32>
    %1195 = arith.addf %1193, %1194 : vector<8x128xf32>
    %1196 = vector.extract_strided_slice %1195 {offsets = [0, 0], sizes = [8, 32], strides = [1, 1]} : vector<8x128xf32> to vector<8x32xf32>
    %1197 = arith.negf %1196 : vector<8x32xf32>
    %1198 = math.exp %1197 : vector<8x32xf32>
    %cst_298 = arith.constant 1.000000e+00 : f32
    %1199 = vector.broadcast %cst_298 : f32 to vector<8x32xf32>
    %1200 = arith.addf %1199, %1198 : vector<8x32xf32>
    %1201 = arith.divf %1199, %1200 : vector<8x32xf32>
    %1202 = vector.extract_strided_slice %1195 {offsets = [0, 32], sizes = [8, 32], strides = [1, 1]} : vector<8x128xf32> to vector<8x32xf32>
    %1203 = arith.negf %1202 : vector<8x32xf32>
    %1204 = math.exp %1203 : vector<8x32xf32>
    %cst_299 = arith.constant 1.000000e+00 : f32
    %1205 = vector.broadcast %cst_299 : f32 to vector<8x32xf32>
    %1206 = arith.addf %1205, %1204 : vector<8x32xf32>
    %1207 = arith.divf %1205, %1206 : vector<8x32xf32>
    %1208 = vector.extract_strided_slice %1195 {offsets = [0, 64], sizes = [8, 32], strides = [1, 1]} : vector<8x128xf32> to vector<8x32xf32>
    %1209 = math.tanh %1208 : vector<8x32xf32>
    %1210 = vector.extract_strided_slice %1195 {offsets = [0, 96], sizes = [8, 32], strides = [1, 1]} : vector<8x128xf32> to vector<8x32xf32>
    %1211 = arith.negf %1210 : vector<8x32xf32>
    %1212 = math.exp %1211 : vector<8x32xf32>
    %cst_300 = arith.constant 1.000000e+00 : f32
    %1213 = vector.broadcast %cst_300 : f32 to vector<8x32xf32>
    %1214 = arith.addf %1213, %1212 : vector<8x32xf32>
    %1215 = arith.divf %1213, %1214 : vector<8x32xf32>
    %1216 = arith.mulf %1207, %1189 : vector<8x32xf32>
    %1217 = arith.mulf %1201, %1209 : vector<8x32xf32>
    %1218 = arith.addf %1216, %1217 : vector<8x32xf32>
    %1219 = math.tanh %1218 : vector<8x32xf32>
    %1220 = arith.mulf %1215, %1219 : vector<8x32xf32>
    %c56_301 = arith.constant 56 : index
    %c0_302 = arith.constant 0 : index
    %1221 = vector.load %arg9[%c56_301, %c0_302] : memref<64x32xf32, #tpu.memory_space<vmem>>, vector<8x32xf32>
    tpu.vector_store %arg9[%c56_301, %c0_302], %1220 {strides = array<i32>} : memref<64x32xf32, #tpu.memory_space<vmem>>, vector<8x32xf32>,
    %c0_303 = arith.constant 0 : index
    %c0_304 = arith.constant 0 : index
    %1222 = vector.load %arg9[%c0_303, %c0_304] : memref<64x32xf32, #tpu.memory_space<vmem>>, vector<64x32xf32>
    %c0_305 = arith.constant 0 : index
    %c0_306 = arith.constant 0 : index
    %1223 = vector.load %arg6[%c0_305, %c0_306] : memref<32x128xf32, #tpu.memory_space<vmem>>, vector<32x128xf32>
    %cst_307 = arith.constant dense<0.000000e+00> : vector<64x128xf32>
    %1224 = tpu.matmul %1222, %1223, %cst_307 {dimension_numbers = #tpu.dot_dimension_numbers<[1], [0], [0], [1], [0, 0, 1, 1], [], []>} : vector<64x32xf32>, vector<32x128xf32>, vector<64x128xf32> -> vector<64x128xf32>
    %c0_308 = arith.constant 0 : index
    %c0_309 = arith.constant 0 : index
    %1225 = vector.load %arg7[%c0_308, %c0_309] : memref<1x128xf32, #tpu.memory_space<vmem>>, vector<1x128xf32>
    %1226 = vector.broadcast %1225 : vector<1x128xf32> to vector<64x128xf32>
    %1227 = arith.addf %1224, %1226 : vector<64x128xf32>
    %c0_310 = arith.constant 0 : index
    %c0_311 = arith.constant 0 : index
    %1228 = vector.load %arg8[%c0_310, %c0_311] : memref<64x128xf32, #tpu.memory_space<vmem>>, vector<64x128xf32>
    tpu.vector_store %arg8[%c0_310, %c0_311], %1227 {strides = array<i32>} : memref<64x128xf32, #tpu.memory_space<vmem>>, vector<64x128xf32>,
    return
  }
}

</mosaic_0001>

<bundles_post_ra>
// kernel: tpu_custom_call.1
= control target key start
LH: loop header
LB: loop body
LE: loop exit
PB: predicated region body
PF: predicated region fallthrough
CT: control target
= control target key end

     0   :  { %13 = vsyncpa [#allocation4], 0  ;;  %s4562_s0 = inlined_call_operand.vmem [shape: f32[64,32], index: 0, kind: input, shape index: {}]   ;;  %s4563_s1 = inlined_call_operand.vmem [shape: f32[8,32], index: 1, kind: input, shape index: {}]   ;;  %s4564_s2 = inlined_call_operand.vmem [shape: f32[8,32], index: 2, kind: input, shape index: {}]   ;;  %s4565_s3 = inlined_call_operand.hbm [shape: f32[5,32,128], index: 3, kind: input, shape index: {}]   ;;  %s4566_s4 = inlined_call_operand.hbm [shape: f32[5,32,128], index: 4, kind: input, shape index: {}]   ;;  %s4567_s5 = inlined_call_operand.vmem [shape: f32[5,1,128], index: 5, kind: input, shape index: {}]   ;;  %s4568_s6 = inlined_call_operand.vmem [shape: f32[32,128], index: 6, kind: input, shape index: {}]   ;;  %s4569_s7 = inlined_call_operand.vmem [shape: f32[1,128], index: 7, kind: input, shape index: {}]   ;;  %s4570_s8 = inlined_call_operand.hbm [shape: f32[64,128], index: 8, kind: output, shape index: {}]  }
   0x1   :  { %14 = vsyncpa [#allocation7], 0 }
   0x2   :  { %15 = vsyncpa [#allocation5], 0  ;;  %s26_s29 = sshll.u32 %s4565_s3, 4  ;;  %s3778_s30 = smov [#allocation3]   ;;  %s27_s29 = int_to_ptr.hbm [resolvable:$true] %s26_s29 }
   0x3   :  { %s28_s9 = sshll.u32 %s3778_s30, 4  ;;  %s39_s12 = sshll.u32 %s4566_s4, 4  ;;  %s29_s9 = int_to_ptr.vmem [resolvable:$true] %s28_s9  ;;  %s40_s12 = int_to_ptr.hbm [resolvable:$true] %s39_s12 }
   0x4   :  { %s3779_s13 = smov 128   ;;  %s3780_s14 = smov 8  }
   0x5   :  { %34 = dma.hbm_to_vmem [thread:$0]  %s27_s29, 2560, %s29_s9, [#allocation4], %s3779_s13, %s3779_s13, %s3780_s14  }
   0x6   :  { %s3781_s15 = smov [#allocation6]  }
   0x7   :  { %s41_s16 = sshll.u32 %s3781_s15, 4  ;;  %s42_s16 = int_to_ptr.vmem [resolvable:$true] %s41_s16 }
   0x8   :  { %47 = dma.hbm_to_vmem [thread:$0]  %s40_s12, 2560, %s42_s16, [#allocation7], %s3779_s13, %s3779_s13, %s3780_s14  }
   0x9   :  { %3772 = dma.done.wait [#allocation4], 2560  }
   0xa   :  { %3773 = vsyncadd [#allocation4], 4294964736 }
   0xb   :  { %3774 = dma.done.wait [#allocation7], 2560  }
   0xc   :  { %3775 = vsyncadd [#allocation7], 4294964736  ;;  %vm70_vm0 = vcmask 261120   ;;  %v82_v0 = vld [vmem:[#allocation3 + $0x18] sm:$0xff]  ;;  %v81_v1 = vld [vmem:[#allocation3 + $0x10] sm:$0xff]  ;;  %s3783_s27 = smov 32  }
   0xd   :  { %3356 = vmatpush.msra.mxu3 %v82_v0  ;;  %v68_v2 = vld [vmem:[%s4562_s0 + $0x30] sm:$0xff]  ;;  %v3846_v3 = vld [vmem:[#allocation6 + $0x18] sm:$0xff]  ;;  %135 = vmatpush.msra.mxu0 %v82_v0  ;;  %v80_v4 = vld [vmem:[#allocation3 + $0x8] sm:$0xff]  ;;  %s3213_s4 = sshll.u32 %s4570_s8, 4  ;;  %s3214_s4 = int_to_ptr.hbm [resolvable:$true] %s3213_s4 }
   0xe   :  { %77 = vst.msk [vmem:[#allocation2 + $0x30] sm:$0xff] %vm70_vm0, %v68_v2  ;;  %v69_v5 = vld [vmem:[%s4562_s0 + $0x38] sm:$0xff]  ;;  %3355 = vmatpush.msra.mxu2 %v82_v0  ;;  %380 = vmatpush.msra.mxu1 %v3846_v3  ;;  %v3853_v6 = vld [vmem:[#allocation6 + $0x10] sm:$0xff]  ;;  %v62_v7 = vld [vmem:[%s4562_s0] sm:$0xff] }
   0xf   :  { %3358 = vmatpush.msra.mxu3 %v81_v1  ;;  %78 = vst.msk [vmem:[#allocation2 + $0x38] sm:$0xff] %vm70_vm0, %v69_v5  ;;  %136 = vmatpush.msra.mxu0 %v81_v1  ;;  %v79_v8 = vld [vmem:[#allocation3] sm:$0xff]  ;;  %v3859_v9 = vld [vmem:[#allocation6 + $0x8] sm:$0xff]  ;;  %v65_v44 = vld [vmem:[%s4562_s0 + $0x18] sm:$0xff] }
  0x10   :  { %71 = vst.msk [vmem:[#allocation2] sm:$0xff] %vm70_vm0, %v62_v7  ;;  %3357 = vmatpush.msra.mxu2 %v81_v1  ;;  %381 = vmatpush.msra.mxu1 %v3853_v6  ;;  %v3865_v10 = vld [vmem:[#allocation6] sm:$0xff]  ;;  %v67_v46 = vld [vmem:[%s4562_s0 + $0x28] sm:$0xff] }
  0x11   :  { %3360 = vmatpush.msra.mxu3 %v80_v4  ;;  %137 = vmatpush.msra.mxu0 %v80_v4  ;;  %v164_v14 = vld [vmem:[%s4563_s1] sm:$0xff]  ;;  %s3782_s1 = smov 64   ;;  %74 = vst.msk [vmem:[#allocation2 + $0x18] sm:$0xff] %vm70_vm0, %v65_v44  ;;  %v63_v52 = vld [vmem:[%s4562_s0 + $0x8] sm:$0xff] }
  0x12   :  { %3359 = vmatpush.msra.mxu2 %v80_v4  ;;  %382 = vmatpush.msra.mxu1 %v3859_v9  ;;  %v3901_v18 = vld [vmem:[%s4567_s5] ss:$0 sm:$0xff]  ;;  %76 = vst.msk [vmem:[#allocation2 + $0x28] sm:$0xff] %vm70_vm0, %v67_v46 }
  0x13   :  { %3362 = vmatpush.msra.mxu3 %v79_v8  ;;  %138 = vmatpush.msra.mxu0 %v79_v8  ;;  %v165_v23 = vld [vmem:[%s4564_s2] sm:$0xff]  ;;  %72 = vst.msk [vmem:[#allocation2 + $0x8] sm:$0xff] %vm70_vm0, %v63_v52 }
  0x14   :  { %3361 = vmatpush.msra.mxu2 %v79_v8  ;;  %383 = vmatpush.msra.mxu1 %v3865_v10  ;;  %v66_v45 = vld [vmem:[%s4562_s0 + $0x20] sm:$0xff] }
  0x15   :  { %181 = vmatpush.msrb.mxu3 %v3846_v3  ;;  %v94_v11 = vld [vmem:[#allocation2 + $0x30] sm:$0xff]  ;;  %75 = vst.msk [vmem:[#allocation2 + $0x20] sm:$0xff] %vm70_vm0, %v66_v45 }
  0x16   :  { %250 = vmatpush.msrb.mxu2 %v3846_v3  ;;  %3233 = vmatmul.msk.f32.vlgmr.msra.gmra.mxu3 %vm70_vm0, %v94_v11  ;;  %v95_v13 = vld [vmem:[#allocation2 + $0x38] sm:$0xff] }
  0x17   :  { %575 = vmatpush.msrb.mxu1 %v3846_v3  ;;  %182 = vmatpush.msrb.mxu3 %v3853_v6  ;;  %v88_v12 = vld [vmem:[#allocation2] sm:$0xff] }
  0x18   :  { %251 = vmatpush.msrb.mxu2 %v3853_v6  ;;  %3227 = vmatmul.msk.f32.vlgmr.msra.gmra.mxu0 %vm70_vm0, %v88_v12  ;;  %v91_v47 = vld [vmem:[#allocation2 + $0x18] sm:$0xff] }
  0x19   :  { %576 = vmatpush.msrb.mxu1 %v3853_v6  ;;  %183 = vmatpush.msrb.mxu3 %v3859_v9  ;;  %v93_v49 = vld [vmem:[#allocation2 + $0x28] sm:$0xff] }
  0x1a   :  { %252 = vmatpush.msrb.mxu2 %v3859_v9  ;;  %v89_v53 = vld [vmem:[#allocation2 + $0x8] sm:$0xff] }
  0x1b   :  { %577 = vmatpush.msrb.mxu1 %v3859_v9  ;;  %184 = vmatpush.msrb.mxu3 %v3865_v10 }
  0x1c   :  { %253 = vmatpush.msrb.mxu2 %v3865_v10  ;;  %v92_v48 = vld [vmem:[#allocation2 + $0x20] sm:$0xff] }
  0x1d   :  { %315 = vmatpush.msra.mxu3 %v3846_v3  ;;  %578 = vmatpush.msrb.mxu1 %v3865_v10 }
  0x1e   :  { %3234 = vmatmul.msk.f32.gmra.mxu3 %vm70_vm0, %v95_v13  ;;  %3230 = vmatmul.msk.f32.vlgmr.msra.gmra.mxu2 %vm70_vm0, %v91_v47 }
  0x1f   :  { %316 = vmatpush.msra.mxu3 %v3853_v6  ;;  %445 = vmatpush.msra.mxu2 %v3846_v3 }
  0x20   :  { %3228 = vmatmul.msk.f32.gmra.mxu0 %vm70_vm0, %v89_v53 }
  0x21   :  { %317 = vmatpush.msra.mxu3 %v3859_v9  ;;  %446 = vmatpush.msra.mxu2 %v3853_v6 }
  0x23   :  { %318 = vmatpush.msra.mxu3 %v3865_v10  ;;  %447 = vmatpush.msra.mxu2 %v3859_v9 }
  0x25   :  { %448 = vmatpush.msra.mxu2 %v3865_v10 }
  0x26   :  { %3235 = vmatmul.msk.f32.vlgmr.msrb.gmra.mxu3 %vm70_vm0, %v164_v14  ;;  %3231 = vmatmul.msk.f32.gmra.mxu2 %vm70_vm0, %v92_v48 }
  0x27   :  { %510 = vmatpush.msrb.mxu3 %v3846_v3 }
  0x29   :  { %511 = vmatpush.msrb.mxu3 %v3853_v6 }
  0x2b   :  { %512 = vmatpush.msrb.mxu3 %v3859_v9 }
  0x2d   :  { %513 = vmatpush.msrb.mxu3 %v3865_v10 }
  0x2e   :  { %3232 = vmatmul.msk.f32.gmra.mxu2 %vm70_vm0, %v93_v49 }
  0x95   :  { %v140_v17 = vpop.f32.mrf.mxu0 }
  0x96   :  { %v141_v19 = vadd.f32 %v3901_v18, %v140_v17 }
  0x99   :  { %v3894_v15 = vpop.f32.mrf.mxu3 }
  0x9d   :  { %v143_v58 = vpop.f32.mrf.mxu0 }
  0x9e   :  { %v144_v59 = vadd.f32 %v3901_v18, %v143_v58 }
  0xa1   :  { %v3896_v16 = vpop.f32.mrf.mxu3  ;;  %v3945_v55 = vpop.f32.mrf.mxu2 }
  0xa2   :  { %v150_v53 = vadd.f32 %v3901_v18, %v3945_v55 }
  0xa9   :  { %v186_v20 = vpop.f32.mrf.mxu3  ;;  %v3947_v56 = vpop.f32.mrf.mxu2 }
  0xaa   :  { %v189_v21 = vadd.f32 %v186_v20, %v141_v19 }
  0xac   :  { %3377 = vtanh.f32 %v189_v21  ;;  %v3236_v24 = vmul.f32 -1.442695, %v189_v21 }
  0xae   :  { %3379 = vpow2.f32 %v3236_v24 }
  0xb1   :  { %v3949_v57 = vpop.f32.mrf.mxu2 }
  0xb2   :  { %v3378_v22 = vpop.eup %3377 }
  0xb3   :  { %216 = vrot.lane.b32.xlu0 %v3378_v22, %s3782_s1 }
  0xb4   :  { %v3380_v25 = vpop.eup %3379 }
  0xb5   :  { %v193_v26 = vadd.f32 1.0, %v3380_v25 }
  0xb7   :  { %3381 = vrcp.f32 %v193_v26  ;;  %v205_v32 = vand.u32 2147483648, %v193_v26  ;;  %vm199_vm2 = vweird.f32 %v193_v26  ;;  %v203_v33 = vand.u32 2147483647, %v193_v26 }
  0xb9   :  { %v206_v35 = vor.u32 1.1754944e-38, %v205_v32  ;;  %vm204_vm4 = vcmp.eq.f32.partialorder %v203_v33, 8.507059e+37 }
  0xbb   :  { %211 = vrot.lane.b32.xlu0 %v165_v23, %s3783_s27  ;;  %v64_v23 = vld [vmem:[%s4562_s0 + $0x10] sm:$0xff] }
  0xbc   :  { %73 = vst.msk [vmem:[#allocation2 + $0x10] sm:$0xff] %vm70_vm0, %v64_v23 }
  0xbd   :  { %v3382_v27 = vpop.eup %3381 }
  0xbe   :  { %v195_v28 = vmul.f32 %v3382_v27, %v193_v26  ;;  %vm200_vm1 = vweird.f32 %v3382_v27 }
  0xbf   :  { %vm201_vm3 = vmor %vm199_vm2, %vm200_vm1 }
  0xc0   :  { %v196_v29 = vsub.f32 1.0, %v195_v28 }
  0xc2   :  { %v197_v30 = vmul.f32 %v3382_v27, %v196_v29 }
  0xc3   :  { %v90_v24 = vld [vmem:[#allocation2 + $0x10] sm:$0xff] }
  0xc4   :  { %v198_v31 = vadd.f32 %v3382_v27, %v197_v30  ;;  %3229 = vmatmul.msk.f32.gmra.mxu0 %vm70_vm0, %v90_v24 }
  0xc6   :  { %v202_v34 = vsel %vm201_vm3, %v3382_v27, %v198_v31 }
  0xc7   :  { %v207_v37 = vsel %vm204_vm4, %v206_v35, %v202_v34 }
 0x125   :  { %v217_v36 = vpop.permute.xlu0 %216 }
 0x126   :  { %v219_v38 = vmul.f32 %v217_v36, %v207_v37 }
 0x128   :  { %221 = vrot.lane.b32.xlu1 %v219_v38, %s3783_s27 }
 0x12d   :  { %v212_v39 = vpop.permute.xlu0 %211 }
 0x12e   :  { %v214_v40 = vmul.f32 %v212_v39, %v207_v37 }
 0x141   :  { %v146_v26 = vpop.f32.mrf.mxu0 }
 0x142   :  { %v147_v27 = vadd.f32 %v3901_v18, %v146_v26 }
 0x19a   :  { %v222_v41 = vpop.permute.xlu1 %221 }
 0x19b   :  { %v3910_v42 = vadd.f32 %v222_v41, %v214_v40 }
 0x19d   :  { %3383 = vtanh.f32 %v3910_v42 }
 0x1a3   :  { %v3384_v43 = vpop.eup %3383 }
 0x1a4   :  { %227 = vrot.lane.b32.xlu1 %v3384_v43, %s3782_s1 }
 0x216   :  { %v228_v50 = vpop.permute.xlu1 %227 }
 0x217   :  { %v230_v51 = vmul.f32 %v228_v50, %v207_v37 }
 0x219   :  { %232 = vrot.lane.b32.xlu2 %v230_v51, %s3783_s27 }
 0x273   :  { %v233_v54 = vpop.permute.xlu2 %232 }
 0x274   :  { %235 = vst.msk [vmem:[#allocation2] sm:$0xff] %vm70_vm0, %v233_v54  ;;  %3237 = vmatmul.msk.f32.vlgmr.msrb.gmra.mxu2 %vm70_vm0, %v233_v54 }
 0x275   :  { %640 = vmatpush.msrb.mxu2 %v3846_v3 }
 0x277   :  { %641 = vmatpush.msrb.mxu2 %v3853_v6 }
 0x279   :  { %642 = vmatpush.msrb.mxu2 %v3859_v9 }
 0x27b   :  { %643 = vmatpush.msrb.mxu2 %v3865_v10 }
 0x2f7   :  { %v255_v60 = vpop.f32.mrf.mxu2 }
 0x2f8   :  { %v258_v61 = vadd.f32 %v255_v60, %v144_v59 }
 0x2fa   :  { %3385 = vtanh.f32 %v258_v61  ;;  %v3238_v63 = vmul.f32 -1.442695, %v258_v61 }
 0x2fc   :  { %3387 = vpow2.f32 %v3238_v63 }
 0x300   :  { %v3386_v62 = vpop.eup %3385 }
 0x301   :  { %281 = vrot.lane.b32.xlu2 %v3386_v62, %s3782_s1 }
 0x302   :  { %v3388_v0 = vpop.eup %3387 }
 0x303   :  { %v262_v1 = vadd.f32 1.0, %v3388_v0 }
 0x305   :  { %3389 = vrcp.f32 %v262_v1  ;;  %v274_v7 = vand.u32 2147483648, %v262_v1  ;;  %vm268_vm6 = vweird.f32 %v262_v1  ;;  %v272_v8 = vand.u32 2147483647, %v262_v1 }
 0x307   :  { %v275_v10 = vor.u32 1.1754944e-38, %v274_v7  ;;  %vm273_vm8 = vcmp.eq.f32.partialorder %v272_v8, 8.507059e+37 }
 0x30b   :  { %v3390_v2 = vpop.eup %3389 }
 0x30c   :  { %v264_v3 = vmul.f32 %v3390_v2, %v262_v1  ;;  %vm269_vm5 = vweird.f32 %v3390_v2 }
 0x30d   :  { %vm270_vm7 = vmor %vm268_vm6, %vm269_vm5 }
 0x30e   :  { %v265_v4 = vsub.f32 1.0, %v264_v3 }
 0x310   :  { %v266_v5 = vmul.f32 %v3390_v2, %v265_v4 }
 0x312   :  { %v267_v6 = vadd.f32 %v3390_v2, %v266_v5 }
 0x314   :  { %v271_v9 = vsel %vm270_vm7, %v3390_v2, %v267_v6 }
 0x315   :  { %v276_v12 = vsel %vm273_vm8, %v275_v10, %v271_v9 }
 0x316   :  { %v279_v14 = vmul.f32 %v276_v12, %v3910_v42 }
 0x35b   :  { %v282_v11 = vpop.permute.xlu2 %281 }
 0x35c   :  { %v284_v13 = vmul.f32 %v282_v11, %v276_v12 }
 0x35e   :  { %286 = vrot.lane.b32.xlu0 %v284_v13, %s3783_s27 }
 0x3d0   :  { %v287_v17 = vpop.permute.xlu0 %286 }
 0x3d1   :  { %v289_v19 = vadd.f32 %v287_v17, %v279_v14 }
 0x3d3   :  { %3391 = vtanh.f32 %v289_v19 }
 0x3d9   :  { %v3392_v20 = vpop.eup %3391 }
 0x3da   :  { %292 = vrot.lane.b32.xlu1 %v3392_v20, %s3782_s1  ;;  %v153_v20 = vadd.f32 %v3901_v18, %v3947_v56 }
 0x44c   :  { %v293_v21 = vpop.permute.xlu1 %292 }
 0x44d   :  { %v295_v22 = vmul.f32 %v293_v21, %v276_v12 }
 0x44f   :  { %297 = vrot.lane.b32.xlu2 %v295_v22, %s3783_s27 }
 0x4a9   :  { %v298_v25 = vpop.permute.xlu2 %297 }
 0x4aa   :  { %300 = vst.msk [vmem:[#allocation2 + $0x8] sm:$0xff] %vm70_vm0, %v298_v25  ;;  %3239 = vmatmul.msk.f32.vlgmr.msra.gmra.mxu3 %vm70_vm0, %v298_v25 }
 0x52d   :  { %v320_v28 = vpop.f32.mrf.mxu3 }
 0x52e   :  { %v323_v29 = vadd.f32 %v320_v28, %v147_v27 }
 0x530   :  { %3393 = vtanh.f32 %v323_v29  ;;  %v3240_v31 = vmul.f32 -1.442695, %v323_v29 }
 0x532   :  { %3395 = vpow2.f32 %v3240_v31 }
 0x536   :  { %v3394_v30 = vpop.eup %3393 }
 0x537   :  { %346 = vrot.lane.b32.xlu0 %v3394_v30, %s3782_s1 }
 0x538   :  { %v3396_v32 = vpop.eup %3395 }
 0x539   :  { %v327_v33 = vadd.f32 1.0, %v3396_v32 }
 0x53b   :  { %3397 = vrcp.f32 %v327_v33  ;;  %v339_v39 = vand.u32 2147483648, %v327_v33  ;;  %vm333_vm10 = vweird.f32 %v327_v33  ;;  %v337_v40 = vand.u32 2147483647, %v327_v33 }
 0x53d   :  { %v340_v42 = vor.u32 1.1754944e-38, %v339_v39  ;;  %vm338_vm12 = vcmp.eq.f32.partialorder %v337_v40, 8.507059e+37 }
 0x541   :  { %v3398_v34 = vpop.eup %3397 }
 0x542   :  { %v329_v35 = vmul.f32 %v3398_v34, %v327_v33  ;;  %vm334_vm9 = vweird.f32 %v3398_v34 }
 0x543   :  { %vm335_vm11 = vmor %vm333_vm10, %vm334_vm9 }
 0x544   :  { %v330_v36 = vsub.f32 1.0, %v329_v35 }
 0x546   :  { %v331_v37 = vmul.f32 %v3398_v34, %v330_v36 }
 0x548   :  { %v332_v38 = vadd.f32 %v3398_v34, %v331_v37 }
 0x54a   :  { %v336_v41 = vsel %vm335_vm11, %v3398_v34, %v332_v38 }
 0x54b   :  { %v341_v44 = vsel %vm338_vm12, %v340_v42, %v336_v41 }
 0x54c   :  { %v344_v46 = vmul.f32 %v341_v44, %v289_v19 }
 0x5a9   :  { %v347_v43 = vpop.permute.xlu0 %346 }
 0x5aa   :  { %v349_v45 = vmul.f32 %v347_v43, %v341_v44 }
 0x5ac   :  { %351 = vrot.lane.b32.xlu1 %v349_v45, %s3783_s27  ;;  %v694_v45 = vld [vmem:[#allocation3 + $0x30] sm:$0xff] }
 0x61e   :  { %v352_v47 = vpop.permute.xlu1 %351 }
 0x61f   :  { %v354_v48 = vadd.f32 %v352_v47, %v344_v46  ;;  %v693_v46 = vld [vmem:[#allocation3 + $0x28] sm:$0xff]  ;;  %v692_v47 = vld [vmem:[#allocation3 + $0x20] sm:$0xff] }
 0x621   :  { %3399 = vtanh.f32 %v354_v48 }
 0x627   :  { %v3400_v49 = vpop.eup %3399 }
 0x628   :  { %357 = vrot.lane.b32.xlu2 %v3400_v49, %s3782_s1  ;;  %v703_v49 = vld [vmem:[#allocation2] sm:$0xff] }
 0x682   :  { %v358_v50 = vpop.permute.xlu2 %357 }
 0x683   :  { %v360_v51 = vmul.f32 %v358_v50, %v341_v44  ;;  %v695_v44 = vld [vmem:[#allocation3 + $0x38] sm:$0xff]  ;;  %v704_v50 = vld [vmem:[#allocation2 + $0x8] sm:$0xff] }
 0x684   :  { %750 = vmatpush.msra.mxu3 %v695_v44 }
 0x685   :  { %362 = vrot.lane.b32.xlu0 %v360_v51, %s3783_s27 }
 0x686   :  { %751 = vmatpush.msra.mxu3 %v694_v45 }
 0x688   :  { %752 = vmatpush.msra.mxu3 %v693_v46 }
 0x68a   :  { %753 = vmatpush.msra.mxu3 %v692_v47 }
 0x6f7   :  { %v363_v52 = vpop.permute.xlu0 %362 }
 0x6f8   :  { %365 = vst.msk [vmem:[#allocation2 + $0x10] sm:$0xff] %vm70_vm0, %v363_v52  ;;  %3241 = vmatmul.msk.f32.vlgmr.msra.gmra.mxu1 %vm70_vm0, %v363_v52 }
 0x6ff   :  { %v705_v51 = vld [vmem:[#allocation2 + $0x10] sm:$0xff] }
 0x775   :  { %v385_v54 = vpop.f32.mrf.mxu1 }
 0x776   :  { %v388_v58 = vadd.f32 %v385_v54, %v150_v53  ;;  %v156_v54 = vadd.f32 %v3901_v18, %v3949_v57 }
 0x778   :  { %3401 = vtanh.f32 %v388_v58  ;;  %v3242_v60 = vmul.f32 -1.442695, %v388_v58 }
 0x77a   :  { %3403 = vpow2.f32 %v3242_v60 }
 0x77e   :  { %v3402_v59 = vpop.eup %3401 }
 0x77f   :  { %411 = vrot.lane.b32.xlu1 %v3402_v59, %s3782_s1 }
 0x780   :  { %v3404_v61 = vpop.eup %3403 }
 0x781   :  { %v392_v62 = vadd.f32 1.0, %v3404_v61 }
 0x783   :  { %3405 = vrcp.f32 %v392_v62  ;;  %v404_v4 = vand.u32 2147483648, %v392_v62  ;;  %vm398_vm14 = vweird.f32 %v392_v62  ;;  %v402_v55 = vand.u32 2147483647, %v392_v62 }
 0x785   :  { %v405_v6 = vor.u32 1.1754944e-38, %v404_v4  ;;  %vm403_vm1 = vcmp.eq.f32.partialorder %v402_v55, 8.507059e+37 }
 0x789   :  { %v3406_v63 = vpop.eup %3405 }
 0x78a   :  { %v394_v0 = vmul.f32 %v3406_v63, %v392_v62  ;;  %vm399_vm13 = vweird.f32 %v3406_v63 }
 0x78b   :  { %vm400_vm15 = vmor %vm398_vm14, %vm399_vm13 }
 0x78c   :  { %v395_v1 = vsub.f32 1.0, %v394_v0 }
 0x78e   :  { %v396_v2 = vmul.f32 %v3406_v63, %v395_v1 }
 0x790   :  { %v397_v3 = vadd.f32 %v3406_v63, %v396_v2 }
 0x792   :  { %v401_v5 = vsel %vm400_vm15, %v3406_v63, %v397_v3 }
 0x793   :  { %v406_v8 = vsel %vm403_vm1, %v405_v6, %v401_v5 }
 0x794   :  { %v409_v10 = vmul.f32 %v406_v8, %v354_v48 }
 0x7f1   :  { %v412_v7 = vpop.permute.xlu1 %411 }
 0x7f2   :  { %v414_v9 = vmul.f32 %v412_v7, %v406_v8 }
 0x7f4   :  { %416 = vrot.lane.b32.xlu2 %v414_v9, %s3783_s27 }
 0x84e   :  { %v417_v11 = vpop.permute.xlu2 %416 }
 0x84f   :  { %v419_v12 = vadd.f32 %v417_v11, %v409_v10 }
 0x851   :  { %3407 = vtanh.f32 %v419_v12 }
 0x857   :  { %v3408_v13 = vpop.eup %3407 }
 0x858   :  { %422 = vrot.lane.b32.xlu0 %v3408_v13, %s3782_s1 }
 0x8ca   :  { %v423_v14 = vpop.permute.xlu0 %422 }
 0x8cb   :  { %v425_v17 = vmul.f32 %v423_v14, %v406_v8 }
 0x8cd   :  { %427 = vrot.lane.b32.xlu1 %v425_v17, %s3783_s27 }
 0x93f   :  { %v428_v19 = vpop.permute.xlu1 %427 }
 0x940   :  { %430 = vst.msk [vmem:[#allocation2 + $0x18] sm:$0xff] %vm70_vm0, %v428_v19  ;;  %3243 = vmatmul.msk.f32.vlgmr.msra.gmra.mxu2 %vm70_vm0, %v428_v19  ;;  %v4001_v19 = vld [vmem:[#allocation6 + $0x38] sm:$0xff] }
 0x941   :  { %794 = vmatpush.msra.mxu1 %v4001_v19  ;;  %859 = vmatpush.msra.mxu2 %v4001_v19 }
 0x947   :  { %v706_v52 = vld [vmem:[#allocation2 + $0x18] sm:$0xff] }
 0x9c3   :  { %v450_v21 = vpop.f32.mrf.mxu2 }
 0x9c4   :  { %v453_v22 = vadd.f32 %v450_v21, %v153_v20  ;;  %v4003_v20 = vld [vmem:[#allocation6 + $0x30] sm:$0xff]  ;;  %v4007_v21 = vld [vmem:[#allocation6 + $0x28] sm:$0xff] }
 0x9c5   :  { %795 = vmatpush.msra.mxu1 %v4003_v20  ;;  %860 = vmatpush.msra.mxu2 %v4003_v20 }
 0x9c6   :  { %3409 = vtanh.f32 %v453_v22  ;;  %v3244_v24 = vmul.f32 -1.442695, %v453_v22  ;;  %v4011_v22 = vld [vmem:[#allocation6 + $0x20] sm:$0xff] }
 0x9c7   :  { %796 = vmatpush.msra.mxu1 %v4007_v21  ;;  %861 = vmatpush.msra.mxu2 %v4007_v21 }
 0x9c8   :  { %3411 = vpow2.f32 %v3244_v24 }
 0x9c9   :  { %797 = vmatpush.msra.mxu1 %v4011_v22  ;;  %862 = vmatpush.msra.mxu2 %v4011_v22 }
 0x9cc   :  { %v3410_v23 = vpop.eup %3409 }
 0x9cd   :  { %476 = vrot.lane.b32.xlu2 %v3410_v23, %s3782_s1 }
 0x9ce   :  { %v3412_v25 = vpop.eup %3411 }
 0x9cf   :  { %v457_v26 = vadd.f32 1.0, %v3412_v25  ;;  %v3784_v25 = vmov 0.0  }
 0x9d1   :  { %3413 = vrcp.f32 %v457_v26  ;;  %v469_v32 = vand.u32 2147483648, %v457_v26  ;;  %vm463_vm3 = vweird.f32 %v457_v26  ;;  %v467_v56 = vand.u32 2147483647, %v457_v26 }
 0x9d3   :  { %v470_v34 = vor.u32 1.1754944e-38, %v469_v32  ;;  %vm468_vm5 = vcmp.eq.f32.partialorder %v467_v56, 8.507059e+37 }
 0x9d7   :  { %v3414_v27 = vpop.eup %3413 }
 0x9d8   :  { %v459_v28 = vmul.f32 %v3414_v27, %v457_v26  ;;  %vm464_vm2 = vweird.f32 %v3414_v27  ;;  %v159_v26 = vadd.f32 %v3901_v18, %v3894_v15 }
 0x9d9   :  { %vm465_vm4 = vmor %vm463_vm3, %vm464_vm2 }
 0x9da   :  { %v460_v29 = vsub.f32 1.0, %v459_v28 }
 0x9dc   :  { %v461_v30 = vmul.f32 %v3414_v27, %v460_v29  ;;  %v4034_v29 = vld [vmem:[%s4567_s5 + $0x1] ss:$0 sm:$0xff] }
 0x9de   :  { %v462_v31 = vadd.f32 %v3414_v27, %v461_v30 }
 0x9e0   :  { %v466_v33 = vsel %vm465_vm4, %v3414_v27, %v462_v31 }
 0x9e1   :  { %v471_v36 = vsel %vm468_vm5, %v470_v34, %v466_v33 }
 0x9e2   :  { %v474_v38 = vmul.f32 %v471_v36, %v419_v12 }
 0xa27   :  { %v477_v35 = vpop.permute.xlu2 %476 }
 0xa28   :  { %v479_v37 = vmul.f32 %v477_v35, %v471_v36 }
 0xa2a   :  { %481 = vrot.lane.b32.xlu0 %v479_v37, %s3783_s27 }
 0xa9c   :  { %v482_v39 = vpop.permute.xlu0 %481 }
 0xa9d   :  { %v484_v40 = vadd.f32 %v482_v39, %v474_v38 }
 0xa9f   :  { %3415 = vtanh.f32 %v484_v40 }
 0xaa5   :  { %v3416_v41 = vpop.eup %3415 }
 0xaa6   :  { %487 = vrot.lane.b32.xlu1 %v3416_v41, %s3782_s1 }
 0xb18   :  { %v488_v42 = vpop.permute.xlu1 %487 }
 0xb19   :  { %v490_v43 = vmul.f32 %v488_v42, %v471_v36 }
 0xb1b   :  { %492 = vrot.lane.b32.xlu2 %v490_v43, %s3783_s27 }
 0xb75   :  { %v493_v48 = vpop.permute.xlu2 %492 }
 0xb76   :  { %495 = vst.msk [vmem:[#allocation2 + $0x20] sm:$0xff] %vm70_vm0, %v493_v48  ;;  %3245 = vmatmul.msk.f32.vlgmr.msrb.gmra.mxu3 %vm70_vm0, %v493_v48 }
 0xb7d   :  { %v707_v53 = vld [vmem:[#allocation2 + $0x20] sm:$0xff] }
 0xb7e   :  { %3252 = vmatmul.msk.f32.vlgmr.msra.gmra.mxu3 %vm70_vm0, %v703_v49 }
 0xb86   :  { %3253 = vmatmul.msk.f32.gmra.mxu3 %vm70_vm0, %v704_v50 }
 0xb8e   :  { %3254 = vmatmul.msk.f32.gmra.mxu3 %vm70_vm0, %v705_v51 }
 0xb96   :  { %3255 = vmatmul.msk.f32.gmra.mxu3 %vm70_vm0, %v706_v52 }
 0xb9e   :  { %3256 = vmatmul.msk.f32.gmra.mxu3 %vm70_vm0, %v707_v53 }
 0xbf9   :  { %v515_v58 = vpop.f32.mrf.mxu3 }
 0xbfa   :  { %v518_v59 = vadd.f32 %v515_v58, %v156_v54 }
 0xbfc   :  { %3417 = vtanh.f32 %v518_v59  ;;  %v3246_v61 = vmul.f32 -1.442695, %v518_v59 }
 0xbfe   :  { %3419 = vpow2.f32 %v3246_v61 }
 0xc01   :  { %v755_v30 = vpop.f32.mrf.mxu3 }
 0xc02   :  { %v3418_v60 = vpop.eup %3417  ;;  %v756_v31 = vadd.f32 %v4034_v29, %v755_v30 }
 0xc03   :  { %541 = vrot.lane.b32.xlu0 %v3418_v60, %s3782_s1 }
 0xc04   :  { %v3420_v62 = vpop.eup %3419 }
 0xc05   :  { %v522_v63 = vadd.f32 1.0, %v3420_v62 }
 0xc07   :  { %3421 = vrcp.f32 %v522_v63  ;;  %v534_v55 = vand.u32 2147483648, %v522_v63  ;;  %vm528_vm7 = vweird.f32 %v522_v63  ;;  %v532_v57 = vand.u32 2147483647, %v522_v63 }
 0xc09   :  { %v535_v6 = vor.u32 1.1754944e-38, %v534_v55  ;;  %vm533_vm9 = vcmp.eq.f32.partialorder %v532_v57, 8.507059e+37 }
 0xc0d   :  { %v3422_v0 = vpop.eup %3421 }
 0xc0e   :  { %v524_v1 = vmul.f32 %v3422_v0, %v522_v63  ;;  %vm529_vm6 = vweird.f32 %v3422_v0 }
 0xc0f   :  { %vm530_vm8 = vmor %vm528_vm7, %vm529_vm6 }
 0xc10   :  { %v525_v2 = vsub.f32 1.0, %v524_v1 }
 0xc12   :  { %v526_v3 = vmul.f32 %v3422_v0, %v525_v2 }
 0xc14   :  { %v527_v4 = vadd.f32 %v3422_v0, %v526_v3 }
 0xc16   :  { %v531_v5 = vsel %vm530_vm8, %v3422_v0, %v527_v4 }
 0xc17   :  { %v536_v8 = vsel %vm533_vm9, %v535_v6, %v531_v5 }
 0xc18   :  { %v539_v10 = vmul.f32 %v536_v8, %v484_v40 }
 0xc75   :  { %v542_v7 = vpop.permute.xlu0 %541 }
 0xc76   :  { %v544_v9 = vmul.f32 %v542_v7, %v536_v8 }
 0xc78   :  { %546 = vrot.lane.b32.xlu1 %v544_v9, %s3783_s27 }
 0xcea   :  { %v547_v11 = vpop.permute.xlu1 %546 }
 0xceb   :  { %v3996_v12 = vadd.f32 %v547_v11, %v539_v10 }
 0xced   :  { %3423 = vtanh.f32 %v3996_v12 }
 0xcf3   :  { %v3424_v13 = vpop.eup %3423 }
 0xcf4   :  { %552 = vrot.lane.b32.xlu2 %v3424_v13, %s3782_s1 }
 0xd4e   :  { %v553_v14 = vpop.permute.xlu2 %552 }
 0xd4f   :  { %v555_v17 = vmul.f32 %v553_v14, %v536_v8 }
 0xd51   :  { %557 = vrot.lane.b32.xlu0 %v555_v17, %s3783_s27 }
 0xdc3   :  { %v558_v23 = vpop.permute.xlu0 %557 }
 0xdc4   :  { %560 = vst.msk [vmem:[#allocation2 + $0x28] sm:$0xff] %vm70_vm0, %v558_v23  ;;  %3247 = vmatmul.msk.f32.vlgmr.msrb.gmra.mxu1 %vm70_vm0, %v558_v23  ;;  %v162_v23 = vadd.f32 %v3901_v18, %v3896_v16 }
 0xdc5   :  { %924 = vmatpush.msrb.mxu1 %v4001_v19 }
 0xdc7   :  { %925 = vmatpush.msrb.mxu1 %v4003_v20 }
 0xdc9   :  { %926 = vmatpush.msrb.mxu1 %v4007_v21 }
 0xdcb   :  { %v708_v24 = vld [vmem:[#allocation2 + $0x28] sm:$0xff]  ;;  %927 = vmatpush.msrb.mxu1 %v4011_v22 }
 0xdcc   :  { %3257 = vmatmul.msk.f32.gmra.mxu3 %vm70_vm0, %v708_v24  ;;  %798 = vmatmul.f32.vlgmr.msra.gmra.mxu1 %v3784_v25 }
 0xdcd   :  { %1054 = vmatpush.msra.mxu1 %v4001_v19 }
 0xdcf   :  { %1055 = vmatpush.msra.mxu1 %v4003_v20 }
 0xdd1   :  { %1056 = vmatpush.msra.mxu1 %v4007_v21 }
 0xdd3   :  { %1057 = vmatpush.msra.mxu1 %v4011_v22 }
 0xe41   :  { %v580_v27 = vpop.f32.mrf.mxu1 }
 0xe42   :  { %v583_v28 = vadd.f32 %v580_v27, %v159_v26  ;;  %v758_v27 = vpop.f32.mrf.mxu3 }
 0xe44   :  { %3425 = vtanh.f32 %v583_v28  ;;  %v3248_v37 = vmul.f32 -1.442695, %v583_v28  ;;  %v759_v28 = vadd.f32 %v4034_v29, %v758_v27 }
 0xe49   :  { %v799_v32 = vpop.f32.mrf.mxu1 }
 0xe4a   :  { %v3426_v56 = vpop.eup %3425  ;;  %v802_v33 = vadd.f32 %v799_v32, %v756_v31 }
 0xe4b   :  { %606 = vrot.lane.b32.xlu1 %v3426_v56, %s3782_s1 }
 0xe4c   :  { %3427 = vtanh.f32 %v802_v33  ;;  %v3260_v15 = vmul.f32 -1.442695, %v802_v33 }
 0xe4e   :  { %3429 = vpow2.f32 %v3260_v15 }
 0xe52   :  { %v3428_v34 = vpop.eup %3427 }
 0xe53   :  { %825 = vrot.lane.b32.xlu2 %v3428_v34, %s3782_s1 }
 0xe54   :  { %v3430_v35 = vpop.eup %3429 }
 0xe55   :  { %v806_v36 = vadd.f32 1.0, %v3430_v35 }
 0xe57   :  { %3431 = vrcp.f32 %v806_v36  ;;  %v818_v46 = vand.u32 2147483648, %v806_v36  ;;  %vm812_vm11 = vweird.f32 %v806_v36  ;;  %v816_v47 = vand.u32 2147483647, %v806_v36 }
 0xe58   :  { %3433 = vpow2.f32 %v3248_v37 }
 0xe59   :  { %v819_v50 = vor.u32 1.1754944e-38, %v818_v46  ;;  %vm817_vm13 = vcmp.eq.f32.partialorder %v816_v47, 8.507059e+37 }
 0xe5d   :  { %v3432_v38 = vpop.eup %3431 }
 0xe5e   :  { %v3434_v39 = vpop.eup %3433  ;;  %v808_v40 = vmul.f32 %v3432_v38, %v806_v36  ;;  %vm813_vm10 = vweird.f32 %v3432_v38 }
 0xe5f   :  { %v587_v41 = vadd.f32 1.0, %v3434_v39  ;;  %vm814_vm12 = vmor %vm812_vm11, %vm813_vm10 }
 0xe60   :  { %v809_v42 = vsub.f32 1.0, %v808_v40 }
 0xe61   :  { %3435 = vrcp.f32 %v587_v41  ;;  %v599_v60 = vand.u32 2147483648, %v587_v41  ;;  %vm593_vm15 = vweird.f32 %v587_v41  ;;  %v597_v61 = vand.u32 2147483647, %v587_v41 }
 0xe62   :  { %v810_v43 = vmul.f32 %v3432_v38, %v809_v42 }
 0xe63   :  { %v600_v63 = vor.u32 1.1754944e-38, %v599_v60  ;;  %vm598_vm2 = vcmp.eq.f32.partialorder %v597_v61, 8.507059e+37 }
 0xe64   :  { %v811_v44 = vadd.f32 %v3432_v38, %v810_v43 }
 0xe66   :  { %v815_v48 = vsel %vm814_vm12, %v3432_v38, %v811_v44 }
 0xe67   :  { %v3436_v45 = vpop.eup %3435  ;;  %v820_v52 = vsel %vm817_vm13, %v819_v50, %v815_v48 }
 0xe68   :  { %v589_v49 = vmul.f32 %v3436_v45, %v587_v41  ;;  %vm594_vm14 = vweird.f32 %v3436_v45  ;;  %v823_v3 = vmul.f32 0.0, %v820_v52 }
 0xe69   :  { %vm595_vm1 = vmor %vm593_vm15, %vm594_vm14 }
 0xe6a   :  { %v590_v54 = vsub.f32 1.0, %v589_v49 }
 0xe6c   :  { %v591_v58 = vmul.f32 %v3436_v45, %v590_v54 }
 0xe6e   :  { %v592_v59 = vadd.f32 %v3436_v45, %v591_v58 }
 0xe70   :  { %v596_v62 = vsel %vm595_vm1, %v3436_v45, %v592_v59 }
 0xe71   :  { %v601_v1 = vsel %vm598_vm2, %v600_v63, %v596_v62 }
 0xe72   :  { %v604_v5 = vmul.f32 %v601_v1, %v3996_v12 }
 0xead   :  { %v826_v51 = vpop.permute.xlu2 %825 }
 0xeae   :  { %v828_v53 = vmul.f32 %v826_v51, %v820_v52  ;;  %v761_v51 = vpop.f32.mrf.mxu3 }
 0xeb0   :  { %830 = vrot.lane.b32.xlu1 %v828_v53, %s3783_s27 }
 0xebd   :  { %v607_v0 = vpop.permute.xlu1 %606 }
 0xebe   :  { %v609_v2 = vmul.f32 %v607_v0, %v601_v1 }
 0xec0   :  { %611 = vrot.lane.b32.xlu0 %v609_v2, %s3783_s27 }
 0xf22   :  { %v831_v4 = vpop.permute.xlu1 %830 }
 0xf23   :  { %v4041_v55 = vadd.f32 %v831_v4, %v823_v3 }
 0xf25   :  { %3437 = vtanh.f32 %v4041_v55 }
 0xf2b   :  { %v3438_v57 = vpop.eup %3437 }
 0xf2c   :  { %836 = vrot.lane.b32.xlu0 %v3438_v57, %s3782_s1 }
 0xf32   :  { %v612_v6 = vpop.permute.xlu0 %611 }
 0xf33   :  { %v4046_v7 = vadd.f32 %v612_v6, %v604_v5 }
 0xf35   :  { %3439 = vtanh.f32 %v4046_v7 }
 0xf3b   :  { %v3440_v8 = vpop.eup %3439 }
 0xf3c   :  { %617 = vrot.lane.b32.xlu2 %v3440_v8, %s3782_s1 }
 0xf96   :  { %v618_v9 = vpop.permute.xlu2 %617 }
 0xf97   :  { %v620_v10 = vmul.f32 %v618_v9, %v601_v1 }
 0xf99   :  { %622 = vrot.lane.b32.xlu1 %v620_v10, %s3783_s27 }
 0xf9e   :  { %v837_v11 = vpop.permute.xlu0 %836 }
 0xf9f   :  { %v839_v13 = vmul.f32 %v837_v11, %v820_v52  ;;  %v762_v52 = vadd.f32 %v4034_v29, %v761_v51 }
 0xfa1   :  { %841 = vrot.lane.b32.xlu2 %v839_v13, %s3783_s27 }
 0xffb   :  { %v842_v14 = vpop.permute.xlu2 %841 }
 0xffc   :  { %844 = vst.msk [vmem:[#allocation2] sm:$0xff] %vm70_vm0, %v842_v14 }
0x100b   :  { %v623_v12 = vpop.permute.xlu1 %622 }
0x100c   :  { %625 = vst.msk [vmem:[#allocation2 + $0x30] sm:$0xff] %vm70_vm0, %v623_v12  ;;  %3249 = vmatmul.msk.f32.vlgmr.msrb.gmra.mxu2 %vm70_vm0, %v623_v12 }
0x100d   :  { %989 = vmatpush.msrb.mxu2 %v4001_v19 }
0x100f   :  { %990 = vmatpush.msrb.mxu2 %v4003_v20 }
0x1011   :  { %991 = vmatpush.msrb.mxu2 %v4007_v21 }
0x1013   :  { %v709_v17 = vld [vmem:[#allocation2 + $0x30] sm:$0xff]  ;;  %992 = vmatpush.msrb.mxu2 %v4011_v22 }
0x1014   :  { %3258 = vmatmul.msk.f32.gmra.mxu3 %vm70_vm0, %v709_v17  ;;  %3261 = vmatmul.msk.f32.vlgmr.msra.gmra.mxu2 %vm70_vm0, %v842_v14 }
0x1015   :  { %1119 = vmatpush.msra.mxu2 %v4001_v19 }
0x1017   :  { %1120 = vmatpush.msra.mxu2 %v4003_v20 }
0x1019   :  { %1121 = vmatpush.msra.mxu2 %v4007_v21 }
0x101b   :  { %1122 = vmatpush.msra.mxu2 %v4011_v22 }
0x108f   :  { %v645_v24 = vpop.f32.mrf.mxu2 }
0x1090   :  { %v4067_v26 = vadd.f32 %v645_v24, %v162_v23  ;;  %v764_v23 = vpop.f32.mrf.mxu3 }
0x1091   :  { %v765_v24 = vadd.f32 %v4034_v29, %v764_v23 }
0x1097   :  { %v864_v30 = vpop.f32.mrf.mxu2 }
0x1098   :  { %v867_v31 = vadd.f32 %v864_v30, %v759_v28 }
0x109a   :  { %3441 = vtanh.f32 %v867_v31  ;;  %v3262_v56 = vmul.f32 -1.442695, %v867_v31 }
0x109c   :  { %3443 = vpow2.f32 %v3262_v56 }
0x10a0   :  { %v3442_v32 = vpop.eup %3441 }
0x10a1   :  { %890 = vrot.lane.b32.xlu0 %v3442_v32, %s3782_s1 }
0x10a2   :  { %v3444_v33 = vpop.eup %3443 }
0x10a3   :  { %v871_v34 = vadd.f32 1.0, %v3444_v33 }
0x10a5   :  { %3445 = vrcp.f32 %v871_v34  ;;  %v883_v37 = vand.u32 2147483648, %v871_v34  ;;  %vm877_vm4 = vweird.f32 %v871_v34  ;;  %v881_v38 = vand.u32 2147483647, %v871_v34 }
0x10a7   :  { %v884_v40 = vor.u32 1.1754944e-38, %v883_v37  ;;  %vm882_vm6 = vcmp.eq.f32.partialorder %v881_v38, 8.507059e+37 }
0x10ab   :  { %v3446_v15 = vpop.eup %3445 }
0x10ac   :  { %v873_v35 = vmul.f32 %v3446_v15, %v871_v34  ;;  %vm878_vm3 = vweird.f32 %v3446_v15 }
0x10ad   :  { %vm879_vm5 = vmor %vm877_vm4, %vm878_vm3 }
0x10ae   :  { %v874_v16 = vsub.f32 1.0, %v873_v35 }
0x10b0   :  { %v875_v18 = vmul.f32 %v3446_v15, %v874_v16 }
0x10b2   :  { %v876_v36 = vadd.f32 %v3446_v15, %v875_v18 }
0x10b4   :  { %v880_v39 = vsel %vm879_vm5, %v3446_v15, %v876_v36 }
0x10b5   :  { %v885_v42 = vsel %vm882_vm6, %v884_v40, %v880_v39 }
0x10b6   :  { %v888_v44 = vmul.f32 %v885_v42, %v4041_v55 }
0x1113   :  { %v891_v41 = vpop.permute.xlu0 %890 }
0x1114   :  { %v893_v43 = vmul.f32 %v891_v41, %v885_v42 }
0x1116   :  { %895 = vrot.lane.b32.xlu1 %v893_v43, %s3783_s27 }
0x1188   :  { %v896_v45 = vpop.permute.xlu1 %895 }
0x1189   :  { %v898_v46 = vadd.f32 %v896_v45, %v888_v44  ;;  %v767_v45 = vpop.f32.mrf.mxu3 }
0x118b   :  { %3447 = vtanh.f32 %v898_v46 }
0x1191   :  { %v3448_v47 = vpop.eup %3447 }
0x1192   :  { %901 = vrot.lane.b32.xlu2 %v3448_v47, %s3782_s1 }
0x11ec   :  { %v902_v48 = vpop.permute.xlu2 %901 }
0x11ed   :  { %v904_v49 = vmul.f32 %v902_v48, %v885_v42 }
0x11ef   :  { %906 = vrot.lane.b32.xlu0 %v904_v49, %s3783_s27 }
0x1261   :  { %v907_v50 = vpop.permute.xlu0 %906 }
0x1262   :  { %909 = vst.msk [vmem:[#allocation2 + $0x8] sm:$0xff] %vm70_vm0, %v907_v50  ;;  %3263 = vmatmul.msk.f32.vlgmr.msrb.gmra.mxu1 %vm70_vm0, %v907_v50 }
0x1263   :  { %1184 = vmatpush.msrb.mxu1 %v4001_v19 }
0x1265   :  { %1185 = vmatpush.msrb.mxu1 %v4003_v20 }
0x1267   :  { %1186 = vmatpush.msrb.mxu1 %v4007_v21 }
0x1269   :  { %1187 = vmatpush.msrb.mxu1 %v4011_v22 }
0x12df   :  { %v929_v53 = vpop.f32.mrf.mxu1 }
0x12e0   :  { %v932_v54 = vadd.f32 %v929_v53, %v762_v52 }
0x12e2   :  { %3449 = vtanh.f32 %v932_v54  ;;  %v3264_v59 = vmul.f32 -1.442695, %v932_v54 }
0x12e4   :  { %3451 = vpow2.f32 %v3264_v59 }
0x12e8   :  { %v3450_v58 = vpop.eup %3449 }
0x12e9   :  { %955 = vrot.lane.b32.xlu1 %v3450_v58, %s3782_s1 }
0x12ea   :  { %v3452_v60 = vpop.eup %3451 }
0x12eb   :  { %v936_v61 = vadd.f32 1.0, %v3452_v60 }
0x12ed   :  { %3453 = vrcp.f32 %v936_v61  ;;  %v948_v3 = vand.u32 2147483648, %v936_v61  ;;  %vm942_vm8 = vweird.f32 %v936_v61  ;;  %v946_v4 = vand.u32 2147483647, %v936_v61 }
0x12ef   :  { %v949_v57 = vor.u32 1.1754944e-38, %v948_v3  ;;  %vm947_vm10 = vcmp.eq.f32.partialorder %v946_v4, 8.507059e+37 }
0x12f3   :  { %v3454_v62 = vpop.eup %3453 }
0x12f4   :  { %v938_v63 = vmul.f32 %v3454_v62, %v936_v61  ;;  %vm943_vm7 = vweird.f32 %v3454_v62 }
0x12f5   :  { %vm944_vm9 = vmor %vm942_vm8, %vm943_vm7 }
0x12f6   :  { %v939_v0 = vsub.f32 1.0, %v938_v63 }
0x12f8   :  { %v940_v1 = vmul.f32 %v3454_v62, %v939_v0 }
0x12fa   :  { %v941_v2 = vadd.f32 %v3454_v62, %v940_v1 }
0x12fc   :  { %v945_v55 = vsel %vm944_vm9, %v3454_v62, %v941_v2 }
0x12fd   :  { %v950_v6 = vsel %vm947_vm10, %v949_v57, %v945_v55 }
0x12fe   :  { %v953_v9 = vmul.f32 %v950_v6, %v898_v46  ;;  %v768_v46 = vadd.f32 %v4034_v29, %v767_v45 }
0x135b   :  { %v956_v5 = vpop.permute.xlu1 %955 }
0x135c   :  { %v958_v8 = vmul.f32 %v956_v5, %v950_v6 }
0x135e   :  { %960 = vrot.lane.b32.xlu2 %v958_v8, %s3783_s27 }
0x13b8   :  { %v961_v10 = vpop.permute.xlu2 %960 }
0x13b9   :  { %v963_v11 = vadd.f32 %v961_v10, %v953_v9  ;;  %v770_v10 = vpop.f32.mrf.mxu3 }
0x13bb   :  { %3455 = vtanh.f32 %v963_v11 }
0x13c1   :  { %v3456_v13 = vpop.eup %3455 }
0x13c2   :  { %966 = vrot.lane.b32.xlu0 %v3456_v13, %s3782_s1 }
0x1434   :  { %v967_v14 = vpop.permute.xlu0 %966 }
0x1435   :  { %v969_v12 = vmul.f32 %v967_v14, %v950_v6 }
0x1437   :  { %971 = vrot.lane.b32.xlu1 %v969_v12, %s3783_s27 }
0x14a9   :  { %v972_v17 = vpop.permute.xlu1 %971 }
0x14aa   :  { %974 = vst.msk [vmem:[#allocation2 + $0x10] sm:$0xff] %vm70_vm0, %v972_v17  ;;  %3265 = vmatmul.msk.f32.vlgmr.msrb.gmra.mxu2 %vm70_vm0, %v972_v17 }
0x14ab   :  { %1249 = vmatpush.msrb.mxu2 %v4001_v19 }
0x14ad   :  { %1250 = vmatpush.msrb.mxu2 %v4003_v20 }
0x14af   :  { %1251 = vmatpush.msrb.mxu2 %v4007_v21 }
0x14b1   :  { %1252 = vmatpush.msrb.mxu2 %v4011_v22  ;;  %v1314_v45 = vld [vmem:[#allocation2 + $0x10] sm:$0xff] }
0x152d   :  { %v994_v27 = vpop.f32.mrf.mxu2 }
0x152e   :  { %v997_v28 = vadd.f32 %v994_v27, %v765_v24 }
0x1530   :  { %3457 = vtanh.f32 %v997_v28  ;;  %v3266_v31 = vmul.f32 -1.442695, %v997_v28 }
0x1532   :  { %3459 = vpow2.f32 %v3266_v31 }
0x1536   :  { %v3458_v30 = vpop.eup %3457 }
0x1537   :  { %1020 = vrot.lane.b32.xlu2 %v3458_v30, %s3782_s1 }
0x1538   :  { %v3460_v32 = vpop.eup %3459 }
0x1539   :  { %v1001_v56 = vadd.f32 1.0, %v3460_v32 }
0x153b   :  { %3461 = vrcp.f32 %v1001_v56  ;;  %v1013_v22 = vand.u32 2147483648, %v1001_v56  ;;  %vm1007_vm12 = vweird.f32 %v1001_v56  ;;  %v1011_v15 = vand.u32 2147483647, %v1001_v56 }
0x153d   :  { %v1014_v16 = vor.u32 1.1754944e-38, %v1013_v22  ;;  %vm1012_vm14 = vcmp.eq.f32.partialorder %v1011_v15, 8.507059e+37 }
0x1541   :  { %v3462_v19 = vpop.eup %3461 }
0x1542   :  { %v1003_v20 = vmul.f32 %v3462_v19, %v1001_v56  ;;  %vm1008_vm11 = vweird.f32 %v3462_v19 }
0x1543   :  { %vm1009_vm13 = vmor %vm1007_vm12, %vm1008_vm11 }
0x1544   :  { %v1004_v33 = vsub.f32 1.0, %v1003_v20 }
0x1546   :  { %v1005_v21 = vmul.f32 %v3462_v19, %v1004_v33 }
0x1548   :  { %v1006_v34 = vadd.f32 %v3462_v19, %v1005_v21 }
0x154a   :  { %v1010_v35 = vsel %vm1009_vm13, %v3462_v19, %v1006_v34 }
0x154b   :  { %v1015_v36 = vsel %vm1012_vm14, %v1014_v16, %v1010_v35 }
0x154c   :  { %v1018_v38 = vmul.f32 %v1015_v36, %v963_v11  ;;  %v771_v11 = vadd.f32 %v4034_v29, %v770_v10 }
0x1591   :  { %v1021_v18 = vpop.permute.xlu2 %1020 }
0x1592   :  { %v1023_v37 = vmul.f32 %v1021_v18, %v1015_v36 }
0x1594   :  { %1025 = vrot.lane.b32.xlu0 %v1023_v37, %s3783_s27 }
0x1606   :  { %v1026_v39 = vpop.permute.xlu0 %1025 }
0x1607   :  { %v1028_v40 = vadd.f32 %v1026_v39, %v1018_v38  ;;  %v1304_v38 = vld [vmem:[#allocation3 + $0x58] sm:$0xff]  ;;  %v1303_v39 = vld [vmem:[#allocation3 + $0x50] sm:$0xff] }
0x1609   :  { %3463 = vtanh.f32 %v1028_v40 }
0x160f   :  { %v3464_v41 = vpop.eup %3463 }
0x1610   :  { %1031 = vrot.lane.b32.xlu1 %v3464_v41, %s3782_s1  ;;  %v1301_v41 = vld [vmem:[#allocation3 + $0x40] sm:$0xff] }
0x1682   :  { %v1032_v42 = vpop.permute.xlu1 %1031 }
0x1683   :  { %v1034_v43 = vmul.f32 %v1032_v42, %v1015_v36 }
0x1685   :  { %1036 = vrot.lane.b32.xlu2 %v1034_v43, %s3783_s27  ;;  %v1312_v43 = vld [vmem:[#allocation2] sm:$0xff] }
0x16df   :  { %v1037_v44 = vpop.permute.xlu2 %1036 }
0x16e0   :  { %1039 = vst.msk [vmem:[#allocation2 + $0x18] sm:$0xff] %vm70_vm0, %v1037_v44  ;;  %3267 = vmatmul.msk.f32.vlgmr.msra.gmra.mxu1 %vm70_vm0, %v1037_v44  ;;  %v1313_v44 = vld [vmem:[#allocation2 + $0x8] sm:$0xff] }
0x16e1   :  { %1359 = vmatpush.msra.mxu1 %v1304_v38 }
0x16e3   :  { %1360 = vmatpush.msra.mxu1 %v1303_v39 }
0x175d   :  { %v1059_v47 = vpop.f32.mrf.mxu1 }
0x175e   :  { %v1062_v48 = vadd.f32 %v1059_v47, %v768_v46  ;;  %v1315_v46 = vld [vmem:[#allocation2 + $0x18] sm:$0xff] }
0x1760   :  { %3465 = vtanh.f32 %v1062_v48  ;;  %v3268_v50 = vmul.f32 -1.442695, %v1062_v48 }
0x1762   :  { %3467 = vpow2.f32 %v3268_v50 }
0x1766   :  { %v3466_v49 = vpop.eup %3465 }
0x1767   :  { %1085 = vrot.lane.b32.xlu0 %v3466_v49, %s3782_s1  ;;  %v773_v49 = vpop.f32.mrf.mxu3 }
0x1768   :  { %v3468_v51 = vpop.eup %3467  ;;  %v774_v50 = vadd.f32 %v4034_v29, %v773_v49 }
0x1769   :  { %v1066_v52 = vadd.f32 1.0, %v3468_v51 }
0x176b   :  { %3469 = vrcp.f32 %v1066_v52  ;;  %v1078_v61 = vand.u32 2147483648, %v1066_v52  ;;  %vm1072_vm1 = vweird.f32 %v1066_v52  ;;  %v1076_v62 = vand.u32 2147483647, %v1066_v52 }
0x176d   :  { %v1079_v0 = vor.u32 1.1754944e-38, %v1078_v61  ;;  %vm1077_vm3 = vcmp.eq.f32.partialorder %v1076_v62, 8.507059e+37 }
0x1771   :  { %v3470_v53 = vpop.eup %3469 }
0x1772   :  { %v1068_v54 = vmul.f32 %v3470_v53, %v1066_v52  ;;  %vm1073_vm15 = vweird.f32 %v3470_v53 }
0x1773   :  { %vm1074_vm2 = vmor %vm1072_vm1, %vm1073_vm15 }
0x1774   :  { %v1069_v58 = vsub.f32 1.0, %v1068_v54 }
0x1776   :  { %v1070_v59 = vmul.f32 %v3470_v53, %v1069_v58 }
0x1778   :  { %v1071_v60 = vadd.f32 %v3470_v53, %v1070_v59 }
0x177a   :  { %v1075_v63 = vsel %vm1074_vm2, %v3470_v53, %v1071_v60 }
0x177b   :  { %v1080_v2 = vsel %vm1077_vm3, %v1079_v0, %v1075_v63 }
0x177c   :  { %v1083_v4 = vmul.f32 %v1080_v2, %v1028_v40  ;;  %v1302_v40 = vld [vmem:[#allocation3 + $0x48] sm:$0xff] }
0x177d   :  { %1361 = vmatpush.msra.mxu1 %v1302_v40 }
0x177f   :  { %1362 = vmatpush.msra.mxu1 %v1301_v41 }
0x17d9   :  { %v1086_v1 = vpop.permute.xlu0 %1085 }
0x17da   :  { %v1088_v3 = vmul.f32 %v1086_v1, %v1080_v2 }
0x17dc   :  { %1090 = vrot.lane.b32.xlu1 %v1088_v3, %s3783_s27 }
0x184e   :  { %v1091_v55 = vpop.permute.xlu1 %1090 }
0x184f   :  { %v1093_v57 = vadd.f32 %v1091_v55, %v1083_v4 }
0x1851   :  { %3471 = vtanh.f32 %v1093_v57 }
0x1857   :  { %v3472_v5 = vpop.eup %3471 }
0x1858   :  { %1096 = vrot.lane.b32.xlu2 %v3472_v5, %s3782_s1 }
0x18b2   :  { %v1097_v6 = vpop.permute.xlu2 %1096 }
0x18b3   :  { %v1099_v8 = vmul.f32 %v1097_v6, %v1080_v2 }
0x18b5   :  { %1101 = vrot.lane.b32.xlu0 %v1099_v8, %s3783_s27 }
0x1927   :  { %v1102_v9 = vpop.permute.xlu0 %1101 }
0x1928   :  { %1104 = vst.msk [vmem:[#allocation2 + $0x20] sm:$0xff] %vm70_vm0, %v1102_v9  ;;  %3269 = vmatmul.msk.f32.vlgmr.msra.gmra.mxu2 %vm70_vm0, %v1102_v9 }
0x192f   :  { %v1316_v47 = vld [vmem:[#allocation2 + $0x20] sm:$0xff] }
0x19ab   :  { %v1124_v13 = vpop.f32.mrf.mxu2 }
0x19ac   :  { %v1127_v14 = vadd.f32 %v1124_v13, %v771_v11  ;;  %v4127_v13 = vld [vmem:[#allocation6 + $0x58] sm:$0xff] }
0x19ad   :  { %1400 = vmatpush.msra.mxu2 %v4127_v13  ;;  %1465 = vmatpush.msrb.mxu0 %v4127_v13 }
0x19ae   :  { %3473 = vtanh.f32 %v1127_v14  ;;  %v3270_v17 = vmul.f32 -1.442695, %v1127_v14  ;;  %v4129_v14 = vld [vmem:[#allocation6 + $0x50] sm:$0xff]  ;;  %1855 = vmatpush.msrb.mxu3 %v4127_v13 }
0x19af   :  { %1401 = vmatpush.msra.mxu2 %v4129_v14  ;;  %1466 = vmatpush.msrb.mxu0 %v4129_v14 }
0x19b0   :  { %3475 = vpow2.f32 %v3270_v17  ;;  %v4138_v17 = vld [vmem:[#allocation6 + $0x40] sm:$0xff]  ;;  %1856 = vmatpush.msrb.mxu3 %v4129_v14 }
0x19b4   :  { %v3474_v12 = vpop.eup %3473 }
0x19b5   :  { %1150 = vrot.lane.b32.xlu1 %v3474_v12, %s3782_s1  ;;  %v4133_v12 = vld [vmem:[#allocation6 + $0x48] sm:$0xff] }
0x19b6   :  { %v3476_v23 = vpop.eup %3475  ;;  %1402 = vmatpush.msra.mxu2 %v4133_v12  ;;  %1467 = vmatpush.msrb.mxu0 %v4133_v12 }
0x19b7   :  { %v1131_v24 = vadd.f32 1.0, %v3476_v23  ;;  %1857 = vmatpush.msrb.mxu3 %v4133_v12 }
0x19b8   :  { %1403 = vmatpush.msra.mxu2 %v4138_v17  ;;  %1468 = vmatpush.msrb.mxu0 %v4138_v17 }
0x19b9   :  { %3477 = vrcp.f32 %v1131_v24  ;;  %v1143_v56 = vand.u32 2147483648, %v1131_v24  ;;  %vm1137_vm5 = vweird.f32 %v1131_v24  ;;  %v1141_v19 = vand.u32 2147483647, %v1131_v24  ;;  %1858 = vmatpush.msrb.mxu3 %v4138_v17 }
0x19ba   :  { %1595 = vmatpush.msra.mxu0 %v4127_v13 }
0x19bb   :  { %v1144_v33 = vor.u32 1.1754944e-38, %v1143_v56  ;;  %vm1142_vm7 = vcmp.eq.f32.partialorder %v1141_v19, 8.507059e+37 }
0x19bc   :  { %1596 = vmatpush.msra.mxu0 %v4129_v14 }
0x19be   :  { %1597 = vmatpush.msra.mxu0 %v4133_v12 }
0x19bf   :  { %v3478_v27 = vpop.eup %3477 }
0x19c0   :  { %v1133_v28 = vmul.f32 %v3478_v27, %v1131_v24  ;;  %vm1138_vm4 = vweird.f32 %v3478_v27  ;;  %1598 = vmatpush.msra.mxu0 %v4138_v17 }
0x19c1   :  { %vm1139_vm6 = vmor %vm1137_vm5, %vm1138_vm4 }
0x19c2   :  { %v1134_v30 = vsub.f32 1.0, %v1133_v28  ;;  %v4168_v28 = vld [vmem:[%s4567_s5 + $0x2] ss:$0 sm:$0xff] }
0x19c4   :  { %v1135_v31 = vmul.f32 %v3478_v27, %v1134_v30 }
0x19c6   :  { %v1136_v32 = vadd.f32 %v3478_v27, %v1135_v31 }
0x19c8   :  { %v1140_v20 = vsel %vm1139_vm6, %v3478_v27, %v1136_v32 }
0x19c9   :  { %v1145_v34 = vsel %vm1142_vm7, %v1144_v33, %v1140_v20 }
0x19ca   :  { %v1148_v15 = vmul.f32 %v1145_v34, %v1093_v57 }
0x1a27   :  { %v1151_v21 = vpop.permute.xlu1 %1150 }
0x1a28   :  { %v1153_v22 = vmul.f32 %v1151_v21, %v1145_v34 }
0x1a2a   :  { %1155 = vrot.lane.b32.xlu2 %v1153_v22, %s3783_s27 }
0x1a84   :  { %v1156_v35 = vpop.permute.xlu2 %1155 }
0x1a85   :  { %v1158_v16 = vadd.f32 %v1156_v35, %v1148_v15 }
0x1a87   :  { %3479 = vtanh.f32 %v1158_v16 }
0x1a8d   :  { %v3480_v18 = vpop.eup %3479 }
0x1a8e   :  { %1161 = vrot.lane.b32.xlu0 %v3480_v18, %s3782_s1 }
0x1b00   :  { %v1162_v36 = vpop.permute.xlu0 %1161 }
0x1b01   :  { %v1164_v37 = vmul.f32 %v1162_v36, %v1145_v34 }
0x1b03   :  { %1166 = vrot.lane.b32.xlu1 %v1164_v37, %s3783_s27 }
0x1b75   :  { %v1167_v42 = vpop.permute.xlu1 %1166 }
0x1b76   :  { %1169 = vst.msk [vmem:[#allocation2 + $0x28] sm:$0xff] %vm70_vm0, %v1167_v42  ;;  %3271 = vmatmul.msk.f32.vlgmr.msrb.gmra.mxu1 %vm70_vm0, %v1167_v42 }
0x1b7d   :  { %v1317_v48 = vld [vmem:[#allocation2 + $0x28] sm:$0xff] }
0x1b7e   :  { %3276 = vmatmul.msk.f32.vlgmr.msra.gmra.mxu1 %vm70_vm0, %v1312_v43 }
0x1b86   :  { %3277 = vmatmul.msk.f32.gmra.mxu1 %vm70_vm0, %v1313_v44 }
0x1b8e   :  { %3278 = vmatmul.msk.f32.gmra.mxu1 %vm70_vm0, %v1314_v45 }
0x1b96   :  { %3279 = vmatmul.msk.f32.gmra.mxu1 %vm70_vm0, %v1315_v46 }
0x1b9e   :  { %3280 = vmatmul.msk.f32.gmra.mxu1 %vm70_vm0, %v1316_v47 }
0x1ba6   :  { %3281 = vmatmul.msk.f32.gmra.mxu1 %vm70_vm0, %v1317_v48 }
0x1bf3   :  { %v1189_v51 = vpop.f32.mrf.mxu1 }
0x1bf4   :  { %v1192_v52 = vadd.f32 %v1189_v51, %v774_v50 }
0x1bf6   :  { %3481 = vtanh.f32 %v1192_v52  ;;  %v3272_v54 = vmul.f32 -1.442695, %v1192_v52 }
0x1bf8   :  { %3483 = vpow2.f32 %v3272_v54 }
0x1bfb   :  { %v1364_v30 = vpop.f32.mrf.mxu1 }
0x1bfc   :  { %v3482_v53 = vpop.eup %3481  ;;  %v1365_v31 = vadd.f32 %v4168_v28, %v1364_v30 }
0x1bfd   :  { %1215 = vrot.lane.b32.xlu2 %v3482_v53, %s3782_s1 }
0x1bfe   :  { %v3484_v58 = vpop.eup %3483 }
0x1bff   :  { %v1196_v59 = vadd.f32 1.0, %v3484_v58 }
0x1c01   :  { %3485 = vrcp.f32 %v1196_v59  ;;  %v1208_v1 = vand.u32 2147483648, %v1196_v59  ;;  %vm1202_vm9 = vweird.f32 %v1196_v59  ;;  %v1206_v29 = vand.u32 2147483647, %v1196_v59 }
0x1c03   :  { %v1209_v3 = vor.u32 1.1754944e-38, %v1208_v1  ;;  %vm1207_vm11 = vcmp.eq.f32.partialorder %v1206_v29, 8.507059e+37  ;;  %v1367_v49 = vpop.f32.mrf.mxu1 }
0x1c04   :  { %v1368_v50 = vadd.f32 %v4168_v28, %v1367_v49 }
0x1c07   :  { %v3486_v60 = vpop.eup %3485 }
0x1c08   :  { %v1198_v61 = vmul.f32 %v3486_v60, %v1196_v59  ;;  %vm1203_vm8 = vweird.f32 %v3486_v60 }
0x1c09   :  { %vm1204_vm10 = vmor %vm1202_vm9, %vm1203_vm8 }
0x1c0a   :  { %v1199_v62 = vsub.f32 1.0, %v1198_v61 }
0x1c0b   :  { %v1370_v30 = vpop.f32.mrf.mxu1 }
0x1c0c   :  { %v1200_v63 = vmul.f32 %v3486_v60, %v1199_v62 }
0x1c0e   :  { %v1201_v0 = vadd.f32 %v3486_v60, %v1200_v63 }
0x1c10   :  { %v1205_v2 = vsel %vm1204_vm10, %v3486_v60, %v1201_v0 }
0x1c11   :  { %v1210_v55 = vsel %vm1207_vm11, %v1209_v3, %v1205_v2 }
0x1c12   :  { %v1213_v5 = vmul.f32 %v1210_v55, %v1158_v16 }
0x1c57   :  { %v1216_v4 = vpop.permute.xlu2 %1215 }
0x1c58   :  { %v1218_v57 = vmul.f32 %v1216_v4, %v1210_v55 }
0x1c5a   :  { %1220 = vrot.lane.b32.xlu0 %v1218_v57, %s3783_s27 }
0x1ccc   :  { %v1221_v6 = vpop.permute.xlu0 %1220 }
0x1ccd   :  { %v4122_v8 = vadd.f32 %v1221_v6, %v1213_v5 }
0x1ccf   :  { %3487 = vtanh.f32 %v4122_v8 }
0x1cd5   :  { %v3488_v9 = vpop.eup %3487 }
0x1cd6   :  { %1226 = vrot.lane.b32.xlu1 %v3488_v9, %s3782_s1 }
0x1d48   :  { %v1227_v10 = vpop.permute.xlu1 %1226 }
0x1d49   :  { %v1229_v11 = vmul.f32 %v1227_v10, %v1210_v55 }
0x1d4b   :  { %1231 = vrot.lane.b32.xlu2 %v1229_v11, %s3783_s27 }
0x1da5   :  { %v1232_v23 = vpop.permute.xlu2 %1231 }
0x1da6   :  { %1234 = vst.msk [vmem:[#allocation2 + $0x30] sm:$0xff] %vm70_vm0, %v1232_v23  ;;  %3273 = vmatmul.msk.f32.vlgmr.msrb.gmra.mxu2 %vm70_vm0, %v1232_v23 }
0x1da7   :  { %1530 = vmatpush.msrb.mxu2 %v4127_v13 }
0x1da9   :  { %1531 = vmatpush.msrb.mxu2 %v4129_v14 }
0x1dab   :  { %1532 = vmatpush.msrb.mxu2 %v4133_v12 }
0x1dad   :  { %v1318_v24 = vld [vmem:[#allocation2 + $0x30] sm:$0xff]  ;;  %1533 = vmatpush.msrb.mxu2 %v4138_v17 }
0x1dae   :  { %3282 = vmatmul.msk.f32.gmra.mxu1 %vm70_vm0, %v1318_v24  ;;  %1404 = vmatmul.f32.vlgmr.msra.gmra.mxu2 %v3784_v25 }
0x1daf   :  { %1660 = vmatpush.msra.mxu2 %v4127_v13 }
0x1db1   :  { %1661 = vmatpush.msra.mxu2 %v4129_v14 }
0x1db3   :  { %1662 = vmatpush.msra.mxu2 %v4133_v12 }
0x1db5   :  { %1663 = vmatpush.msra.mxu2 %v4138_v17 }
0x1e29   :  { %v4163_v27 = vpop.f32.mrf.mxu2 }
0x1e31   :  { %v1405_v32 = vpop.f32.mrf.mxu2 }
0x1e32   :  { %v1408_v56 = vadd.f32 %v1405_v32, %v1365_v31  ;;  %v1371_v31 = vadd.f32 %v4168_v28, %v1370_v30 }
0x1e34   :  { %3489 = vtanh.f32 %v1408_v56  ;;  %v3284_v20 = vmul.f32 -1.442695, %v1408_v56 }
0x1e36   :  { %3491 = vpow2.f32 %v3284_v20 }
0x1e3a   :  { %v3490_v19 = vpop.eup %3489 }
0x1e3b   :  { %1431 = vrot.lane.b32.xlu0 %v3490_v19, %s3782_s1 }
0x1e3c   :  { %v3492_v33 = vpop.eup %3491 }
0x1e3d   :  { %v1412_v21 = vadd.f32 1.0, %v3492_v33 }
0x1e3f   :  { %3493 = vrcp.f32 %v1412_v21  ;;  %v1424_v18 = vand.u32 2147483648, %v1412_v21  ;;  %vm1418_vm13 = vweird.f32 %v1412_v21  ;;  %v1422_v36 = vand.u32 2147483647, %v1412_v21 }
0x1e41   :  { %v1425_v38 = vor.u32 1.1754944e-38, %v1424_v18  ;;  %vm1423_vm15 = vcmp.eq.f32.partialorder %v1422_v36, 8.507059e+37 }
0x1e45   :  { %v3494_v34 = vpop.eup %3493 }
0x1e46   :  { %v1414_v22 = vmul.f32 %v3494_v34, %v1412_v21  ;;  %vm1419_vm12 = vweird.f32 %v3494_v34 }
0x1e47   :  { %vm1420_vm14 = vmor %vm1418_vm13, %vm1419_vm12 }
0x1e48   :  { %v1415_v15 = vsub.f32 1.0, %v1414_v22 }
0x1e4a   :  { %v1416_v35 = vmul.f32 %v3494_v34, %v1415_v15 }
0x1e4c   :  { %v1417_v16 = vadd.f32 %v3494_v34, %v1416_v35 }
0x1e4e   :  { %v1421_v37 = vsel %vm1420_vm14, %v3494_v34, %v1417_v16 }
0x1e4f   :  { %v1426_v40 = vsel %vm1423_vm15, %v1425_v38, %v1421_v37 }
0x1e50   :  { %v1429_v42 = vmul.f32 0.0, %v1426_v40 }
0x1ead   :  { %v1432_v39 = vpop.permute.xlu0 %1431 }
0x1eae   :  { %v1434_v41 = vmul.f32 %v1432_v39, %v1426_v40 }
0x1eb0   :  { %1436 = vrot.lane.b32.xlu1 %v1434_v41, %s3783_s27 }
0x1f22   :  { %v1437_v43 = vpop.permute.xlu1 %1436 }
0x1f23   :  { %v1439_v44 = vadd.f32 %v1437_v43, %v1429_v42 }
0x1f25   :  { %3495 = vtanh.f32 %v1439_v44 }
0x1f2b   :  { %v3496_v45 = vpop.eup %3495 }
0x1f2c   :  { %1442 = vrot.lane.b32.xlu2 %v3496_v45, %s3782_s1  ;;  %v1373_v45 = vpop.f32.mrf.mxu1 }
0x1f86   :  { %v1443_v46 = vpop.permute.xlu2 %1442 }
0x1f87   :  { %v1445_v47 = vmul.f32 %v1443_v46, %v1426_v40  ;;  %v1374_v46 = vadd.f32 %v4168_v28, %v1373_v45 }
0x1f89   :  { %1447 = vrot.lane.b32.xlu0 %v1445_v47, %s3783_s27 }
0x1ffb   :  { %v1448_v48 = vpop.permute.xlu0 %1447 }
0x1ffc   :  { %1450 = vst.msk [vmem:[#allocation2] sm:$0xff] %vm70_vm0, %v1448_v48  ;;  %3285 = vmatmul.msk.f32.vlgmr.msrb.gmra.mxu0 %vm70_vm0, %v1448_v48 }
0x1ffd   :  { %1725 = vmatpush.msrb.mxu0 %v4127_v13 }
0x1fff   :  { %1726 = vmatpush.msrb.mxu0 %v4129_v14 }
0x2001   :  { %1727 = vmatpush.msrb.mxu0 %v4133_v12 }
0x2003   :  { %1728 = vmatpush.msrb.mxu0 %v4138_v17  ;;  %v1918_v45 = vld [vmem:[#allocation2] sm:$0xff] }
0x2079   :  { %v1470_v51 = vpop.f32.mrf.mxu0 }
0x207a   :  { %v1473_v52 = vadd.f32 %v1470_v51, %v1368_v50 }
0x207c   :  { %3497 = vtanh.f32 %v1473_v52  ;;  %v3286_v54 = vmul.f32 -1.442695, %v1473_v52 }
0x207e   :  { %3499 = vpow2.f32 %v3286_v54 }
0x2082   :  { %v3498_v53 = vpop.eup %3497 }
0x2083   :  { %1496 = vrot.lane.b32.xlu1 %v3498_v53, %s3782_s1 }
0x2084   :  { %v3500_v58 = vpop.eup %3499 }
0x2085   :  { %v1477_v59 = vadd.f32 1.0, %v3500_v58 }
0x2087   :  { %3501 = vrcp.f32 %v1477_v59  ;;  %v1489_v1 = vand.u32 2147483648, %v1477_v59  ;;  %vm1483_vm2 = vweird.f32 %v1477_v59  ;;  %v1487_v29 = vand.u32 2147483647, %v1477_v59 }
0x2089   :  { %v1490_v3 = vor.u32 1.1754944e-38, %v1489_v1  ;;  %vm1488_vm4 = vcmp.eq.f32.partialorder %v1487_v29, 8.507059e+37 }
0x208d   :  { %v3502_v60 = vpop.eup %3501 }
0x208e   :  { %v1479_v61 = vmul.f32 %v3502_v60, %v1477_v59  ;;  %vm1484_vm1 = vweird.f32 %v3502_v60 }
0x208f   :  { %vm1485_vm3 = vmor %vm1483_vm2, %vm1484_vm1 }
0x2090   :  { %v1480_v62 = vsub.f32 1.0, %v1479_v61 }
0x2092   :  { %v1481_v63 = vmul.f32 %v3502_v60, %v1480_v62 }
0x2094   :  { %v1482_v0 = vadd.f32 %v3502_v60, %v1481_v63 }
0x2096   :  { %v1486_v2 = vsel %vm1485_vm3, %v3502_v60, %v1482_v0 }
0x2097   :  { %v1491_v55 = vsel %vm1488_vm4, %v1490_v3, %v1486_v2 }
0x2098   :  { %v1494_v5 = vmul.f32 %v1491_v55, %v1439_v44 }
0x20f5   :  { %v1497_v4 = vpop.permute.xlu1 %1496 }
0x20f6   :  { %v1499_v57 = vmul.f32 %v1497_v4, %v1491_v55 }
0x20f8   :  { %1501 = vrot.lane.b32.xlu2 %v1499_v57, %s3783_s27 }
0x2152   :  { %v1502_v6 = vpop.permute.xlu2 %1501 }
0x2153   :  { %v1504_v9 = vadd.f32 %v1502_v6, %v1494_v5 }
0x2155   :  { %3503 = vtanh.f32 %v1504_v9 }
0x215b   :  { %v3504_v10 = vpop.eup %3503 }
0x215c   :  { %1507 = vrot.lane.b32.xlu0 %v3504_v10, %s3782_s1  ;;  %v1376_v10 = vpop.f32.mrf.mxu1 }
0x21ce   :  { %v1508_v11 = vpop.permute.xlu0 %1507 }
0x21cf   :  { %v1510_v23 = vmul.f32 %v1508_v11, %v1491_v55  ;;  %v1377_v11 = vadd.f32 %v4168_v28, %v1376_v10 }
0x21d1   :  { %1512 = vrot.lane.b32.xlu1 %v1510_v23, %s3783_s27 }
0x2243   :  { %v1513_v24 = vpop.permute.xlu1 %1512 }
0x2244   :  { %1515 = vst.msk [vmem:[#allocation2 + $0x8] sm:$0xff] %vm70_vm0, %v1513_v24  ;;  %3287 = vmatmul.msk.f32.vlgmr.msrb.gmra.mxu2 %vm70_vm0, %v1513_v24 }
0x2245   :  { %1790 = vmatpush.msrb.mxu2 %v4127_v13 }
0x2247   :  { %1791 = vmatpush.msrb.mxu2 %v4129_v14 }
0x2249   :  { %1792 = vmatpush.msrb.mxu2 %v4133_v12 }
0x224b   :  { %1793 = vmatpush.msrb.mxu2 %v4138_v17 }
0x22c7   :  { %v1535_v32 = vpop.f32.mrf.mxu2 }
0x22c8   :  { %v1538_v56 = vadd.f32 %v1535_v32, %v1371_v31 }
0x22ca   :  { %3505 = vtanh.f32 %v1538_v56  ;;  %v3288_v20 = vmul.f32 -1.442695, %v1538_v56 }
0x22cc   :  { %3507 = vpow2.f32 %v3288_v20 }
0x22d0   :  { %v3506_v19 = vpop.eup %3505 }
0x22d1   :  { %1561 = vrot.lane.b32.xlu2 %v3506_v19, %s3782_s1 }
0x22d2   :  { %v3508_v33 = vpop.eup %3507 }
0x22d3   :  { %v1542_v21 = vadd.f32 1.0, %v3508_v33 }
0x22d5   :  { %3509 = vrcp.f32 %v1542_v21  ;;  %v1554_v17 = vand.u32 2147483648, %v1542_v21  ;;  %vm1548_vm6 = vweird.f32 %v1542_v21  ;;  %v1552_v15 = vand.u32 2147483647, %v1542_v21 }
0x22d7   :  { %v1555_v16 = vor.u32 1.1754944e-38, %v1554_v17  ;;  %vm1553_vm8 = vcmp.eq.f32.partialorder %v1552_v15, 8.507059e+37 }
0x22db   :  { %v3510_v13 = vpop.eup %3509 }
0x22dc   :  { %v1544_v14 = vmul.f32 %v3510_v13, %v1542_v21  ;;  %vm1549_vm5 = vweird.f32 %v3510_v13 }
0x22dd   :  { %vm1550_vm7 = vmor %vm1548_vm6, %vm1549_vm5 }
0x22de   :  { %v1545_v34 = vsub.f32 1.0, %v1544_v14 }
0x22e0   :  { %v1546_v12 = vmul.f32 %v3510_v13, %v1545_v34 }
0x22e2   :  { %v1547_v22 = vadd.f32 %v3510_v13, %v1546_v12 }
0x22e4   :  { %v1551_v35 = vsel %vm1550_vm7, %v3510_v13, %v1547_v22 }
0x22e5   :  { %v1556_v36 = vsel %vm1553_vm8, %v1555_v16, %v1551_v35 }
0x22e6   :  { %v1559_v38 = vmul.f32 %v1556_v36, %v1504_v9 }
0x232b   :  { %v1562_v18 = vpop.permute.xlu2 %1561 }
0x232c   :  { %v1564_v37 = vmul.f32 %v1562_v18, %v1556_v36 }
0x232e   :  { %1566 = vrot.lane.b32.xlu0 %v1564_v37, %s3783_s27 }
0x23a0   :  { %v1567_v39 = vpop.permute.xlu0 %1566 }
0x23a1   :  { %v1569_v40 = vadd.f32 %v1567_v39, %v1559_v38 }
0x23a3   :  { %3511 = vtanh.f32 %v1569_v40 }
0x23a9   :  { %v3512_v41 = vpop.eup %3511 }
0x23aa   :  { %1572 = vrot.lane.b32.xlu1 %v3512_v41, %s3782_s1  ;;  %v1909_v41 = vld [vmem:[#allocation3 + $0x70] sm:$0xff] }
0x241c   :  { %v1573_v42 = vpop.permute.xlu1 %1572 }
0x241d   :  { %v1575_v43 = vmul.f32 %v1573_v42, %v1556_v36  ;;  %v1908_v42 = vld [vmem:[#allocation3 + $0x68] sm:$0xff] }
0x241f   :  { %1577 = vrot.lane.b32.xlu2 %v1575_v43, %s3783_s27  ;;  %v1907_v43 = vld [vmem:[#allocation3 + $0x60] sm:$0xff] }
0x2479   :  { %v1578_v44 = vpop.permute.xlu2 %1577 }
0x247a   :  { %1580 = vst.msk [vmem:[#allocation2 + $0x10] sm:$0xff] %vm70_vm0, %v1578_v44  ;;  %3289 = vmatmul.msk.f32.vlgmr.msra.gmra.mxu0 %vm70_vm0, %v1578_v44 }
0x24f7   :  { %v1600_v47 = vpop.f32.mrf.mxu0 }
0x24f8   :  { %v1603_v48 = vadd.f32 %v1600_v47, %v1374_v46  ;;  %v1919_v46 = vld [vmem:[#allocation2 + $0x8] sm:$0xff]  ;;  %v1920_v47 = vld [vmem:[#allocation2 + $0x10] sm:$0xff] }
0x24fa   :  { %3513 = vtanh.f32 %v1603_v48  ;;  %v3290_v50 = vmul.f32 -1.442695, %v1603_v48 }
0x24fc   :  { %3515 = vpow2.f32 %v3290_v50  ;;  %v1379_v50 = vpop.f32.mrf.mxu1 }
0x2500   :  { %v3514_v49 = vpop.eup %3513 }
0x2501   :  { %1626 = vrot.lane.b32.xlu0 %v3514_v49, %s3782_s1 }
0x2502   :  { %v3516_v51 = vpop.eup %3515 }
0x2503   :  { %v1607_v52 = vadd.f32 1.0, %v3516_v51  ;;  %v1380_v51 = vadd.f32 %v4168_v28, %v1379_v50 }
0x2505   :  { %3517 = vrcp.f32 %v1607_v52  ;;  %v1619_v61 = vand.u32 2147483648, %v1607_v52  ;;  %vm1613_vm10 = vweird.f32 %v1607_v52  ;;  %v1617_v62 = vand.u32 2147483647, %v1607_v52 }
0x2507   :  { %v1620_v0 = vor.u32 1.1754944e-38, %v1619_v61  ;;  %vm1618_vm12 = vcmp.eq.f32.partialorder %v1617_v62, 8.507059e+37 }
0x250b   :  { %v3518_v53 = vpop.eup %3517 }
0x250c   :  { %v1609_v54 = vmul.f32 %v3518_v53, %v1607_v52  ;;  %vm1614_vm9 = vweird.f32 %v3518_v53 }
0x250d   :  { %vm1615_vm11 = vmor %vm1613_vm10, %vm1614_vm9 }
0x250e   :  { %v1610_v58 = vsub.f32 1.0, %v1609_v54 }
0x2510   :  { %v1611_v59 = vmul.f32 %v3518_v53, %v1610_v58 }
0x2512   :  { %v1612_v60 = vadd.f32 %v3518_v53, %v1611_v59 }
0x2514   :  { %v1616_v63 = vsel %vm1615_vm11, %v3518_v53, %v1612_v60 }
0x2515   :  { %v1621_v29 = vsel %vm1618_vm12, %v1620_v0, %v1616_v63 }
0x2516   :  { %v1624_v3 = vmul.f32 %v1621_v29, %v1569_v40  ;;  %v1910_v40 = vld [vmem:[#allocation3 + $0x78] sm:$0xff] }
0x2517   :  { %1965 = vmatpush.msra.mxu0 %v1910_v40 }
0x2519   :  { %1966 = vmatpush.msra.mxu0 %v1909_v41 }
0x251b   :  { %1967 = vmatpush.msra.mxu0 %v1908_v42 }
0x251d   :  { %1968 = vmatpush.msra.mxu0 %v1907_v43 }
0x2573   :  { %v1627_v1 = vpop.permute.xlu0 %1626 }
0x2574   :  { %v1629_v2 = vmul.f32 %v1627_v1, %v1621_v29 }
0x2576   :  { %1631 = vrot.lane.b32.xlu1 %v1629_v2, %s3783_s27 }
0x25e8   :  { %v1632_v4 = vpop.permute.xlu1 %1631 }
0x25e9   :  { %v1634_v55 = vadd.f32 %v1632_v4, %v1624_v3 }
0x25eb   :  { %3519 = vtanh.f32 %v1634_v55 }
0x25f1   :  { %v3520_v57 = vpop.eup %3519 }
0x25f2   :  { %1637 = vrot.lane.b32.xlu2 %v3520_v57, %s3782_s1 }
0x264c   :  { %v1638_v5 = vpop.permute.xlu2 %1637 }
0x264d   :  { %v1640_v6 = vmul.f32 %v1638_v5, %v1621_v29 }
0x264f   :  { %1642 = vrot.lane.b32.xlu0 %v1640_v6, %s3783_s27 }
0x26c1   :  { %v1643_v9 = vpop.permute.xlu0 %1642 }
0x26c2   :  { %1645 = vst.msk [vmem:[#allocation2 + $0x18] sm:$0xff] %vm70_vm0, %v1643_v9  ;;  %3291 = vmatmul.msk.f32.vlgmr.msra.gmra.mxu2 %vm70_vm0, %v1643_v9  ;;  %v3250_v9 = vmul.f32 -1.442695, %v4067_v26 }
0x26c9   :  { %v1921_v48 = vld [vmem:[#allocation2 + $0x18] sm:$0xff] }
0x2745   :  { %v1665_v23 = vpop.f32.mrf.mxu2 }
0x2746   :  { %v1668_v24 = vadd.f32 %v1665_v23, %v1377_v11 }
0x2748   :  { %3521 = vtanh.f32 %v1668_v24  ;;  %v3292_v31 = vmul.f32 -1.442695, %v1668_v24 }
0x274a   :  { %3523 = vpow2.f32 %v3292_v31 }
0x274e   :  { %v3522_v30 = vpop.eup %3521 }
0x274f   :  { %1691 = vrot.lane.b32.xlu1 %v3522_v30, %s3782_s1 }
0x2750   :  { %v3524_v32 = vpop.eup %3523 }
0x2751   :  { %v1672_v56 = vadd.f32 1.0, %v3524_v32 }
0x2753   :  { %3525 = vrcp.f32 %v1672_v56  ;;  %v1684_v14 = vand.u32 2147483648, %v1672_v56  ;;  %vm1678_vm14 = vweird.f32 %v1672_v56  ;;  %v1682_v34 = vand.u32 2147483647, %v1672_v56 }
0x2755   :  { %v1685_v22 = vor.u32 1.1754944e-38, %v1684_v14  ;;  %vm1683_vm1 = vcmp.eq.f32.partialorder %v1682_v34, 8.507059e+37 }
0x2759   :  { %v3526_v19 = vpop.eup %3525 }
0x275a   :  { %v1674_v20 = vmul.f32 %v3526_v19, %v1672_v56  ;;  %vm1679_vm13 = vweird.f32 %v3526_v19 }
0x275b   :  { %vm1680_vm15 = vmor %vm1678_vm14, %vm1679_vm13 }
0x275c   :  { %v1675_v33 = vsub.f32 1.0, %v1674_v20 }
0x275e   :  { %v1676_v21 = vmul.f32 %v3526_v19, %v1675_v33 }
0x2760   :  { %v1677_v13 = vadd.f32 %v3526_v19, %v1676_v21 }
0x2762   :  { %v1681_v12 = vsel %vm1680_vm15, %v3526_v19, %v1677_v13 }
0x2763   :  { %v1686_v15 = vsel %vm1683_vm1, %v1685_v22, %v1681_v12 }
0x2764   :  { %v1689_v16 = vmul.f32 %v1686_v15, %v1634_v55 }
0x27c1   :  { %v1692_v17 = vpop.permute.xlu1 %1691 }
0x27c2   :  { %v1694_v35 = vmul.f32 %v1692_v17, %v1686_v15 }
0x27c4   :  { %1696 = vrot.lane.b32.xlu2 %v1694_v35, %s3783_s27 }
0x281e   :  { %v1697_v18 = vpop.permute.xlu2 %1696 }
0x281f   :  { %v4209_v36 = vadd.f32 %v1697_v18, %v1689_v16 }
0x2821   :  { %3527 = vtanh.f32 %v4209_v36 }
0x2827   :  { %v3528_v37 = vpop.eup %3527 }
0x2828   :  { %1702 = vrot.lane.b32.xlu0 %v3528_v37, %s3782_s1  ;;  %v4236_v37 = vld [vmem:[#allocation6 + $0x78] sm:$0xff] }
0x2829   :  { %2006 = vmatpush.msra.mxu2 %v4236_v37  ;;  %2071 = vmatpush.msra.mxu3 %v4236_v37 }
0x289a   :  { %v1703_v38 = vpop.permute.xlu0 %1702 }
0x289b   :  { %v1705_v39 = vmul.f32 %v1703_v38, %v1686_v15  ;;  %v4238_v38 = vld [vmem:[#allocation6 + $0x70] sm:$0xff] }
0x289c   :  { %2007 = vmatpush.msra.mxu2 %v4238_v38  ;;  %2072 = vmatpush.msra.mxu3 %v4238_v38 }
0x289d   :  { %1707 = vrot.lane.b32.xlu1 %v1705_v39, %s3783_s27  ;;  %v4242_v39 = vld [vmem:[#allocation6 + $0x68] sm:$0xff] }
0x289e   :  { %2008 = vmatpush.msra.mxu2 %v4242_v39  ;;  %2073 = vmatpush.msra.mxu3 %v4242_v39 }
0x290f   :  { %v1708_v44 = vpop.permute.xlu1 %1707 }
0x2910   :  { %1710 = vst.msk [vmem:[#allocation2 + $0x20] sm:$0xff] %vm70_vm0, %v1708_v44  ;;  %3293 = vmatmul.msk.f32.vlgmr.msrb.gmra.mxu0 %vm70_vm0, %v1708_v44  ;;  %v1382_v44 = vpop.f32.mrf.mxu1 }
0x2917   :  { %v1922_v49 = vld [vmem:[#allocation2 + $0x20] sm:$0xff] }
0x2918   :  { %3300 = vmatmul.msk.f32.vlgmr.msra.gmra.mxu0 %vm70_vm0, %v1918_v45  ;;  %v1383_v45 = vadd.f32 %v4168_v28, %v1382_v44 }
0x2920   :  { %3301 = vmatmul.msk.f32.gmra.mxu0 %vm70_vm0, %v1919_v46 }
0x2928   :  { %3302 = vmatmul.msk.f32.gmra.mxu0 %vm70_vm0, %v1920_v47 }
0x2930   :  { %3303 = vmatmul.msk.f32.gmra.mxu0 %vm70_vm0, %v1921_v48  ;;  %v4269_v48 = vld [vmem:[%s4567_s5 + $0x3] ss:$0 sm:$0xff] }
0x2938   :  { %3304 = vmatmul.msk.f32.gmra.mxu0 %vm70_vm0, %v1922_v49 }
0x298d   :  { %v1730_v52 = vpop.f32.mrf.mxu0 }
0x298e   :  { %v1733_v53 = vadd.f32 %v1730_v52, %v1380_v51 }
0x2990   :  { %3529 = vtanh.f32 %v1733_v53  ;;  %v3294_v58 = vmul.f32 -1.442695, %v1733_v53 }
0x2992   :  { %3531 = vpow2.f32 %v3294_v58 }
0x2995   :  { %v1970_v49 = vpop.f32.mrf.mxu0 }
0x2996   :  { %v3530_v54 = vpop.eup %3529  ;;  %v1971_v50 = vadd.f32 %v4269_v48, %v1970_v49 }
0x2997   :  { %1756 = vrot.lane.b32.xlu2 %v3530_v54, %s3782_s1 }
0x2998   :  { %v3532_v59 = vpop.eup %3531 }
0x2999   :  { %v1737_v60 = vadd.f32 1.0, %v3532_v59 }
0x299b   :  { %3533 = vrcp.f32 %v1737_v60  ;;  %v1749_v29 = vand.u32 2147483648, %v1737_v60  ;;  %vm1743_vm3 = vweird.f32 %v1737_v60  ;;  %v1747_v2 = vand.u32 2147483647, %v1737_v60 }
0x299c   :  { %3535 = vtanh.f32 %v4067_v26 }
0x299d   :  { %v1750_v4 = vor.u32 1.1754944e-38, %v1749_v29  ;;  %vm1748_vm5 = vcmp.eq.f32.partialorder %v1747_v2, 8.507059e+37  ;;  %3537 = vpow2.f32 %v3250_v9 }
0x29a1   :  { %v3534_v61 = vpop.eup %3533 }
0x29a2   :  { %v1739_v62 = vmul.f32 %v3534_v61, %v1737_v60  ;;  %vm1744_vm2 = vweird.f32 %v3534_v61  ;;  %v3536_v6 = vpop.eup %3535 }
0x29a3   :  { %vm1745_vm4 = vmor %vm1743_vm3, %vm1744_vm2  ;;  %v3538_v10 = vpop.eup %3537 }
0x29a4   :  { %v1740_v63 = vsub.f32 1.0, %v1739_v62  ;;  %v652_v11 = vadd.f32 1.0, %v3538_v10 }
0x29a6   :  { %v1741_v0 = vmul.f32 %v3534_v61, %v1740_v63  ;;  %3539 = vrcp.f32 %v652_v11  ;;  %v664_v33 = vand.u32 2147483648, %v652_v11  ;;  %vm658_vm7 = vweird.f32 %v652_v11 }
0x29a7   :  { %v662_v26 = vand.u32 2147483647, %v652_v11 }
0x29a8   :  { %v1742_v1 = vadd.f32 %v3534_v61, %v1741_v0  ;;  %v665_v13 = vor.u32 1.1754944e-38, %v664_v33 }
0x29a9   :  { %vm663_vm9 = vcmp.eq.f32.partialorder %v662_v26, 8.507059e+37 }
0x29aa   :  { %v1746_v3 = vsel %vm1745_vm4, %v3534_v61, %v1742_v1 }
0x29ab   :  { %v1751_v57 = vsel %vm1748_vm5, %v1750_v4, %v1746_v3 }
0x29ac   :  { %v3540_v23 = vpop.eup %3539  ;;  %v1754_v32 = vmul.f32 %v1751_v57, %v4209_v36 }
0x29ad   :  { %v654_v24 = vmul.f32 %v3540_v23, %v652_v11  ;;  %vm659_vm6 = vweird.f32 %v3540_v23 }
0x29ae   :  { %vm660_vm8 = vmor %vm658_vm7, %vm659_vm6 }
0x29af   :  { %v655_v30 = vsub.f32 1.0, %v654_v24 }
0x29b1   :  { %v656_v31 = vmul.f32 %v3540_v23, %v655_v30 }
0x29b3   :  { %v657_v20 = vadd.f32 %v3540_v23, %v656_v31 }
0x29b5   :  { %v661_v21 = vsel %vm660_vm8, %v3540_v23, %v657_v20 }
0x29b6   :  { %v666_v14 = vsel %vm663_vm9, %v665_v13, %v661_v21 }
0x29b7   :  { %v669_v15 = vmul.f32 %v666_v14, %v4046_v7  ;;  %v4246_v7 = vld [vmem:[#allocation6 + $0x60] sm:$0xff] }
0x29b8   :  { %2009 = vmatpush.msra.mxu2 %v4246_v7  ;;  %2074 = vmatpush.msra.mxu3 %v4246_v7 }
0x29f1   :  { %v1757_v55 = vpop.permute.xlu2 %1756 }
0x29f2   :  { %v1759_v5 = vmul.f32 %v1757_v55, %v1751_v57 }
0x29f4   :  { %1761 = vrot.lane.b32.xlu0 %v1759_v5, %s3783_s27 }
0x29fc   :  { %671 = vrot.lane.b32.xlu0 %v3536_v6, %s3782_s1 }
0x2a66   :  { %v1762_v56 = vpop.permute.xlu0 %1761 }
0x2a67   :  { %v4228_v19 = vadd.f32 %v1762_v56, %v1754_v32 }
0x2a69   :  { %3541 = vtanh.f32 %v4228_v19 }
0x2a6e   :  { %v672_v34 = vpop.permute.xlu0 %671 }
0x2a6f   :  { %v3542_v12 = vpop.eup %3541  ;;  %v674_v22 = vmul.f32 %v672_v34, %v666_v14 }
0x2a70   :  { %1767 = vrot.lane.b32.xlu1 %v3542_v12, %s3782_s1 }
0x2a71   :  { %676 = vrot.lane.b32.xlu0 %v674_v22, %s3783_s27 }
0x2ae2   :  { %v1768_v17 = vpop.permute.xlu1 %1767 }
0x2ae3   :  { %v1770_v35 = vmul.f32 %v1768_v17, %v1751_v57  ;;  %v677_v16 = vpop.permute.xlu0 %676 }
0x2ae4   :  { %v679_v18 = vadd.f32 %v677_v16, %v669_v15 }
0x2ae5   :  { %1772 = vrot.lane.b32.xlu2 %v1770_v35, %s3783_s27 }
0x2ae6   :  { %3543 = vtanh.f32 %v679_v18 }
0x2aec   :  { %v3544_v36 = vpop.eup %3543 }
0x2aed   :  { %682 = vrot.lane.b32.xlu0 %v3544_v36, %s3782_s1 }
0x2b3f   :  { %v1773_v40 = vpop.permute.xlu2 %1772 }
0x2b40   :  { %1775 = vst.msk [vmem:[#allocation2 + $0x28] sm:$0xff] %vm70_vm0, %v1773_v40  ;;  %3295 = vmatmul.msk.f32.vlgmr.msrb.gmra.mxu2 %vm70_vm0, %v1773_v40 }
0x2b41   :  { %2136 = vmatpush.msrb.mxu2 %v4236_v37 }
0x2b43   :  { %2137 = vmatpush.msrb.mxu2 %v4238_v38 }
0x2b45   :  { %2138 = vmatpush.msrb.mxu2 %v4242_v39 }
0x2b47   :  { %v1923_v41 = vld [vmem:[#allocation2 + $0x28] sm:$0xff]  ;;  %2139 = vmatpush.msrb.mxu2 %v4246_v7 }
0x2b48   :  { %3305 = vmatmul.msk.f32.gmra.mxu0 %vm70_vm0, %v1923_v41  ;;  %2010 = vmatmul.f32.vlgmr.msra.gmra.mxu2 %v3784_v25 }
0x2b49   :  { %2266 = vmatpush.msra.mxu2 %v4236_v37 }
0x2b4b   :  { %2267 = vmatpush.msra.mxu2 %v4238_v38 }
0x2b4d   :  { %2268 = vmatpush.msra.mxu2 %v4242_v39 }
0x2b4f   :  { %2269 = vmatpush.msra.mxu2 %v4246_v7 }
0x2b5f   :  { %v683_v42 = vpop.permute.xlu0 %682 }
0x2b60   :  { %v685_v43 = vmul.f32 %v683_v42, %v666_v14 }
0x2b62   :  { %687 = vrot.lane.b32.xlu0 %v685_v43, %s3783_s27 }
0x2bc3   :  { %v1795_v46 = vpop.f32.mrf.mxu2 }
0x2bc4   :  { %v1798_v47 = vadd.f32 %v1795_v46, %v1383_v45 }
0x2bc6   :  { %3545 = vtanh.f32 %v1798_v47  ;;  %v3296_v62 = vmul.f32 -1.442695, %v1798_v47  ;;  %v1973_v47 = vpop.f32.mrf.mxu0 }
0x2bc7   :  { %v1974_v49 = vadd.f32 %v4269_v48, %v1973_v47 }
0x2bcb   :  { %v2011_v51 = vpop.f32.mrf.mxu2 }
0x2bcc   :  { %v3546_v52 = vpop.eup %3545  ;;  %v2014_v53 = vadd.f32 %v2011_v51, %v1971_v50 }
0x2bcd   :  { %1821 = vrot.lane.b32.xlu1 %v3546_v52, %s3782_s1 }
0x2bce   :  { %3547 = vtanh.f32 %v2014_v53  ;;  %v3308_v59 = vmul.f32 -1.442695, %v2014_v53 }
0x2bd0   :  { %3549 = vpow2.f32 %v3308_v59 }
0x2bd4   :  { %v3548_v54 = vpop.eup %3547  ;;  %v688_v58 = vpop.permute.xlu0 %687 }
0x2bd5   :  { %690 = vst.msk [vmem:[#allocation2 + $0x38] sm:$0xff] %vm70_vm0, %v688_v58  ;;  %2037 = vrot.lane.b32.xlu2 %v3548_v54, %s3782_s1 }
0x2bd6   :  { %v3550_v60 = vpop.eup %3549 }
0x2bd7   :  { %v2018_v61 = vadd.f32 1.0, %v3550_v60 }
0x2bd9   :  { %3551 = vrcp.f32 %v2018_v61  ;;  %v2030_v57 = vand.u32 2147483648, %v2018_v61  ;;  %vm2024_vm11 = vweird.f32 %v2018_v61  ;;  %v2028_v5 = vand.u32 2147483647, %v2018_v61 }
0x2bda   :  { %3553 = vpow2.f32 %v3296_v62 }
0x2bdb   :  { %v2031_v10 = vor.u32 1.1754944e-38, %v2030_v57  ;;  %vm2029_vm13 = vcmp.eq.f32.partialorder %v2028_v5, 8.507059e+37 }
0x2bdc   :  { %v710_v28 = vld [vmem:[#allocation2 + $0x38] sm:$0xff] }
0x2bdd   :  { %3259 = vmatmul.msk.f32.gmra.mxu3 %vm70_vm0, %v710_v28 }
0x2bdf   :  { %v3552_v63 = vpop.eup %3551 }
0x2be0   :  { %v3554_v0 = vpop.eup %3553  ;;  %v2020_v1 = vmul.f32 %v3552_v63, %v2018_v61  ;;  %vm2025_vm10 = vweird.f32 %v3552_v63 }
0x2be1   :  { %v1802_v29 = vadd.f32 1.0, %v3554_v0  ;;  %vm2026_vm12 = vmor %vm2024_vm11, %vm2025_vm10 }
0x2be2   :  { %v2021_v2 = vsub.f32 1.0, %v2020_v1 }
0x2be3   :  { %3555 = vrcp.f32 %v1802_v29  ;;  %v1814_v56 = vand.u32 2147483648, %v1802_v29  ;;  %vm1808_vm15 = vweird.f32 %v1802_v29  ;;  %v1812_v20 = vand.u32 2147483647, %v1802_v29 }
0x2be4   :  { %v2022_v3 = vmul.f32 %v3552_v63, %v2021_v2 }
0x2be5   :  { %v1815_v26 = vor.u32 1.1754944e-38, %v1814_v56  ;;  %vm1813_vm2 = vcmp.eq.f32.partialorder %v1812_v20, 8.507059e+37 }
0x2be6   :  { %v2023_v4 = vadd.f32 %v3552_v63, %v2022_v3 }
0x2be8   :  { %v2027_v6 = vsel %vm2026_vm12, %v3552_v63, %v2023_v4 }
0x2be9   :  { %v3556_v55 = vpop.eup %3555  ;;  %v2032_v23 = vsel %vm2029_vm13, %v2031_v10, %v2027_v6 }
0x2bea   :  { %v1804_v9 = vmul.f32 %v3556_v55, %v1802_v29  ;;  %vm1809_vm14 = vweird.f32 %v3556_v55  ;;  %v2035_v34 = vmul.f32 0.0, %v2032_v23 }
0x2beb   :  { %vm1810_vm1 = vmor %vm1808_vm15, %vm1809_vm14 }
0x2bec   :  { %v1805_v30 = vsub.f32 1.0, %v1804_v9 }
0x2bee   :  { %v1806_v31 = vmul.f32 %v3556_v55, %v1805_v30 }
0x2bf0   :  { %v1807_v32 = vadd.f32 %v3556_v55, %v1806_v31 }
0x2bf2   :  { %v1811_v33 = vsel %vm1810_vm1, %v3556_v55, %v1807_v32 }
0x2bf3   :  { %v1816_v13 = vsel %vm1813_vm2, %v1815_v26, %v1811_v33 }
0x2bf4   :  { %v1819_v15 = vmul.f32 %v1816_v13, %v4228_v19 }
0x2c2f   :  { %v2038_v11 = vpop.permute.xlu2 %2037 }
0x2c30   :  { %v2040_v24 = vmul.f32 %v2038_v11, %v2032_v23 }
0x2c32   :  { %2042 = vrot.lane.b32.xlu2 %v2040_v24, %s3783_s27 }
0x2c3f   :  { %v1822_v21 = vpop.permute.xlu1 %1821 }
0x2c40   :  { %v1824_v14 = vmul.f32 %v1822_v21, %v1816_v13 }
0x2c42   :  { %1826 = vrot.lane.b32.xlu1 %v1824_v14, %s3783_s27 }
0x2c60   :  { %v4302_v45 = vpop.f32.mrf.mxu3 }
0x2c8c   :  { %v2043_v12 = vpop.permute.xlu2 %2042 }
0x2c8d   :  { %v4278_v22 = vadd.f32 %v2043_v12, %v2035_v34 }
0x2c8f   :  { %3557 = vtanh.f32 %v4278_v22 }
0x2c95   :  { %v3558_v17 = vpop.eup %3557 }
0x2c96   :  { %2048 = vrot.lane.b32.xlu2 %v3558_v17, %s3782_s1 }
0x2cb4   :  { %v1827_v35 = vpop.permute.xlu1 %1826 }
0x2cb5   :  { %v4283_v16 = vadd.f32 %v1827_v35, %v1819_v15 }
0x2cb7   :  { %3559 = vtanh.f32 %v4283_v16 }
0x2cbd   :  { %v3560_v18 = vpop.eup %3559 }
0x2cbe   :  { %1832 = vrot.lane.b32.xlu1 %v3560_v18, %s3782_s1 }
0x2cf0   :  { %v2049_v36 = vpop.permute.xlu2 %2048 }
0x2cf1   :  { %v2051_v40 = vmul.f32 %v2049_v36, %v2032_v23  ;;  %v1976_v23 = vpop.f32.mrf.mxu0 }
0x2cf2   :  { %v1977_v24 = vadd.f32 %v4269_v48, %v1976_v23 }
0x2cf3   :  { %2053 = vrot.lane.b32.xlu2 %v2051_v40, %s3783_s27 }
0x2d30   :  { %v1833_v41 = vpop.permute.xlu1 %1832 }
0x2d31   :  { %v1835_v42 = vmul.f32 %v1833_v41, %v1816_v13 }
0x2d33   :  { %1837 = vrot.lane.b32.xlu1 %v1835_v42, %s3783_s27 }
0x2d4d   :  { %v2054_v43 = vpop.permute.xlu2 %2053 }
0x2d4e   :  { %2056 = vst.msk [vmem:[#allocation2] sm:$0xff] %vm70_vm0, %v2054_v43 }
0x2da5   :  { %v1838_v19 = vpop.permute.xlu1 %1837 }
0x2da6   :  { %1840 = vst.msk [vmem:[#allocation2 + $0x30] sm:$0xff] %vm70_vm0, %v1838_v19  ;;  %3297 = vmatmul.msk.f32.vlgmr.msrb.gmra.mxu3 %vm70_vm0, %v1838_v19 }
0x2da7   :  { %2201 = vmatpush.msrb.mxu3 %v4236_v37 }
0x2da9   :  { %2202 = vmatpush.msrb.mxu3 %v4238_v38 }
0x2dab   :  { %2203 = vmatpush.msrb.mxu3 %v4242_v39 }
0x2dad   :  { %v1924_v44 = vld [vmem:[#allocation2 + $0x30] sm:$0xff]  ;;  %2204 = vmatpush.msrb.mxu3 %v4246_v7 }
0x2dae   :  { %3306 = vmatmul.msk.f32.gmra.mxu0 %vm70_vm0, %v1924_v44  ;;  %3309 = vmatmul.msk.f32.vlgmr.msra.gmra.mxu3 %vm70_vm0, %v2054_v43 }
0x2daf   :  { %2331 = vmatpush.msra.mxu3 %v4236_v37 }
0x2db1   :  { %2332 = vmatpush.msra.mxu3 %v4238_v38 }
0x2db3   :  { %2333 = vmatpush.msra.mxu3 %v4242_v39 }
0x2db5   :  { %2334 = vmatpush.msra.mxu3 %v4246_v7 }
0x2e29   :  { %v4304_v46 = vpop.f32.mrf.mxu3 }
0x2e31   :  { %v2076_v50 = vpop.f32.mrf.mxu3 }
0x2e32   :  { %v2079_v51 = vadd.f32 %v2076_v50, %v1974_v49  ;;  %v1979_v49 = vpop.f32.mrf.mxu0 }
0x2e33   :  { %v1980_v50 = vadd.f32 %v4269_v48, %v1979_v49 }
0x2e34   :  { %3561 = vtanh.f32 %v2079_v51  ;;  %v3310_v53 = vmul.f32 -1.442695, %v2079_v51 }
0x2e36   :  { %3563 = vpow2.f32 %v3310_v53 }
0x2e3a   :  { %v3562_v52 = vpop.eup %3561 }
0x2e3b   :  { %2102 = vrot.lane.b32.xlu0 %v3562_v52, %s3782_s1 }
0x2e3c   :  { %v3564_v54 = vpop.eup %3563 }
0x2e3d   :  { %v2083_v58 = vadd.f32 1.0, %v3564_v54 }
0x2e3f   :  { %3565 = vrcp.f32 %v2083_v58  ;;  %v2095_v63 = vand.u32 2147483648, %v2083_v58  ;;  %vm2089_vm4 = vweird.f32 %v2083_v58  ;;  %v2093_v0 = vand.u32 2147483647, %v2083_v58 }
0x2e41   :  { %v2096_v29 = vor.u32 1.1754944e-38, %v2095_v63  ;;  %vm2094_vm6 = vcmp.eq.f32.partialorder %v2093_v0, 8.507059e+37 }
0x2e45   :  { %v3566_v28 = vpop.eup %3565 }
0x2e46   :  { %v2085_v59 = vmul.f32 %v3566_v28, %v2083_v58  ;;  %vm2090_vm3 = vweird.f32 %v3566_v28 }
0x2e47   :  { %vm2091_vm5 = vmor %vm2089_vm4, %vm2090_vm3 }
0x2e48   :  { %v2086_v60 = vsub.f32 1.0, %v2085_v59 }
0x2e4a   :  { %v2087_v61 = vmul.f32 %v3566_v28, %v2086_v60 }
0x2e4c   :  { %v2088_v62 = vadd.f32 %v3566_v28, %v2087_v61 }
0x2e4e   :  { %v2092_v1 = vsel %vm2091_vm5, %v3566_v28, %v2088_v62 }
0x2e4f   :  { %v2097_v3 = vsel %vm2094_vm6, %v2096_v29, %v2092_v1 }
0x2e50   :  { %v2100_v55 = vmul.f32 %v2097_v3, %v4278_v22 }
0x2ead   :  { %v2103_v2 = vpop.permute.xlu0 %2102 }
0x2eae   :  { %v2105_v4 = vmul.f32 %v2103_v2, %v2097_v3 }
0x2eb0   :  { %2107 = vrot.lane.b32.xlu1 %v2105_v4, %s3783_s27 }
0x2f22   :  { %v2108_v57 = vpop.permute.xlu1 %2107 }
0x2f23   :  { %v2110_v5 = vadd.f32 %v2108_v57, %v2100_v55 }
0x2f25   :  { %3567 = vtanh.f32 %v2110_v5 }
0x2f2b   :  { %v3568_v6 = vpop.eup %3567 }
0x2f2c   :  { %2113 = vrot.lane.b32.xlu2 %v3568_v6, %s3782_s1 }
0x2f86   :  { %v2114_v9 = vpop.permute.xlu2 %2113 }
0x2f87   :  { %v2116_v10 = vmul.f32 %v2114_v9, %v2097_v3  ;;  %v1982_v9 = vpop.f32.mrf.mxu0 }
0x2f89   :  { %2118 = vrot.lane.b32.xlu0 %v2116_v10, %s3783_s27  ;;  %v1983_v10 = vadd.f32 %v4269_v48, %v1982_v9 }
0x2ffb   :  { %v2119_v11 = vpop.permute.xlu0 %2118 }
0x2ffc   :  { %2121 = vst.msk [vmem:[#allocation2 + $0x8] sm:$0xff] %vm70_vm0, %v2119_v11  ;;  %3311 = vmatmul.msk.f32.vlgmr.msrb.gmra.mxu2 %vm70_vm0, %v2119_v11 }
0x2ffd   :  { %2396 = vmatpush.msrb.mxu2 %v4236_v37 }
0x2fff   :  { %2397 = vmatpush.msrb.mxu2 %v4238_v38 }
0x3001   :  { %2398 = vmatpush.msrb.mxu2 %v4242_v39 }
0x3003   :  { %2399 = vmatpush.msrb.mxu2 %v4246_v7 }
0x307f   :  { %v2141_v30 = vpop.f32.mrf.mxu2 }
0x3080   :  { %v2144_v31 = vadd.f32 %v2141_v30, %v1977_v24 }
0x3082   :  { %3569 = vtanh.f32 %v2144_v31  ;;  %v3312_v56 = vmul.f32 -1.442695, %v2144_v31 }
0x3084   :  { %3571 = vpow2.f32 %v3312_v56 }
0x3088   :  { %v3570_v32 = vpop.eup %3569 }
0x3089   :  { %2167 = vrot.lane.b32.xlu1 %v3570_v32, %s3782_s1 }
0x308a   :  { %v3572_v20 = vpop.eup %3571 }
0x308b   :  { %v2148_v33 = vadd.f32 1.0, %v3572_v20 }
0x308d   :  { %3573 = vrcp.f32 %v2148_v33  ;;  %v2160_v12 = vand.u32 2147483648, %v2148_v33  ;;  %vm2154_vm8 = vweird.f32 %v2148_v33  ;;  %v2158_v22 = vand.u32 2147483647, %v2148_v33 }
0x308f   :  { %v2161_v15 = vor.u32 1.1754944e-38, %v2160_v12  ;;  %vm2159_vm10 = vcmp.eq.f32.partialorder %v2158_v22, 8.507059e+37 }
0x3093   :  { %v3574_v26 = vpop.eup %3573 }
0x3094   :  { %v2150_v21 = vmul.f32 %v3574_v26, %v2148_v33  ;;  %vm2155_vm7 = vweird.f32 %v3574_v26 }
0x3095   :  { %vm2156_vm9 = vmor %vm2154_vm8, %vm2155_vm7 }
0x3096   :  { %v2151_v13 = vsub.f32 1.0, %v2150_v21 }
0x3098   :  { %v2152_v14 = vmul.f32 %v3574_v26, %v2151_v13 }
0x309a   :  { %v2153_v34 = vadd.f32 %v3574_v26, %v2152_v14 }
0x309c   :  { %v2157_v17 = vsel %vm2156_vm9, %v3574_v26, %v2153_v34  ;;  %v3697_v34 = vld [vmem:[%s4567_s5 + $0x1] ss:$0 sm:$0xff] }
0x309d   :  { %v2162_v18 = vsel %vm2159_vm10, %v2161_v15, %v2157_v17  ;;  %v777_v12 = vadd.f32 %v3697_v34, %v4302_v45  ;;  %v2513_v34 = vld [vmem:[#allocation3 + $0x80] sm:$0xff] }
0x309e   :  { %v2165_v40 = vmul.f32 %v2162_v18, %v2110_v5 }
0x309f   :  { %v1257_v15 = vadd.f32 %v4163_v27, %v777_v12 }
0x30fb   :  { %v2168_v35 = vpop.permute.xlu1 %2167 }
0x30fc   :  { %v2170_v36 = vmul.f32 %v2168_v35, %v2162_v18 }
0x30fe   :  { %2172 = vrot.lane.b32.xlu2 %v2170_v36, %s3783_s27 }
0x3158   :  { %v2173_v41 = vpop.permute.xlu2 %2172 }
0x3159   :  { %v2175_v42 = vadd.f32 %v2173_v41, %v2165_v40 }
0x315b   :  { %3575 = vtanh.f32 %v2175_v42 }
0x3161   :  { %v3576_v43 = vpop.eup %3575 }
0x3162   :  { %2178 = vrot.lane.b32.xlu0 %v3576_v43, %s3782_s1 }
0x31d4   :  { %v2179_v19 = vpop.permute.xlu0 %2178 }
0x31d5   :  { %v2181_v44 = vmul.f32 %v2179_v19, %v2162_v18  ;;  %v3274_v19 = vmul.f32 -1.442695, %v1257_v15 }
0x31d7   :  { %2183 = vrot.lane.b32.xlu1 %v2181_v44, %s3783_s27 }
0x3249   :  { %v2184_v47 = vpop.permute.xlu1 %2183 }
0x324a   :  { %2186 = vst.msk [vmem:[#allocation2 + $0x10] sm:$0xff] %vm70_vm0, %v2184_v47  ;;  %3313 = vmatmul.msk.f32.vlgmr.msrb.gmra.mxu3 %vm70_vm0, %v2184_v47 }
0x324b   :  { %2461 = vmatpush.msrb.mxu3 %v4236_v37 }
0x324d   :  { %2462 = vmatpush.msrb.mxu3 %v4238_v38 }
0x324f   :  { %2463 = vmatpush.msrb.mxu3 %v4242_v39 }
0x3251   :  { %2464 = vmatpush.msrb.mxu3 %v4246_v7 }
0x32cd   :  { %v2206_v51 = vpop.f32.mrf.mxu3 }
0x32ce   :  { %v2209_v52 = vadd.f32 %v2206_v51, %v1980_v50 }
0x32d0   :  { %3577 = vtanh.f32 %v2209_v52  ;;  %v3314_v54 = vmul.f32 -1.442695, %v2209_v52 }
0x32d2   :  { %3579 = vpow2.f32 %v3314_v54 }
0x32d6   :  { %v3578_v53 = vpop.eup %3577 }
0x32d7   :  { %2232 = vrot.lane.b32.xlu2 %v3578_v53, %s3782_s1 }
0x32d8   :  { %v3580_v58 = vpop.eup %3579 }
0x32d9   :  { %v2213_v28 = vadd.f32 1.0, %v3580_v58 }
0x32db   :  { %3581 = vrcp.f32 %v2213_v28  ;;  %v2225_v7 = vand.u32 2147483648, %v2213_v28  ;;  %vm2219_vm12 = vweird.f32 %v2213_v28  ;;  %v2223_v61 = vand.u32 2147483647, %v2213_v28 }
0x32dd   :  { %v2226_v63 = vor.u32 1.1754944e-38, %v2225_v7  ;;  %vm2224_vm14 = vcmp.eq.f32.partialorder %v2223_v61, 8.507059e+37  ;;  %v1985_v61 = vpop.f32.mrf.mxu0 }
0x32e1   :  { %v3582_v37 = vpop.eup %3581 }
0x32e2   :  { %v2215_v38 = vmul.f32 %v3582_v37, %v2213_v28  ;;  %vm2220_vm11 = vweird.f32 %v3582_v37 }
0x32e3   :  { %vm2221_vm13 = vmor %vm2219_vm12, %vm2220_vm11 }
0x32e4   :  { %v2216_v59 = vsub.f32 1.0, %v2215_v38 }
0x32e6   :  { %v2217_v39 = vmul.f32 %v3582_v37, %v2216_v59 }
0x32e8   :  { %v2218_v60 = vadd.f32 %v3582_v37, %v2217_v39 }
0x32ea   :  { %v2222_v62 = vsel %vm2221_vm13, %v3582_v37, %v2218_v60 }
0x32eb   :  { %v2227_v1 = vsel %vm2224_vm14, %v2226_v63, %v2222_v62  ;;  %v1986_v62 = vadd.f32 %v4269_v48, %v1985_v61 }
0x32ec   :  { %v2230_v2 = vmul.f32 %v2227_v1, %v2175_v42 }
0x3331   :  { %v2233_v0 = vpop.permute.xlu2 %2232 }
0x3332   :  { %v2235_v29 = vmul.f32 %v2233_v0, %v2227_v1 }
0x3334   :  { %2237 = vrot.lane.b32.xlu0 %v2235_v29, %s3783_s27 }
0x33a6   :  { %v2238_v3 = vpop.permute.xlu0 %2237 }
0x33a7   :  { %v2240_v4 = vadd.f32 %v2238_v3, %v2230_v2 }
0x33a9   :  { %3583 = vtanh.f32 %v2240_v4 }
0x33af   :  { %v3584_v55 = vpop.eup %3583 }
0x33b0   :  { %2243 = vrot.lane.b32.xlu1 %v3584_v55, %s3782_s1 }
0x3422   :  { %v2244_v57 = vpop.permute.xlu1 %2243 }
0x3423   :  { %v2246_v5 = vmul.f32 %v2244_v57, %v2227_v1 }
0x3425   :  { %2248 = vrot.lane.b32.xlu2 %v2246_v5, %s3783_s27 }
0x347f   :  { %v2249_v6 = vpop.permute.xlu2 %2248 }
0x3480   :  { %2251 = vst.msk [vmem:[#allocation2 + $0x18] sm:$0xff] %vm70_vm0, %v2249_v6  ;;  %3315 = vmatmul.msk.f32.vlgmr.msra.gmra.mxu2 %vm70_vm0, %v2249_v6 }
0x3503   :  { %v2271_v11 = vpop.f32.mrf.mxu2 }
0x3504   :  { %v2274_v23 = vadd.f32 %v2271_v11, %v1983_v10 }
0x3506   :  { %3585 = vtanh.f32 %v2274_v23  ;;  %v3316_v30 = vmul.f32 -1.442695, %v2274_v23 }
0x3508   :  { %3587 = vpow2.f32 %v3316_v30 }
0x350c   :  { %v3586_v24 = vpop.eup %3585 }
0x350d   :  { %2297 = vrot.lane.b32.xlu0 %v3586_v24, %s3782_s1 }
0x350e   :  { %v3588_v31 = vpop.eup %3587 }
0x350f   :  { %v2278_v32 = vadd.f32 1.0, %v3588_v31 }
0x3511   :  { %3589 = vrcp.f32 %v2278_v32  ;;  %v2290_v13 = vand.u32 2147483648, %v2278_v32  ;;  %vm2284_vm1 = vweird.f32 %v2278_v32  ;;  %v2288_v14 = vand.u32 2147483647, %v2278_v32 }
0x3512   :  { %3591 = vtanh.f32 %v1257_v15 }
0x3513   :  { %v2291_v17 = vor.u32 1.1754944e-38, %v2290_v13  ;;  %vm2289_vm3 = vcmp.eq.f32.partialorder %v2288_v14, 8.507059e+37  ;;  %v2515_v13 = vld [vmem:[#allocation3 + $0x90] sm:$0xff]  ;;  %v2514_v14 = vld [vmem:[#allocation3 + $0x88] sm:$0xff] }
0x3517   :  { %v3590_v56 = vpop.eup %3589 }
0x3518   :  { %v2280_v20 = vmul.f32 %v3590_v56, %v2278_v32  ;;  %vm2285_vm15 = vweird.f32 %v3590_v56  ;;  %v3592_v40 = vpop.eup %3591 }
0x3519   :  { %vm2286_vm2 = vmor %vm2284_vm1, %vm2285_vm15 }
0x351a   :  { %v2281_v33 = vsub.f32 1.0, %v2280_v20 }
0x351c   :  { %v2282_v26 = vmul.f32 %v3590_v56, %v2281_v33 }
0x351e   :  { %v2283_v21 = vadd.f32 %v3590_v56, %v2282_v26 }
0x3520   :  { %v2287_v22 = vsel %vm2286_vm2, %v3590_v56, %v2283_v21  ;;  %v2516_v21 = vld [vmem:[#allocation3 + $0x98] sm:$0xff] }
0x3521   :  { %v2292_v18 = vsel %vm2289_vm3, %v2291_v17, %v2287_v22  ;;  %2571 = vmatpush.msrb.mxu1 %v2516_v21 }
0x3522   :  { %v2295_v41 = vmul.f32 %v2292_v18, %v2240_v4 }
0x3523   :  { %2572 = vmatpush.msrb.mxu1 %v2515_v13 }
0x3525   :  { %2573 = vmatpush.msrb.mxu1 %v2514_v14 }
0x3527   :  { %2574 = vmatpush.msrb.mxu1 %v2513_v34 }
0x357f   :  { %v2298_v35 = vpop.permute.xlu0 %2297 }
0x3580   :  { %v2300_v36 = vmul.f32 %v2298_v35, %v2292_v18 }
0x3582   :  { %2302 = vrot.lane.b32.xlu1 %v2300_v36, %s3783_s27  ;;  %v2524_v36 = vld [vmem:[#allocation2] sm:$0xff] }
0x358a   :  { %1280 = vrot.lane.b32.xlu1 %v3592_v40, %s3782_s1  ;;  %v2525_v40 = vld [vmem:[#allocation2 + $0x8] sm:$0xff] }
0x35f4   :  { %v2303_v42 = vpop.permute.xlu1 %2302 }
0x35f5   :  { %v4345_v43 = vadd.f32 %v2303_v42, %v2295_v41  ;;  %v2526_v41 = vld [vmem:[#allocation2 + $0x10] sm:$0xff]  ;;  %v2527_v42 = vld [vmem:[#allocation2 + $0x18] sm:$0xff] }
0x35f7   :  { %3593 = vtanh.f32 %v4345_v43 }
0x35f8   :  { %3595 = vpow2.f32 %v3274_v19 }
0x35fc   :  { %v1281_v59 = vpop.permute.xlu1 %1280 }
0x35fd   :  { %v3594_v45 = vpop.eup %3593 }
0x35fe   :  { %2308 = vrot.lane.b32.xlu2 %v3594_v45, %s3782_s1  ;;  %v3596_v27 = vpop.eup %3595 }
0x35ff   :  { %v1261_v44 = vadd.f32 1.0, %v3596_v27  ;;  %v4372_v27 = vld [vmem:[#allocation6 + $0x98] sm:$0xff] }
0x3600   :  { %2612 = vmatpush.msra.mxu2 %v4372_v27 }
0x3601   :  { %3597 = vrcp.f32 %v1261_v44  ;;  %v1273_v58 = vand.u32 2147483648, %v1261_v44  ;;  %vm1267_vm5 = vweird.f32 %v1261_v44  ;;  %v1271_v28 = vand.u32 2147483647, %v1261_v44 }
0x3603   :  { %v1274_v38 = vor.u32 1.1754944e-38, %v1273_v58  ;;  %vm1272_vm7 = vcmp.eq.f32.partialorder %v1271_v28, 8.507059e+37 }
0x3607   :  { %v3598_v47 = vpop.eup %3597 }
0x3608   :  { %v1263_v49 = vmul.f32 %v3598_v47, %v1261_v44  ;;  %vm1268_vm4 = vweird.f32 %v3598_v47  ;;  %v4374_v44 = vld [vmem:[#allocation6 + $0x90] sm:$0xff] }
0x3609   :  { %vm1269_vm6 = vmor %vm1267_vm5, %vm1268_vm4  ;;  %2613 = vmatpush.msra.mxu2 %v4374_v44 }
0x360a   :  { %v1264_v50 = vsub.f32 1.0, %v1263_v49  ;;  %v4382_v49 = vld [vmem:[#allocation6 + $0x80] sm:$0xff] }
0x360c   :  { %v1265_v51 = vmul.f32 %v3598_v47, %v1264_v50 }
0x360e   :  { %v1266_v53 = vadd.f32 %v3598_v47, %v1265_v51 }
0x3610   :  { %v1270_v37 = vsel %vm1269_vm6, %v3598_v47, %v1266_v53  ;;  %v4378_v47 = vld [vmem:[#allocation6 + $0x88] sm:$0xff]  ;;  %v1988_v53 = vpop.f32.mrf.mxu0 }
0x3611   :  { %v1275_v39 = vsel %vm1272_vm7, %v1274_v38, %v1270_v37  ;;  %2614 = vmatpush.msra.mxu2 %v4378_v47  ;;  %v4406_v37 = vld [vmem:[%s4567_s5 + $0x4] ss:$0 sm:$0xff] }
0x3612   :  { %v1283_v60 = vmul.f32 %v1281_v59, %v1275_v39  ;;  %v1278_v29 = vmul.f32 %v1275_v39, %v4122_v8 }
0x3613   :  { %2615 = vmatpush.msra.mxu2 %v4382_v49 }
0x3658   :  { %v2309_v52 = vpop.permute.xlu2 %2308 }
0x3659   :  { %v2311_v54 = vmul.f32 %v2309_v52, %v2292_v18 }
0x365b   :  { %2313 = vrot.lane.b32.xlu0 %v2311_v54, %s3783_s27  ;;  %v1989_v54 = vadd.f32 %v4269_v48, %v1988_v53 }
0x3663   :  { %1285 = vrot.lane.b32.xlu0 %v1283_v60, %s3783_s27 }
0x36cd   :  { %v2314_v7 = vpop.permute.xlu0 %2313 }
0x36ce   :  { %2316 = vst.msk [vmem:[#allocation2 + $0x20] sm:$0xff] %vm70_vm0, %v2314_v7  ;;  %3317 = vmatmul.msk.f32.vlgmr.msra.gmra.mxu3 %vm70_vm0, %v2314_v7 }
0x36cf   :  { %2677 = vmatpush.msra.mxu3 %v4372_v27 }
0x36d1   :  { %2678 = vmatpush.msra.mxu3 %v4374_v44 }
0x36d3   :  { %2679 = vmatpush.msra.mxu3 %v4378_v47 }
0x36d5   :  { %v1286_v1 = vpop.permute.xlu0 %1285  ;;  %2680 = vmatpush.msra.mxu3 %v4382_v49 }
0x36d6   :  { %v1288_v2 = vadd.f32 %v1286_v1, %v1278_v29 }
0x3751   :  { %v2336_v63 = vpop.f32.mrf.mxu3 }
0x3752   :  { %v2339_v0 = vadd.f32 %v2336_v63, %v1986_v62 }
0x3754   :  { %3599 = vtanh.f32 %v2339_v0  ;;  %v3318_v55 = vmul.f32 -1.442695, %v2339_v0 }
0x3755   :  { %3601 = vtanh.f32 %v1288_v2 }
0x3756   :  { %3603 = vpow2.f32 %v3318_v55 }
0x375a   :  { %v3600_v3 = vpop.eup %3599 }
0x375b   :  { %2362 = vrot.lane.b32.xlu2 %v3600_v3, %s3782_s1  ;;  %v3602_v4 = vpop.eup %3601 }
0x375c   :  { %v3604_v57 = vpop.eup %3603 }
0x375d   :  { %v2343_v5 = vadd.f32 1.0, %v3604_v57 }
0x375f   :  { %3605 = vrcp.f32 %v2343_v5  ;;  %v2355_v8 = vand.u32 2147483648, %v2343_v5  ;;  %vm2349_vm9 = vweird.f32 %v2343_v5  ;;  %v2353_v24 = vand.u32 2147483647, %v2343_v5 }
0x3761   :  { %v2356_v31 = vor.u32 1.1754944e-38, %v2355_v8  ;;  %vm2354_vm11 = vcmp.eq.f32.partialorder %v2353_v24, 8.507059e+37 }
0x3763   :  { %1291 = vrot.lane.b32.xlu2 %v3602_v4, %s3782_s1 }
0x3765   :  { %v3606_v6 = vpop.eup %3605 }
0x3766   :  { %v2345_v9 = vmul.f32 %v3606_v6, %v2343_v5  ;;  %vm2350_vm8 = vweird.f32 %v3606_v6 }
0x3767   :  { %vm2351_vm10 = vmor %vm2349_vm9, %vm2350_vm8 }
0x3768   :  { %v2346_v10 = vsub.f32 1.0, %v2345_v9 }
0x376a   :  { %v2347_v11 = vmul.f32 %v3606_v6, %v2346_v10 }
0x376c   :  { %v2348_v23 = vadd.f32 %v3606_v6, %v2347_v11 }
0x376e   :  { %v2352_v30 = vsel %vm2351_vm10, %v3606_v6, %v2348_v23 }
0x376f   :  { %v2357_v56 = vsel %vm2354_vm11, %v2356_v31, %v2352_v30 }
0x3770   :  { %v2360_v12 = vmul.f32 %v2357_v56, %v4345_v43  ;;  %v2528_v43 = vld [vmem:[#allocation2 + $0x20] sm:$0xff] }
0x37b5   :  { %v2363_v32 = vpop.permute.xlu2 %2362 }
0x37b6   :  { %v2365_v20 = vmul.f32 %v2363_v32, %v2357_v56 }
0x37b8   :  { %2367 = vrot.lane.b32.xlu1 %v2365_v20, %s3783_s27 }
0x37bd   :  { %v1292_v33 = vpop.permute.xlu2 %1291 }
0x37be   :  { %v1294_v26 = vmul.f32 %v1292_v33, %v1275_v39 }
0x37c0   :  { %1296 = vrot.lane.b32.xlu1 %v1294_v26, %s3783_s27 }
0x382a   :  { %v2368_v22 = vpop.permute.xlu1 %2367 }
0x382b   :  { %v4360_v17 = vadd.f32 %v2368_v22, %v2360_v12 }
0x382d   :  { %3607 = vtanh.f32 %v4360_v17 }
0x3832   :  { %v1297_v15 = vpop.permute.xlu1 %1296 }
0x3833   :  { %v3608_v35 = vpop.eup %3607  ;;  %1299 = vst.msk [vmem:[#allocation2 + $0x38] sm:$0xff] %vm70_vm0, %v1297_v15 }
0x3834   :  { %2373 = vrot.lane.b32.xlu0 %v3608_v35, %s3782_s1 }
0x383a   :  { %v1319_v18 = vld [vmem:[#allocation2 + $0x38] sm:$0xff] }
0x383b   :  { %3283 = vmatmul.msk.f32.gmra.mxu1 %vm70_vm0, %v1319_v18 }
0x3843   :  { %3324 = vmatmul.msk.f32.vlgmr.msrb.gmra.mxu1 %vm70_vm0, %v2524_v36 }
0x384b   :  { %3325 = vmatmul.msk.f32.gmra.mxu1 %vm70_vm0, %v2525_v40 }
0x3853   :  { %3326 = vmatmul.msk.f32.gmra.mxu1 %vm70_vm0, %v2526_v41 }
0x385b   :  { %3327 = vmatmul.msk.f32.gmra.mxu1 %vm70_vm0, %v2527_v42 }
0x3863   :  { %3328 = vmatmul.msk.f32.gmra.mxu1 %vm70_vm0, %v2528_v43 }
0x38a6   :  { %v2374_v45 = vpop.permute.xlu0 %2373 }
0x38a7   :  { %v2376_v19 = vmul.f32 %v2374_v45, %v2357_v56 }
0x38a9   :  { %2378 = vrot.lane.b32.xlu2 %v2376_v19, %s3783_s27 }
0x38b8   :  { %v4400_v52 = vpop.f32.mrf.mxu1 }
0x3903   :  { %v2379_v50 = vpop.permute.xlu2 %2378 }
0x3904   :  { %2381 = vst.msk [vmem:[#allocation2 + $0x28] sm:$0xff] %vm70_vm0, %v2379_v50  ;;  %3319 = vmatmul.msk.f32.vlgmr.msrb.gmra.mxu2 %vm70_vm0, %v2379_v50 }
0x3905   :  { %2742 = vmatpush.msrb.mxu2 %v4372_v27 }
0x3907   :  { %2743 = vmatpush.msrb.mxu2 %v4374_v44 }
0x3909   :  { %2744 = vmatpush.msrb.mxu2 %v4378_v47 }
0x390b   :  { %v2529_v51 = vld [vmem:[#allocation2 + $0x28] sm:$0xff]  ;;  %2745 = vmatpush.msrb.mxu2 %v4382_v49 }
0x390c   :  { %3329 = vmatmul.msk.f32.gmra.mxu1 %vm70_vm0, %v2529_v51  ;;  %2616 = vmatmul.f32.vlgmr.msra.gmra.mxu2 %v3784_v25  ;;  %v2576_v25 = vpop.f32.mrf.mxu1 }
0x390d   :  { %2872 = vmatpush.msra.mxu2 %v4372_v27  ;;  %v2577_v38 = vadd.f32 %v4406_v37, %v2576_v25 }
0x390f   :  { %2873 = vmatpush.msra.mxu2 %v4374_v44 }
0x3911   :  { %2874 = vmatpush.msra.mxu2 %v4378_v47 }
0x3913   :  { %2875 = vmatpush.msra.mxu2 %v4382_v49 }
0x3914   :  { %v2579_v53 = vpop.f32.mrf.mxu1 }
0x3987   :  { %v2401_v58 = vpop.f32.mrf.mxu2 }
0x3988   :  { %v2404_v28 = vadd.f32 %v2401_v58, %v1989_v54  ;;  %v2580_v54 = vadd.f32 %v4406_v37, %v2579_v53 }
0x398a   :  { %3609 = vtanh.f32 %v2404_v28  ;;  %v3320_v48 = vmul.f32 -1.442695, %v2404_v28 }
0x398f   :  { %v2617_v59 = vpop.f32.mrf.mxu2 }
0x3990   :  { %v3610_v39 = vpop.eup %3609  ;;  %v2620_v60 = vadd.f32 %v2617_v59, %v2577_v38 }
0x3991   :  { %2427 = vrot.lane.b32.xlu0 %v3610_v39, %s3782_s1 }
0x3992   :  { %3611 = vtanh.f32 %v2620_v60  ;;  %v3332_v61 = vmul.f32 -1.442695, %v2620_v60 }
0x3993   :  { %3613 = vpow2.f32 %v3320_v48 }
0x3994   :  { %3615 = vpow2.f32 %v3332_v61 }
0x3998   :  { %v3612_v7 = vpop.eup %3611 }
0x3999   :  { %2643 = vrot.lane.b32.xlu1 %v3612_v7, %s3782_s1  ;;  %v3614_v62 = vpop.eup %3613 }
0x399a   :  { %v2408_v63 = vadd.f32 1.0, %v3614_v62  ;;  %v3616_v0 = vpop.eup %3615 }
0x399b   :  { %v2624_v1 = vadd.f32 1.0, %v3616_v0 }
0x399c   :  { %3617 = vrcp.f32 %v2408_v63  ;;  %v2420_v9 = vand.u32 2147483648, %v2408_v63  ;;  %vm2414_vm13 = vweird.f32 %v2408_v63  ;;  %v2418_v10 = vand.u32 2147483647, %v2408_v63 }
0x399d   :  { %3619 = vrcp.f32 %v2624_v1  ;;  %v2636_v56 = vand.u32 2147483648, %v2624_v1  ;;  %vm2630_vm2 = vweird.f32 %v2624_v1  ;;  %v2634_v20 = vand.u32 2147483647, %v2624_v1 }
0x399e   :  { %v2421_v8 = vor.u32 1.1754944e-38, %v2420_v9  ;;  %vm2419_vm15 = vcmp.eq.f32.partialorder %v2418_v10, 8.507059e+37 }
0x399f   :  { %v2637_v26 = vor.u32 1.1754944e-38, %v2636_v56  ;;  %vm2635_vm4 = vcmp.eq.f32.partialorder %v2634_v20, 8.507059e+37 }
0x39a2   :  { %v3618_v29 = vpop.eup %3617 }
0x39a3   :  { %v2410_v2 = vmul.f32 %v3618_v29, %v2408_v63  ;;  %v3620_v4 = vpop.eup %3619  ;;  %vm2415_vm12 = vweird.f32 %v3618_v29 }
0x39a4   :  { %v2626_v57 = vmul.f32 %v3620_v4, %v2624_v1  ;;  %vm2416_vm14 = vmor %vm2414_vm13, %vm2415_vm12  ;;  %vm2631_vm1 = vweird.f32 %v3620_v4 }
0x39a5   :  { %v2411_v3 = vsub.f32 1.0, %v2410_v2  ;;  %vm2632_vm3 = vmor %vm2630_vm2, %vm2631_vm1 }
0x39a6   :  { %v2627_v6 = vsub.f32 1.0, %v2626_v57 }
0x39a7   :  { %v2412_v55 = vmul.f32 %v3618_v29, %v2411_v3 }
0x39a8   :  { %v2628_v23 = vmul.f32 %v3620_v4, %v2627_v6 }
0x39a9   :  { %v2413_v5 = vadd.f32 %v3618_v29, %v2412_v55 }
0x39aa   :  { %v2629_v32 = vadd.f32 %v3620_v4, %v2628_v23  ;;  %v2582_v23 = vpop.f32.mrf.mxu1 }
0x39ab   :  { %v2417_v11 = vsel %vm2416_vm14, %v3618_v29, %v2413_v5 }
0x39ac   :  { %v2422_v30 = vsel %vm2419_vm15, %v2421_v8, %v2417_v11  ;;  %v2633_v33 = vsel %vm2632_vm3, %v3620_v4, %v2629_v32  ;;  %v2583_v8 = vadd.f32 %v4406_v37, %v2582_v23 }
0x39ad   :  { %v2638_v13 = vsel %vm2635_vm4, %v2637_v26, %v2633_v33  ;;  %v2425_v34 = vmul.f32 %v2422_v30, %v4360_v17 }
0x39ae   :  { %v2641_v35 = vmul.f32 0.0, %v2638_v13 }
0x39b2   :  { %v2585_v53 = vpop.f32.mrf.mxu1 }
0x3a03   :  { %v2428_v24 = vpop.permute.xlu0 %2427 }
0x3a04   :  { %v2430_v31 = vmul.f32 %v2428_v24, %v2422_v30 }
0x3a06   :  { %2432 = vrot.lane.b32.xlu2 %v2430_v31, %s3783_s27 }
0x3a0b   :  { %v2644_v21 = vpop.permute.xlu1 %2643 }
0x3a0c   :  { %v2646_v14 = vmul.f32 %v2644_v21, %v2638_v13 }
0x3a0e   :  { %2648 = vrot.lane.b32.xlu0 %v2646_v14, %s3783_s27 }
0x3a60   :  { %v2433_v12 = vpop.permute.xlu2 %2432 }
0x3a61   :  { %v4414_v22 = vadd.f32 %v2433_v12, %v2425_v34 }
0x3a63   :  { %3621 = vtanh.f32 %v4414_v22 }
0x3a69   :  { %v3622_v15 = vpop.eup %3621 }
0x3a6a   :  { %2438 = vrot.lane.b32.xlu1 %v3622_v15, %s3782_s1 }
0x3a80   :  { %v2649_v18 = vpop.permute.xlu0 %2648 }
0x3a81   :  { %v2651_v36 = vadd.f32 %v2649_v18, %v2641_v35 }
0x3a83   :  { %3623 = vtanh.f32 %v2651_v36 }
0x3a89   :  { %v3624_v40 = vpop.eup %3623 }
0x3a8a   :  { %2654 = vrot.lane.b32.xlu2 %v3624_v40, %s3782_s1 }
0x3adc   :  { %v2439_v41 = vpop.permute.xlu1 %2438 }
0x3add   :  { %v2441_v42 = vmul.f32 %v2439_v41, %v2422_v30 }
0x3adf   :  { %2443 = vrot.lane.b32.xlu0 %v2441_v42, %s3783_s27 }
0x3ae4   :  { %v2655_v17 = vpop.permute.xlu2 %2654 }
0x3ae5   :  { %v2657_v43 = vmul.f32 %v2655_v17, %v2638_v13 }
0x3ae7   :  { %2659 = vrot.lane.b32.xlu1 %v2657_v43, %s3783_s27 }
0x3b51   :  { %v2444_v45 = vpop.permute.xlu0 %2443 }
0x3b52   :  { %2446 = vst.msk [vmem:[#allocation2 + $0x30] sm:$0xff] %vm70_vm0, %v2444_v45  ;;  %3321 = vmatmul.msk.f32.vlgmr.msrb.gmra.mxu3 %vm70_vm0, %v2444_v45 }
0x3b53   :  { %2807 = vmatpush.msrb.mxu3 %v4372_v27 }
0x3b55   :  { %2808 = vmatpush.msrb.mxu3 %v4374_v44 }
0x3b57   :  { %2809 = vmatpush.msrb.mxu3 %v4378_v47 }
0x3b59   :  { %v2660_v19 = vpop.permute.xlu1 %2659  ;;  %v2530_v50 = vld [vmem:[#allocation2 + $0x30] sm:$0xff]  ;;  %2810 = vmatpush.msrb.mxu3 %v4382_v49 }
0x3b5a   :  { %2662 = vst.msk [vmem:[#allocation2] sm:$0xff] %vm70_vm0, %v2660_v19  ;;  %3330 = vmatmul.msk.f32.gmra.mxu1 %vm70_vm0, %v2530_v50  ;;  %3333 = vmatmul.msk.f32.vlgmr.msra.gmra.mxu3 %vm70_vm0, %v2660_v19 }
0x3b5b   :  { %2937 = vmatpush.msra.mxu3 %v4372_v27 }
0x3b5d   :  { %2938 = vmatpush.msra.mxu3 %v4374_v44 }
0x3b5f   :  { %2939 = vmatpush.msra.mxu3 %v4378_v47 }
0x3b61   :  { %2940 = vmatpush.msra.mxu3 %v4382_v49 }
0x3bd5   :  { %v4434_v51 = vpop.f32.mrf.mxu3 }
0x3bdd   :  { %v2682_v58 = vpop.f32.mrf.mxu3 }
0x3bde   :  { %v2685_v28 = vadd.f32 %v2682_v58, %v2580_v54  ;;  %v2586_v54 = vadd.f32 %v4406_v37, %v2585_v53 }
0x3be0   :  { %3625 = vtanh.f32 %v2685_v28  ;;  %v3334_v38 = vmul.f32 -1.442695, %v2685_v28 }
0x3be2   :  { %3627 = vpow2.f32 %v3334_v38 }
0x3be6   :  { %v3626_v25 = vpop.eup %3625 }
0x3be7   :  { %2708 = vrot.lane.b32.xlu2 %v3626_v25, %s3782_s1 }
0x3be8   :  { %v3628_v59 = vpop.eup %3627 }
0x3be9   :  { %v2689_v39 = vadd.f32 1.0, %v3628_v59 }
0x3beb   :  { %3629 = vrcp.f32 %v2689_v39  ;;  %v2701_v63 = vand.u32 2147483648, %v2689_v39  ;;  %vm2695_vm6 = vweird.f32 %v2689_v39  ;;  %v2699_v0 = vand.u32 2147483647, %v2689_v39 }
0x3bed   :  { %v2702_v29 = vor.u32 1.1754944e-38, %v2701_v63  ;;  %vm2700_vm8 = vcmp.eq.f32.partialorder %v2699_v0, 8.507059e+37 }
0x3bf1   :  { %v3630_v60 = vpop.eup %3629 }
0x3bf2   :  { %v2691_v7 = vmul.f32 %v3630_v60, %v2689_v39  ;;  %vm2696_vm5 = vweird.f32 %v3630_v60 }
0x3bf3   :  { %vm2697_vm7 = vmor %vm2695_vm6, %vm2696_vm5 }
0x3bf4   :  { %v2692_v48 = vsub.f32 1.0, %v2691_v7 }
0x3bf6   :  { %v2693_v61 = vmul.f32 %v3630_v60, %v2692_v48 }
0x3bf8   :  { %v2694_v62 = vadd.f32 %v3630_v60, %v2693_v61 }
0x3bfa   :  { %v2698_v1 = vsel %vm2697_vm7, %v3630_v60, %v2694_v62 }
0x3bfb   :  { %v2703_v3 = vsel %vm2700_vm8, %v2702_v29, %v2698_v1 }
0x3bfc   :  { %v2706_v55 = vmul.f32 %v2703_v3, %v2651_v36 }
0x3c41   :  { %v2709_v2 = vpop.permute.xlu2 %2708 }
0x3c42   :  { %v2711_v4 = vmul.f32 %v2709_v2, %v2703_v3 }
0x3c44   :  { %2713 = vrot.lane.b32.xlu0 %v2711_v4, %s3783_s27 }
0x3cb6   :  { %v2714_v57 = vpop.permute.xlu0 %2713 }
0x3cb7   :  { %v2716_v5 = vadd.f32 %v2714_v57, %v2706_v55 }
0x3cb9   :  { %3631 = vtanh.f32 %v2716_v5 }
0x3cbf   :  { %v3632_v6 = vpop.eup %3631 }
0x3cc0   :  { %2719 = vrot.lane.b32.xlu1 %v3632_v6, %s3782_s1  ;;  %v2588_v6 = vpop.f32.mrf.mxu1 }
0x3d32   :  { %v2720_v9 = vpop.permute.xlu1 %2719 }
0x3d33   :  { %v2722_v10 = vmul.f32 %v2720_v9, %v2703_v3  ;;  %v2589_v9 = vadd.f32 %v4406_v37, %v2588_v6 }
0x3d35   :  { %2724 = vrot.lane.b32.xlu2 %v2722_v10, %s3783_s27 }
0x3d8f   :  { %v2725_v11 = vpop.permute.xlu2 %2724 }
0x3d90   :  { %2727 = vst.msk [vmem:[#allocation2 + $0x8] sm:$0xff] %vm70_vm0, %v2725_v11  ;;  %3335 = vmatmul.msk.f32.vlgmr.msrb.gmra.mxu2 %vm70_vm0, %v2725_v11 }
0x3d91   :  { %3002 = vmatpush.msrb.mxu2 %v4372_v27 }
0x3d93   :  { %3003 = vmatpush.msrb.mxu2 %v4374_v44 }
0x3d95   :  { %3004 = vmatpush.msrb.mxu2 %v4378_v47 }
0x3d97   :  { %3005 = vmatpush.msrb.mxu2 %v4382_v49 }
0x3e13   :  { %v2747_v24 = vpop.f32.mrf.mxu2 }
0x3e14   :  { %v2750_v30 = vadd.f32 %v2747_v24, %v2583_v8 }
0x3e16   :  { %3633 = vtanh.f32 %v2750_v30  ;;  %v3336_v32 = vmul.f32 -1.442695, %v2750_v30 }
0x3e18   :  { %3635 = vpow2.f32 %v3336_v32 }
0x3e1c   :  { %v3634_v31 = vpop.eup %3633 }
0x3e1d   :  { %2773 = vrot.lane.b32.xlu0 %v3634_v31, %s3782_s1 }
0x3e1e   :  { %v3636_v56 = vpop.eup %3635 }
0x3e1f   :  { %v2754_v20 = vadd.f32 1.0, %v3636_v56 }
0x3e21   :  { %3637 = vrcp.f32 %v2754_v20  ;;  %v2766_v34 = vand.u32 2147483648, %v2754_v20  ;;  %vm2760_vm10 = vweird.f32 %v2754_v20  ;;  %v2764_v12 = vand.u32 2147483647, %v2754_v20 }
0x3e23   :  { %v2767_v35 = vor.u32 1.1754944e-38, %v2766_v34  ;;  %vm2765_vm12 = vcmp.eq.f32.partialorder %v2764_v12, 8.507059e+37 }
0x3e27   :  { %v3638_v33 = vpop.eup %3637 }
0x3e28   :  { %v2756_v26 = vmul.f32 %v3638_v33, %v2754_v20  ;;  %vm2761_vm9 = vweird.f32 %v3638_v33 }
0x3e29   :  { %vm2762_vm11 = vmor %vm2760_vm10, %vm2761_vm9 }
0x3e2a   :  { %v2757_v21 = vsub.f32 1.0, %v2756_v26 }
0x3e2c   :  { %v2758_v13 = vmul.f32 %v3638_v33, %v2757_v21 }
0x3e2e   :  { %v2759_v14 = vadd.f32 %v3638_v33, %v2758_v13  ;;  %v3698_v13 = vld [vmem:[%s4567_s5 + $0x2] ss:$0 sm:$0xff] }
0x3e30   :  { %v2763_v15 = vsel %vm2762_vm11, %v3638_v33, %v2759_v14  ;;  %v1386_v14 = vadd.f32 %v3698_v13, %v4400_v52 }
0x3e31   :  { %v2768_v36 = vsel %vm2765_vm12, %v2767_v35, %v2763_v15 }
0x3e32   :  { %v2771_v41 = vmul.f32 %v2768_v36, %v2716_v5  ;;  %v1863_v15 = vadd.f32 %v4304_v46, %v1386_v14 }
0x3e8f   :  { %v2774_v18 = vpop.permute.xlu0 %2773 }
0x3e90   :  { %v2776_v40 = vmul.f32 %v2774_v18, %v2768_v36 }
0x3e92   :  { %2778 = vrot.lane.b32.xlu1 %v2776_v40, %s3783_s27 }
0x3f04   :  { %v2779_v42 = vpop.permute.xlu1 %2778 }
0x3f05   :  { %v2781_v17 = vadd.f32 %v2779_v42, %v2771_v41 }
0x3f07   :  { %3639 = vtanh.f32 %v2781_v17 }
0x3f0d   :  { %v3640_v43 = vpop.eup %3639 }
0x3f0e   :  { %2784 = vrot.lane.b32.xlu2 %v3640_v43, %s3782_s1  ;;  %v3298_v43 = vmul.f32 -1.442695, %v1863_v15 }
0x3f68   :  { %v2785_v45 = vpop.permute.xlu2 %2784 }
0x3f69   :  { %v2787_v19 = vmul.f32 %v2785_v45, %v2768_v36 }
0x3f6b   :  { %2789 = vrot.lane.b32.xlu0 %v2787_v19, %s3783_s27 }
0x3fdd   :  { %v2790_v50 = vpop.permute.xlu0 %2789 }
0x3fde   :  { %2792 = vst.msk [vmem:[#allocation2 + $0x10] sm:$0xff] %vm70_vm0, %v2790_v50  ;;  %3337 = vmatmul.msk.f32.vlgmr.msrb.gmra.mxu3 %vm70_vm0, %v2790_v50 }
0x3fdf   :  { %3067 = vmatpush.msrb.mxu3 %v4372_v27 }
0x3fe1   :  { %3068 = vmatpush.msrb.mxu3 %v4374_v44 }
0x3fe3   :  { %3069 = vmatpush.msrb.mxu3 %v4378_v47 }
0x3fe5   :  { %3070 = vmatpush.msrb.mxu3 %v4382_v49 }
0x4061   :  { %v2812_v58 = vpop.f32.mrf.mxu3 }
0x4062   :  { %v2815_v28 = vadd.f32 %v2812_v58, %v2586_v54 }
0x4064   :  { %3641 = vtanh.f32 %v2815_v28  ;;  %v3338_v38 = vmul.f32 -1.442695, %v2815_v28 }
0x4066   :  { %3643 = vpow2.f32 %v3338_v38 }
0x406a   :  { %v3642_v25 = vpop.eup %3641 }
0x406b   :  { %2838 = vrot.lane.b32.xlu1 %v3642_v25, %s3782_s1 }
0x406c   :  { %v3644_v59 = vpop.eup %3643 }
0x406d   :  { %v2819_v39 = vadd.f32 1.0, %v3644_v59 }
0x406f   :  { %3645 = vrcp.f32 %v2819_v39  ;;  %v2831_v49 = vand.u32 2147483648, %v2819_v39  ;;  %vm2825_vm14 = vweird.f32 %v2819_v39  ;;  %v2829_v48 = vand.u32 2147483647, %v2819_v39 }
0x4071   :  { %v2832_v62 = vor.u32 1.1754944e-38, %v2831_v49  ;;  %vm2830_vm1 = vcmp.eq.f32.partialorder %v2829_v48, 8.507059e+37  ;;  %v2591_v49 = vpop.f32.mrf.mxu1 }
0x4072   :  { %v2592_v48 = vadd.f32 %v4406_v37, %v2591_v49 }
0x4075   :  { %v3646_v27 = vpop.eup %3645 }
0x4076   :  { %v2821_v44 = vmul.f32 %v3646_v27, %v2819_v39  ;;  %vm2826_vm13 = vweird.f32 %v3646_v27 }
0x4077   :  { %vm2827_vm15 = vmor %vm2825_vm14, %vm2826_vm13 }
0x4078   :  { %v2822_v60 = vsub.f32 1.0, %v2821_v44 }
0x407a   :  { %v2823_v47 = vmul.f32 %v3646_v27, %v2822_v60 }
0x407c   :  { %v2824_v7 = vadd.f32 %v3646_v27, %v2823_v47 }
0x407e   :  { %v2828_v61 = vsel %vm2827_vm15, %v3646_v27, %v2824_v7 }
0x407f   :  { %v2833_v0 = vsel %vm2830_vm1, %v2832_v62, %v2828_v61 }
0x4080   :  { %v2836_v29 = vmul.f32 %v2833_v0, %v2781_v17 }
0x40dd   :  { %v2839_v63 = vpop.permute.xlu1 %2838 }
0x40de   :  { %v2841_v1 = vmul.f32 %v2839_v63, %v2833_v0 }
0x40e0   :  { %2843 = vrot.lane.b32.xlu2 %v2841_v1, %s3783_s27 }
0x413a   :  { %v2844_v2 = vpop.permute.xlu2 %2843 }
0x413b   :  { %v2846_v3 = vadd.f32 %v2844_v2, %v2836_v29 }
0x413d   :  { %3647 = vtanh.f32 %v2846_v3 }
0x4143   :  { %v3648_v4 = vpop.eup %3647 }
0x4144   :  { %2849 = vrot.lane.b32.xlu0 %v3648_v4, %s3782_s1 }
0x41b6   :  { %v2850_v55 = vpop.permute.xlu0 %2849 }
0x41b7   :  { %v2852_v57 = vmul.f32 %v2850_v55, %v2833_v0 }
0x41b9   :  { %2854 = vrot.lane.b32.xlu1 %v2852_v57, %s3783_s27 }
0x422b   :  { %v2855_v5 = vpop.permute.xlu1 %2854 }
0x422c   :  { %2857 = vst.msk [vmem:[#allocation2 + $0x18] sm:$0xff] %vm70_vm0, %v2855_v5  ;;  %3339 = vmatmul.msk.f32.vlgmr.msra.gmra.mxu2 %vm70_vm0, %v2855_v5 }
0x42af   :  { %v2877_v10 = vpop.f32.mrf.mxu2 }
0x42b0   :  { %v2880_v11 = vadd.f32 %v2877_v10, %v2589_v9 }
0x42b2   :  { %3649 = vtanh.f32 %v2880_v11  ;;  %v3340_v8 = vmul.f32 -1.442695, %v2880_v11 }
0x42b4   :  { %3651 = vpow2.f32 %v3340_v8 }
0x42b8   :  { %v3650_v23 = vpop.eup %3649 }
0x42b9   :  { %2903 = vrot.lane.b32.xlu2 %v3650_v23, %s3782_s1 }
0x42ba   :  { %v3652_v24 = vpop.eup %3651 }
0x42bb   :  { %v2884_v30 = vadd.f32 1.0, %v3652_v24 }
0x42bd   :  { %3653 = vrcp.f32 %v2884_v30  ;;  %v2896_v26 = vand.u32 2147483648, %v2884_v30  ;;  %vm2890_vm3 = vweird.f32 %v2884_v30  ;;  %v2894_v21 = vand.u32 2147483647, %v2884_v30 }
0x42be   :  { %3655 = vtanh.f32 %v1863_v15 }
0x42bf   :  { %v2897_v12 = vor.u32 1.1754944e-38, %v2896_v26  ;;  %vm2895_vm5 = vcmp.eq.f32.partialorder %v2894_v21, 8.507059e+37  ;;  %v3127_v26 = vld [vmem:[%s4568_s6 + $0x8] sm:$0xff]  ;;  %v3126_v21 = vld [vmem:[%s4568_s6] sm:$0xff] }
0x42c3   :  { %v3654_v31 = vpop.eup %3653 }
0x42c4   :  { %v2886_v32 = vmul.f32 %v3654_v31, %v2884_v30  ;;  %vm2891_vm2 = vweird.f32 %v3654_v31  ;;  %v3656_v40 = vpop.eup %3655 }
0x42c5   :  { %vm2892_vm4 = vmor %vm2890_vm3, %vm2891_vm2 }
0x42c6   :  { %v2887_v56 = vsub.f32 1.0, %v2886_v32 }
0x42c8   :  { %v2888_v20 = vmul.f32 %v3654_v31, %v2887_v56 }
0x42ca   :  { %v2889_v33 = vadd.f32 %v3654_v31, %v2888_v20  ;;  %v3129_v20 = vld [vmem:[%s4568_s6 + $0x18] sm:$0xff] }
0x42cb   :  { %3170 = vmatpush.msrb.mxu0 %v3129_v20 }
0x42cc   :  { %v2893_v34 = vsel %vm2892_vm4, %v3654_v31, %v2889_v33  ;;  %v3128_v33 = vld [vmem:[%s4568_s6 + $0x10] sm:$0xff] }
0x42cd   :  { %v2898_v18 = vsel %vm2895_vm5, %v2897_v12, %v2893_v34  ;;  %3171 = vmatpush.msrb.mxu0 %v3128_v33 }
0x42ce   :  { %v2901_v41 = vmul.f32 %v2898_v18, %v2846_v3 }
0x42cf   :  { %3172 = vmatpush.msrb.mxu0 %v3127_v26 }
0x42d1   :  { %3173 = vmatpush.msrb.mxu0 %v3126_v21 }
0x4313   :  { %v2904_v35 = vpop.permute.xlu2 %2903 }
0x4314   :  { %v2906_v36 = vmul.f32 %v2904_v35, %v2898_v18 }
0x4316   :  { %2908 = vrot.lane.b32.xlu0 %v2906_v36, %s3783_s27  ;;  %v3119_v36 = vld [vmem:[#allocation2 + $0x8] sm:$0xff] }
0x431e   :  { %1886 = vrot.lane.b32.xlu0 %v3656_v40, %s3782_s1  ;;  %v3120_v40 = vld [vmem:[#allocation2 + $0x10] sm:$0xff] }
0x4388   :  { %v2909_v42 = vpop.permute.xlu0 %2908 }
0x4389   :  { %v4474_v17 = vadd.f32 %v2909_v42, %v2901_v41  ;;  %v3121_v41 = vld [vmem:[#allocation2 + $0x18] sm:$0xff] }
0x438b   :  { %3657 = vtanh.f32 %v4474_v17 }
0x438c   :  { %3659 = vpow2.f32 %v3298_v43 }
0x4390   :  { %v1887_v44 = vpop.permute.xlu0 %1886 }
0x4391   :  { %v3658_v52 = vpop.eup %3657 }
0x4392   :  { %2914 = vrot.lane.b32.xlu1 %v3658_v52, %s3782_s1  ;;  %v3660_v46 = vpop.eup %3659 }
0x4393   :  { %v1867_v45 = vadd.f32 1.0, %v3660_v46  ;;  %v3699_v46 = vld [vmem:[%s4567_s5 + $0x3] ss:$0 sm:$0xff]  ;;  %s3785_s5 = smov [#allocation8]  }
0x4395   :  { %3661 = vrcp.f32 %v1867_v45  ;;  %v1879_v38 = vand.u32 2147483648, %v1867_v45  ;;  %vm1873_vm7 = vweird.f32 %v1867_v45  ;;  %v1877_v59 = vand.u32 2147483647, %v1867_v45 }
0x4397   :  { %v1880_v27 = vor.u32 1.1754944e-38, %v1879_v38  ;;  %vm1878_vm9 = vcmp.eq.f32.partialorder %v1877_v59, 8.507059e+37 }
0x439b   :  { %v3662_v19 = vpop.eup %3661 }
0x439c   :  { %v1869_v50 = vmul.f32 %v3662_v19, %v1867_v45  ;;  %vm1874_vm6 = vweird.f32 %v3662_v19 }
0x439d   :  { %vm1875_vm8 = vmor %vm1873_vm7, %vm1874_vm6 }
0x439e   :  { %v1870_v53 = vsub.f32 1.0, %v1869_v50  ;;  %v4520_v50 = vld [vmem:[%s4569_s7] ss:$0 sm:$0xff]  ;;  %s3211_s7 = sshll.u32 %s3785_s5, 4  ;;  %s3212_s7 = int_to_ptr.vmem [resolvable:$true] %s3211_s7 }
0x43a0   :  { %v1871_v54 = vmul.f32 %v3662_v19, %v1870_v53 }
0x43a2   :  { %v1872_v28 = vadd.f32 %v3662_v19, %v1871_v54 }
0x43a4   :  { %v1876_v39 = vsel %vm1875_vm8, %v3662_v19, %v1872_v28 }
0x43a5   :  { %v1881_v60 = vsel %vm1878_vm9, %v1880_v27, %v1876_v39 }
0x43a6   :  { %v1889_v47 = vmul.f32 %v1887_v44, %v1881_v60  ;;  %v1884_v0 = vmul.f32 %v1881_v60, %v4283_v16 }
0x4404   :  { %v2915_v58 = vpop.permute.xlu1 %2914 }
0x4405   :  { %v2917_v25 = vmul.f32 %v2915_v58, %v2898_v18  ;;  %v3118_v18 = vld [vmem:[#allocation2] sm:$0xff] }
0x4407   :  { %2919 = vrot.lane.b32.xlu2 %v2917_v25, %s3783_s27 }
0x440f   :  { %1891 = vrot.lane.b32.xlu2 %v1889_v47, %s3783_s27 }
0x4461   :  { %v2920_v7 = vpop.permute.xlu2 %2919 }
0x4462   :  { %2922 = vst.msk [vmem:[#allocation2 + $0x20] sm:$0xff] %vm70_vm0, %v2920_v7  ;;  %3341 = vmatmul.msk.f32.vlgmr.msra.gmra.mxu3 %vm70_vm0, %v2920_v7 }
0x4469   :  { %v1892_v63 = vpop.permute.xlu2 %1891  ;;  %v3122_v42 = vld [vmem:[#allocation2 + $0x20] sm:$0xff] }
0x446a   :  { %v1894_v1 = vadd.f32 %v1892_v63, %v1884_v0 }
0x44e5   :  { %v2942_v61 = vpop.f32.mrf.mxu3 }
0x44e6   :  { %v2945_v62 = vadd.f32 %v2942_v61, %v2592_v48 }
0x44e8   :  { %3663 = vtanh.f32 %v2945_v62  ;;  %v3342_v3 = vmul.f32 -1.442695, %v2945_v62 }
0x44e9   :  { %3665 = vtanh.f32 %v1894_v1 }
0x44ea   :  { %3667 = vpow2.f32 %v3342_v3 }
0x44ee   :  { %v3664_v29 = vpop.eup %3663 }
0x44ef   :  { %2968 = vrot.lane.b32.xlu1 %v3664_v29, %s3782_s1  ;;  %v3666_v2 = vpop.eup %3665 }
0x44f0   :  { %v3668_v4 = vpop.eup %3667 }
0x44f1   :  { %v2949_v55 = vadd.f32 1.0, %v3668_v4 }
0x44f3   :  { %3669 = vrcp.f32 %v2949_v55  ;;  %v2961_v16 = vand.u32 2147483648, %v2949_v55  ;;  %vm2955_vm11 = vweird.f32 %v2949_v55  ;;  %v2959_v11 = vand.u32 2147483647, %v2949_v55 }
0x44f5   :  { %v2962_v8 = vor.u32 1.1754944e-38, %v2961_v16  ;;  %vm2960_vm13 = vcmp.eq.f32.partialorder %v2959_v11, 8.507059e+37 }
0x44f7   :  { %1897 = vrot.lane.b32.xlu1 %v3666_v2, %s3782_s1 }
0x44f9   :  { %v3670_v57 = vpop.eup %3669 }
0x44fa   :  { %v2951_v5 = vmul.f32 %v3670_v57, %v2949_v55  ;;  %vm2956_vm10 = vweird.f32 %v3670_v57 }
0x44fb   :  { %vm2957_vm12 = vmor %vm2955_vm11, %vm2956_vm10 }
0x44fc   :  { %v2952_v6 = vsub.f32 1.0, %v2951_v5 }
0x44fe   :  { %v2953_v9 = vmul.f32 %v3670_v57, %v2952_v6  ;;  %v2594_v6 = vpop.f32.mrf.mxu1 }
0x4500   :  { %v2954_v10 = vadd.f32 %v3670_v57, %v2953_v9  ;;  %v2595_v9 = vadd.f32 %v4406_v37, %v2594_v6 }
0x4502   :  { %v2958_v23 = vsel %vm2957_vm12, %v3670_v57, %v2954_v10 }
0x4503   :  { %v2963_v30 = vsel %vm2960_vm13, %v2962_v8, %v2958_v23 }
0x4504   :  { %v2966_v13 = vmul.f32 %v2963_v30, %v4474_v17 }
0x4561   :  { %v2969_v24 = vpop.permute.xlu1 %2968 }
0x4562   :  { %v2971_v31 = vmul.f32 %v2969_v24, %v2963_v30 }
0x4564   :  { %2973 = vrot.lane.b32.xlu0 %v2971_v31, %s3783_s27 }
0x4569   :  { %v1898_v32 = vpop.permute.xlu1 %1897 }
0x456a   :  { %v1900_v56 = vmul.f32 %v1898_v32, %v1881_v60 }
0x456c   :  { %1902 = vrot.lane.b32.xlu0 %v1900_v56, %s3783_s27 }
0x45d6   :  { %v2974_v14 = vpop.permute.xlu0 %2973 }
0x45d7   :  { %v4501_v34 = vadd.f32 %v2974_v14, %v2966_v13 }
0x45d9   :  { %3671 = vtanh.f32 %v4501_v34 }
0x45de   :  { %v1903_v12 = vpop.permute.xlu0 %1902 }
0x45df   :  { %v3672_v15 = vpop.eup %3671  ;;  %1905 = vst.msk [vmem:[#allocation2 + $0x38] sm:$0xff] %vm70_vm0, %v1903_v12 }
0x45e0   :  { %2979 = vrot.lane.b32.xlu2 %v3672_v15, %s3782_s1 }
0x45e6   :  { %v1925_v35 = vld [vmem:[#allocation2 + $0x38] sm:$0xff] }
0x45e7   :  { %3307 = vmatmul.msk.f32.gmra.mxu0 %vm70_vm0, %v1925_v35 }
0x45ef   :  { %3347 = vmatmul.msk.f32.vlgmr.msrb.gmra.mxu0 %vm70_vm0, %v3118_v18 }
0x45f7   :  { %3348 = vmatmul.msk.f32.gmra.mxu0 %vm70_vm0, %v3119_v36 }
0x45ff   :  { %3349 = vmatmul.msk.f32.gmra.mxu0 %vm70_vm0, %v3120_v40 }
0x4607   :  { %3350 = vmatmul.msk.f32.gmra.mxu0 %vm70_vm0, %v3121_v41 }
0x460f   :  { %3351 = vmatmul.msk.f32.gmra.mxu0 %vm70_vm0, %v3122_v42 }
0x463a   :  { %v2980_v17 = vpop.permute.xlu2 %2979 }
0x463b   :  { %v2982_v52 = vmul.f32 %v2980_v17, %v2963_v30 }
0x463d   :  { %2984 = vrot.lane.b32.xlu1 %v2982_v52, %s3783_s27 }
0x4664   :  { %v1991_v43 = vpop.f32.mrf.mxu0 }
0x4665   :  { %v1992_v45 = vadd.f32 %v3699_v46, %v1991_v43 }
0x4667   :  { %v2469_v19 = vadd.f32 %v4434_v51, %v1992_v45 }
0x4669   :  { %3673 = vtanh.f32 %v2469_v19  ;;  %v3322_v60 = vmul.f32 -1.442695, %v2469_v19 }
0x466b   :  { %3675 = vpow2.f32 %v3322_v60 }
0x466c   :  { %v3175_v53 = vpop.f32.mrf.mxu0 }
0x466d   :  { %v3176_v54 = vadd.f32 %v4520_v50, %v3175_v53 }
0x466f   :  { %v3674_v58 = vpop.eup %3673  ;;  %3199 = vst [vmem:[#allocation8] sm:$0xff] %v3176_v54 }
0x4670   :  { %2492 = vrot.lane.b32.xlu2 %v3674_v58, %s3782_s1 }
0x4671   :  { %v3676_v47 = vpop.eup %3675 }
0x4672   :  { %v2473_v7 = vadd.f32 1.0, %v3676_v47 }
0x4674   :  { %v3178_v28 = vpop.f32.mrf.mxu0  ;;  %3677 = vrcp.f32 %v2473_v7  ;;  %v2485_v29 = vand.u32 2147483648, %v2473_v7  ;;  %vm2479_vm15 = vweird.f32 %v2473_v7  ;;  %v2483_v2 = vand.u32 2147483647, %v2473_v7 }
0x4675   :  { %v3179_v25 = vadd.f32 %v4520_v50, %v3178_v28 }
0x4676   :  { %v2486_v4 = vor.u32 1.1754944e-38, %v2485_v29  ;;  %vm2484_vm2 = vcmp.eq.f32.partialorder %v2483_v2, 8.507059e+37 }
0x4677   :  { %3200 = vst [vmem:[#allocation8 + $0x8] sm:$0xff] %v3179_v25 }
0x467a   :  { %v3678_v48 = vpop.eup %3677 }
0x467b   :  { %v2475_v62 = vmul.f32 %v3678_v48, %v2473_v7  ;;  %vm2480_vm14 = vweird.f32 %v3678_v48 }
0x467c   :  { %v3181_v38 = vpop.f32.mrf.mxu0  ;;  %vm2481_vm1 = vmor %vm2479_vm15, %vm2480_vm14 }
0x467d   :  { %v3182_v51 = vadd.f32 %v4520_v50, %v3181_v38  ;;  %v2476_v63 = vsub.f32 1.0, %v2475_v62 }
0x467f   :  { %3201 = vst [vmem:[#allocation8 + $0x10] sm:$0xff] %v3182_v51  ;;  %v2477_v0 = vmul.f32 %v3678_v48, %v2476_v63 }
0x4681   :  { %v2478_v1 = vadd.f32 %v3678_v48, %v2477_v0 }
0x4683   :  { %v2482_v3 = vsel %vm2481_vm1, %v3678_v48, %v2478_v1 }
0x4684   :  { %v3184_v59 = vpop.f32.mrf.mxu0  ;;  %v2487_v55 = vsel %vm2484_vm2, %v2486_v4, %v2482_v3 }
0x4685   :  { %v3185_v39 = vadd.f32 %v4520_v50, %v3184_v59  ;;  %v2490_v24 = vmul.f32 %v2487_v55, %v4414_v22 }
0x4687   :  { %3202 = vst [vmem:[#allocation8 + $0x18] sm:$0xff] %v3185_v39 }
0x468c   :  { %v3187_v27 = vpop.f32.mrf.mxu0 }
0x468d   :  { %v3188_v44 = vadd.f32 %v4520_v50, %v3187_v27 }
0x468f   :  { %3203 = vst [vmem:[#allocation8 + $0x20] sm:$0xff] %v3188_v44 }
0x46af   :  { %v2985_v49 = vpop.permute.xlu1 %2984 }
0x46b0   :  { %2987 = vst.msk [vmem:[#allocation2 + $0x28] sm:$0xff] %vm70_vm0, %v2985_v49  ;;  %3343 = vmatmul.msk.f32.vlgmr.msrb.gmra.mxu2 %vm70_vm0, %v2985_v49 }
0x46b7   :  { %v3123_v61 = vld [vmem:[#allocation2 + $0x28] sm:$0xff] }
0x46b8   :  { %3352 = vmatmul.msk.f32.gmra.mxu0 %vm70_vm0, %v3123_v61 }
0x46ca   :  { %v2493_v57 = vpop.permute.xlu2 %2492 }
0x46cb   :  { %v2495_v5 = vmul.f32 %v2493_v57, %v2487_v55 }
0x46cd   :  { %2497 = vrot.lane.b32.xlu1 %v2495_v5, %s3783_s27 }
0x4733   :  { %v3007_v10 = vpop.f32.mrf.mxu2 }
0x4734   :  { %v3010_v16 = vadd.f32 %v3007_v10, %v2595_v9 }
0x4735   :  { %v3190_v11 = vpop.f32.mrf.mxu0 }
0x4736   :  { %3679 = vtanh.f32 %v3010_v16  ;;  %v3191_v23 = vadd.f32 %v4520_v50, %v3190_v11  ;;  %v3344_v56 = vmul.f32 -1.442695, %v3010_v16 }
0x4738   :  { %3204 = vst [vmem:[#allocation8 + $0x28] sm:$0xff] %v3191_v23 }
0x473c   :  { %v3680_v8 = vpop.eup %3679 }
0x473d   :  { %3033 = vrot.lane.b32.xlu0 %v3680_v8, %s3782_s1 }
0x473f   :  { %v2498_v30 = vpop.permute.xlu1 %2497 }
0x4740   :  { %v2500_v31 = vadd.f32 %v2498_v30, %v2490_v24 }
0x4742   :  { %3681 = vtanh.f32 %v2500_v31 }
0x4743   :  { %3683 = vpow2.f32 %v3344_v56 }
0x4748   :  { %v3682_v32 = vpop.eup %3681 }
0x4749   :  { %2503 = vrot.lane.b32.xlu0 %v3682_v32, %s3782_s1  ;;  %v3684_v20 = vpop.eup %3683 }
0x474a   :  { %v3014_v33 = vadd.f32 1.0, %v3684_v20 }
0x474c   :  { %3685 = vrcp.f32 %v3014_v33  ;;  %v3026_v15 = vand.u32 2147483648, %v3014_v33  ;;  %vm3020_vm4 = vweird.f32 %v3014_v33  ;;  %v3024_v22 = vand.u32 2147483647, %v3014_v33 }
0x474e   :  { %v3027_v18 = vor.u32 1.1754944e-38, %v3026_v15  ;;  %vm3025_vm6 = vcmp.eq.f32.partialorder %v3024_v22, 8.507059e+37 }
0x4752   :  { %v3686_v26 = vpop.eup %3685 }
0x4753   :  { %v3016_v21 = vmul.f32 %v3686_v26, %v3014_v33  ;;  %vm3021_vm3 = vweird.f32 %v3686_v26 }
0x4754   :  { %vm3022_vm5 = vmor %vm3020_vm4, %vm3021_vm3 }
0x4755   :  { %v3017_v13 = vsub.f32 1.0, %v3016_v21 }
0x4757   :  { %v3018_v14 = vmul.f32 %v3686_v26, %v3017_v13 }
0x4759   :  { %v3019_v12 = vadd.f32 %v3686_v26, %v3018_v14 }
0x475b   :  { %v3023_v35 = vsel %vm3022_vm5, %v3686_v26, %v3019_v12 }
0x475c   :  { %v3028_v40 = vsel %vm3025_vm6, %v3027_v18, %v3023_v35 }
0x475d   :  { %v3031_v52 = vmul.f32 %v3028_v40, %v4501_v34 }
0x47af   :  { %v3034_v36 = vpop.permute.xlu0 %3033 }
0x47b0   :  { %v3036_v41 = vmul.f32 %v3034_v36, %v3028_v40 }
0x47b2   :  { %3038 = vrot.lane.b32.xlu2 %v3036_v41, %s3783_s27 }
0x47bb   :  { %v2504_v42 = vpop.permute.xlu0 %2503 }
0x47bc   :  { %v2506_v17 = vmul.f32 %v2504_v42, %v2487_v55 }
0x47be   :  { %2508 = vrot.lane.b32.xlu2 %v2506_v17, %s3783_s27 }
0x480c   :  { %v3039_v43 = vpop.permute.xlu2 %3038 }
0x480d   :  { %v3041_v46 = vadd.f32 %v3039_v43, %v3031_v52 }
0x480f   :  { %3687 = vtanh.f32 %v3041_v46 }
0x4815   :  { %v3688_v45 = vpop.eup %3687 }
0x4816   :  { %3044 = vrot.lane.b32.xlu1 %v3688_v45, %s3782_s1 }
0x4818   :  { %v2509_v19 = vpop.permute.xlu2 %2508 }
0x4819   :  { %2511 = vst.msk [vmem:[#allocation2 + $0x38] sm:$0xff] %vm70_vm0, %v2509_v19 }
0x4820   :  { %v2531_v53 = vld [vmem:[#allocation2 + $0x38] sm:$0xff] }
0x4821   :  { %3331 = vmatmul.msk.f32.gmra.mxu1 %vm70_vm0, %v2531_v53 }
0x4888   :  { %v3045_v54 = vpop.permute.xlu1 %3044 }
0x4889   :  { %v3047_v58 = vmul.f32 %v3045_v54, %v3028_v40 }
0x488b   :  { %3049 = vrot.lane.b32.xlu0 %v3047_v58, %s3783_s27 }
0x489e   :  { %v2597_v25 = vpop.f32.mrf.mxu1 }
0x489f   :  { %v2598_v38 = vadd.f32 %v4406_v37, %v2597_v25 }
0x48fd   :  { %v3050_v28 = vpop.permute.xlu0 %3049 }
0x48fe   :  { %3052 = vst.msk [vmem:[#allocation2 + $0x30] sm:$0xff] %vm70_vm0, %v3050_v28  ;;  %3345 = vmatmul.msk.f32.vlgmr.msrb.gmra.mxu3 %vm70_vm0, %v3050_v28 }
0x4905   :  { %v3124_v34 = vld [vmem:[#allocation2 + $0x30] sm:$0xff] }
0x4906   :  { %3353 = vmatmul.msk.f32.gmra.mxu0 %vm70_vm0, %v3124_v34 }
0x4981   :  { %v3072_v51 = vpop.f32.mrf.mxu3 }
0x4982   :  { %v3075_v59 = vadd.f32 %v3072_v51, %v2598_v38 }
0x4983   :  { %v3193_v39 = vpop.f32.mrf.mxu0 }
0x4984   :  { %3689 = vtanh.f32 %v3075_v59  ;;  %v3194_v27 = vadd.f32 %v4520_v50, %v3193_v39  ;;  %v3346_v60 = vmul.f32 -1.442695, %v3075_v59 }
0x4986   :  { %3205 = vst [vmem:[#allocation8 + $0x30] sm:$0xff] %v3194_v27  ;;  %3691 = vpow2.f32 %v3346_v60 }
0x498a   :  { %v3690_v44 = vpop.eup %3689 }
0x498b   :  { %3098 = vrot.lane.b32.xlu1 %v3690_v44, %s3782_s1 }
0x498c   :  { %v3692_v47 = vpop.eup %3691 }
0x498d   :  { %v3079_v7 = vadd.f32 1.0, %v3692_v47 }
0x498f   :  { %3693 = vrcp.f32 %v3079_v7  ;;  %v3091_v63 = vand.u32 2147483648, %v3079_v7  ;;  %vm3085_vm8 = vweird.f32 %v3079_v7  ;;  %v3089_v0 = vand.u32 2147483647, %v3079_v7 }
0x4991   :  { %v3092_v29 = vor.u32 1.1754944e-38, %v3091_v63  ;;  %vm3090_vm10 = vcmp.eq.f32.partialorder %v3089_v0, 8.507059e+37 }
0x4995   :  { %v3694_v49 = vpop.eup %3693 }
0x4996   :  { %v3081_v48 = vmul.f32 %v3694_v49, %v3079_v7  ;;  %vm3086_vm7 = vweird.f32 %v3694_v49 }
0x4997   :  { %vm3087_vm9 = vmor %vm3085_vm8, %vm3086_vm7 }
0x4998   :  { %v3082_v61 = vsub.f32 1.0, %v3081_v48 }
0x499a   :  { %v3083_v62 = vmul.f32 %v3694_v49, %v3082_v61 }
0x499c   :  { %v3084_v37 = vadd.f32 %v3694_v49, %v3083_v62 }
0x499e   :  { %v3088_v1 = vsel %vm3087_vm9, %v3694_v49, %v3084_v37 }
0x499f   :  { %v3093_v3 = vsel %vm3090_vm10, %v3092_v29, %v3088_v1 }
0x49a0   :  { %v3096_v55 = vmul.f32 %v3093_v3, %v3041_v46 }
0x49fd   :  { %v3099_v2 = vpop.permute.xlu1 %3098 }
0x49fe   :  { %v3101_v4 = vmul.f32 %v3099_v2, %v3093_v3 }
0x4a00   :  { %3103 = vrot.lane.b32.xlu2 %v3101_v4, %s3783_s27 }
0x4a5a   :  { %v3104_v57 = vpop.permute.xlu2 %3103 }
0x4a5b   :  { %v3106_v5 = vadd.f32 %v3104_v57, %v3096_v55 }
0x4a5d   :  { %3695 = vtanh.f32 %v3106_v5 }
0x4a63   :  { %v3696_v6 = vpop.eup %3695 }
0x4a64   :  { %3109 = vrot.lane.b32.xlu0 %v3696_v6, %s3782_s1 }
0x4ad6   :  { %v3110_v9 = vpop.permute.xlu0 %3109 }
0x4ad7   :  { %v3112_v10 = vmul.f32 %v3110_v9, %v3093_v3 }
0x4ad9   :  { %3114 = vrot.lane.b32.xlu1 %v3112_v10, %s3783_s27 }
0x4b4b   :  { %v3115_v16 = vpop.permute.xlu1 %3114 }
0x4b4c   :  { %3117 = vst.msk [vmem:[#allocation2 + $0x38] sm:$0xff] %vm70_vm0, %v3115_v16 }
0x4b53   :  { %v3125_v11 = vld [vmem:[#allocation2 + $0x38] sm:$0xff] }
0x4b54   :  { %3354 = vmatmul.msk.f32.gmra.mxu0 %vm70_vm0, %v3125_v11 }
0x4bd1   :  { %v3196_v23 = vpop.f32.mrf.mxu0 }
0x4bd2   :  { %v3197_v8 = vadd.f32 %v4520_v50, %v3196_v23 }
0x4bd4   :  { %3206 = vst [vmem:[#allocation8 + $0x38] sm:$0xff] %v3197_v8 }
0x4bd5   :  { %3219 = dma.vmem_to_hbm [thread:$0]  %s3212_s7, 1024, %s3214_s4, [#allocation5], %s3779_s13, %s3779_s13, %s3780_s14  }
0x4bd6   :  { %3776 = dma.done.wait [#allocation5], 1024  }
0x4bd7   :  { %3777 = vsyncadd [#allocation5], 4294966272 }
0x4bd8   :  { %3224 = vsyncpa [#allocation4], 1 }
0x4bd9   :  { %3225 = vsyncpa [#allocation7], 1 }
0x4bda   :  { %3226 = vsyncpa [#allocation5], 1 }

</bundles_post_ra>
